<compile_context>
chip_gen: v7x
topology: tpu7x:2x2x1
jax: 0.10.0
libtpu: 0.0.40
codegen_flags: <defaults>
</compile_context>

<pallas_src>
import jax
import jax.numpy as jnp
from jax import lax
from jax.experimental import pallas as pl
from jax.experimental.pallas import tpu as pltpu

KH, KW = 17, 10
PAD_H = 8
C_OUT = 128
POOL_H = 64


def fused_conv_relu_pool_kernel(x_ref, band_ref, b_ref, o_ref, lhs_ref, w_ref):
    # x_ref    : (NB, 1, H, W)       unpadded input rows for NB batch elements
    # band_ref : (K_pad, C)          compact weight band: band[kh*W + j, c] = W[c,0,kh,j]
    # b_ref    : (1, w_out*C)        bias tiled along w_out
    # o_ref    : (NB, h_pool, w_out*C) pooled output
    # lhs_ref  : VMEM (NB*h_out, K_pad)      im2col scratch
    # w_ref    : VMEM (K_pad, w_out*C)       Toeplitz-expanded weight (resident)
    nb, _, h_in, w_in = x_ref.shape
    m, k_pad = lhs_ref.shape
    h_out = m // nb
    _, h_pool, wc = o_ref.shape
    w_out = wc // C_OUT

    # ---- build the Toeplitz-expanded weight in VMEM once per call (step 0) ----
    # Column band wo is the compact band shifted down by wo rows; the shifted-out
    # bottom rows land in the (zero) K-padding region, so a zero-prepend is exact.
    @pl.when(pl.program_id(0) == 0)
    def _():
        band0 = band_ref[...]                                   # (K_pad, C)
        for wo in range(w_out):                                 # static unroll (7)
            col = wo * C_OUT
            if wo == 0:
                w_ref[:, pl.ds(col, C_OUT)] = band0
            else:
                w_ref[pl.ds(0, wo), pl.ds(col, C_OUT)] = jnp.zeros(
                    (wo, C_OUT), band0.dtype)
                w_ref[pl.ds(wo, k_pad - wo), pl.ds(col, C_OUT)] = band0[:k_pad - wo, :]

    # ---- in-kernel padded im2col over kh (conv height padding folded in) ----
    # Bulk zero covers both the conv's zero-padded rows and the K-pad columns
    # (required: uninitialized VMEM x zero weight rows could give NaN*0=NaN).
    lhs_ref[...] = jnp.zeros_like(lhs_ref)
    for b in range(nb):                                         # static unroll
        xb = x_ref[b][0]                                        # (H, W) value
        for kh in range(KH):                                    # static unroll
            top = max(0, PAD_H - kh)            # zero rows from top padding
            bot = max(0, kh - PAD_H)            # zero rows from bottom padding
            src0 = max(0, kh - PAD_H)
            nv = h_out - top - bot              # valid input rows for this kh
            lhs_ref[pl.ds(b * h_out + top, nv), pl.ds(kh * w_in, w_in)] = (
                xb[src0:src0 + nv, :])

    # ---- conv as ONE MXU matmul, fully resident in VMEM ----
    acc = jnp.dot(lhs_ref[...], w_ref[...],
                  preferred_element_type=jnp.float32)           # (NB*h_out, wc)

    # ---- MaxPool2d((64,1), stride=1) FIRST (commutes with bias-add + ReLU),
    #      then relu(pooled + bias) on the tiny (h_pool, wc) result ----
    bias_row = b_ref[...]                                       # (1, wc)
    for b in range(nb):                                         # static unroll
        rows = []
        for hp in range(h_pool):                                # h_pool is tiny
            win = acc[b * h_out + hp: b * h_out + hp + POOL_H]  # (64, wc)
            half = POOL_H
            while half > 8:                                     # 64->32->16->8
                half //= 2
                win = jnp.maximum(win[:half], win[half:2 * half])
            rows.append(jnp.max(win, axis=0, keepdims=True))
        pooled = rows[0] if h_pool == 1 else jnp.concatenate(rows, axis=0)
        o_ref[b] = jnp.maximum(pooled + bias_row, 0.0)          # (h_pool, wc)


def prepare_cnn_params(weight, bias, w_in):
    """One-time weight packing (hoisted out of the per-call forward path).

    Returns the compact weight band (K_pad, C) with
      band[kh*w_in + j, c] = weight[c, 0, kh, j]  for j < KW, else 0,
    and the bias tiled along w_out as a (1, w_out*C) row.
    """
    w_out = w_in - KW + 1
    k_raw = KH * w_in
    k_pad = ((k_raw + 127) // 128) * 128
    wt = jnp.transpose(weight[:, 0], (1, 2, 0)).astype(jnp.float32)   # (KH, KW, C)
    band = jnp.pad(wt, ((0, 0), (0, w_in - KW), (0, 0))).reshape(k_raw, C_OUT)
    band0 = jnp.pad(band, ((0, k_pad - k_raw), (0, 0)))               # (K_pad, C)
    bias_wc = jnp.tile(bias.astype(jnp.float32), w_out).reshape(1, w_out * C_OUT)
    return band0, bias_wc


def cnn_forward(x, band0, bias_wc):
    n, c_in, h, w_in = x.shape
    assert c_in == 1
    h_out = h + 2 * PAD_H - KH + 1
    w_out = w_in - KW + 1
    h_pool = h_out - POOL_H + 1
    assert h_pool >= 1 and h_out % 8 == 0
    assert (POOL_H & (POOL_H - 1)) == 0          # pooling tree assumes pow2 window
    wc = w_out * C_OUT
    k_raw = KH * w_in
    k_pad = ((k_raw + 127) // 128) * 128
    assert band0.shape == (k_pad, C_OUT) and bias_wc.shape == (1, wc)

    # Batch-block the grid: largest NB dividing N with NB*h_out <= 512 rows so the
    # MXU sees >= 128 LHS rows per step (NB=2 -> single grid step for the demo).
    nb = 1
    for cand in range(min(n, max(1, 512 // h_out)), 0, -1):
        if n % cand == 0:
            nb = cand
            break

    pooled = pl.pallas_call(
        fused_conv_relu_pool_kernel,
        out_shape=jax.ShapeDtypeStruct((n, h_pool, wc), jnp.float32),
        grid_spec=pltpu.PrefetchScalarGridSpec(
            num_scalar_prefetch=0,
            grid=(n // nb,),
            in_specs=[
                pl.BlockSpec((nb, 1, h, w_in), lambda i: (i, 0, 0, 0)),
                pl.BlockSpec((k_pad, C_OUT), lambda i: (0, 0)),   # grid-invariant
                pl.BlockSpec((1, wc), lambda i: (0, 0)),          # grid-invariant
            ],
            out_specs=pl.BlockSpec((nb, h_pool, wc), lambda i: (i, 0, 0)),
            scratch_shapes=[
                pltpu.VMEM((nb * h_out, k_pad), jnp.float32),     # im2col LHS
                pltpu.VMEM((k_pad, wc), jnp.float32),             # expanded weight
            ],
        ),
        # "arbitrary": sequential single-core grid -> the weight scratch built at
        # step 0 stays valid for later steps, and the grid-invariant weight is
        # never replicated per-TC on v7x.
        compiler_params=pltpu.CompilerParams(
            dimension_semantics=("arbitrary",)),
    )(x.astype(jnp.float32), band0, bias_wc)

    # (N, h_pool, w_out*C) -> PyTorch NCHW (N, C, h_pool, w_out)
    return jnp.transpose(pooled.reshape(n, h_pool, w_out, C_OUT), (0, 3, 1, 2))


def _reference(x, weight, bias):
    conv = lax.conv_general_dilated(
        x, weight, window_strides=(1, 1),
        padding=((PAD_H, PAD_H), (0, 0)),
        dimension_numbers=("NCHW", "OIHW", "NCHW"),
        precision=lax.Precision.HIGHEST)
    act = jnp.maximum(conv + bias[None, :, None, None], 0.0)
    return lax.reduce_window(
        act, -jnp.inf, lax.max,
        window_dimensions=(1, 1, POOL_H, 1),
        window_strides=(1, 1, 1, 1),
        padding="VALID")


if __name__ == "__main__":
    key = jax.random.PRNGKey(0)
    kx, kwt, kb = jax.random.split(key, 3)

    # input: NCHW, (batch=2, in_channels=1, H=64, W=16)
    N, H, W = 2, 64, 16
    x = jax.random.normal(kx, (N, 1, H, W), dtype=jnp.float32)

    # deterministic Conv2d params (PyTorch-style uniform(-1/sqrt(fan_in), ...))
    fan_in = 1 * KH * KW
    bound = 1.0 / (fan_in ** 0.5)
    weight = jax.random.uniform(kwt, (C_OUT, 1, KH, KW),
                                minval=-bound, maxval=bound, dtype=jnp.float32)
    bias = jax.random.uniform(kb, (C_OUT,),
                              minval=-bound, maxval=bound, dtype=jnp.float32)

    # One-time weight packing (NOT on the per-call path).
    band0, bias_wc = prepare_cnn_params(weight, bias, W)
    band0, bias_wc = jax.block_until_ready((band0, bias_wc))

    fwd = jax.jit(cnn_forward)
    out = jax.block_until_ready(fwd(x, band0, bias_wc))

    h_out = H + 2 * PAD_H - KH + 1
    w_out = W - KW + 1
    assert out.shape == (N, C_OUT, h_out - POOL_H + 1, w_out), out.shape

    ref = jax.block_until_ready(_reference(x, weight, bias))
    assert jnp.allclose(out, ref, atol=1e-4, rtol=1e-4), \
        f"max abs err = {jnp.max(jnp.abs(out - ref))}"

    print("KERNEL_OK")
</pallas_src>

<mosaic_0001>
module attributes {stable_mosaic.version = 11 : i64} {
  func.func @fused_conv_relu_pool_kernel(%arg0: i32, %arg1: memref<2x1x64x16xf32, #tpu.memory_space<vmem>>, %arg2: memref<384x128xf32, #tpu.memory_space<vmem>>, %arg3: memref<1x896xf32, #tpu.memory_space<vmem>>, %arg4: memref<2x1x896xf32, #tpu.memory_space<vmem>>, %arg5: memref<128x384xf32, #tpu.memory_space<vmem>>, %arg6: memref<384x896xf32, #tpu.memory_space<vmem>>) attributes {dimension_semantics = [#tpu.dimension_semantics<arbitrary>], iteration_bounds = array<i64: 1>, scalar_prefetch = 0 : i64, scratch_operands = 2 : i64, tpu.core_type = #tpu.core_type<tc>, window_params = [{transform_indices = @transform_0, window_bounds = array<i64: 2, 1, 64, 16>}, {pipeline_mode = #tpu.pipeline_mode<synchronous>, transform_indices = @transform_1, window_bounds = array<i64: 384, 128>}, {pipeline_mode = #tpu.pipeline_mode<synchronous>, transform_indices = @transform_2, window_bounds = array<i64: 1, 896>}, {transform_indices = @transform_3, window_bounds = array<i64: 2, 1, 896>}]} {
    %c0_i32 = arith.constant 0 : i32
    %0 = arith.cmpi eq, %arg0, %c0_i32 : i32
    %1 = arith.extui %0 : i1 to i32
    %c0_i32_0 = arith.constant 0 : i32
    %2 = arith.cmpi ne, %1, %c0_i32_0 : i32
    scf.if %2 {
      %c0_63 = arith.constant 0 : index
      %c0_64 = arith.constant 0 : index
      %117 = vector.load %arg2[%c0_63, %c0_64] : memref<384x128xf32, #tpu.memory_space<vmem>>, vector<384x128xf32>
      %c0_65 = arith.constant 0 : index
      %c0_66 = arith.constant 0 : index
      %118 = vector.load %arg6[%c0_65, %c0_66] : memref<384x896xf32, #tpu.memory_space<vmem>>, vector<384x128xf32>
      tpu.vector_store %arg6[%c0_65, %c0_66], %117 {strides = array<i32>} : memref<384x896xf32, #tpu.memory_space<vmem>>, vector<384x128xf32>,
      %cst_67 = arith.constant 0.000000e+00 : f32
      %119 = vector.broadcast %cst_67 : f32 to vector<1x128xf32>
      %c0_68 = arith.constant 0 : index
      %c128_69 = arith.constant 128 : index
      %120 = vector.load %arg6[%c0_68, %c128_69] : memref<384x896xf32, #tpu.memory_space<vmem>>, vector<1x128xf32>
      tpu.vector_store %arg6[%c0_68, %c128_69], %119 {strides = array<i32>} : memref<384x896xf32, #tpu.memory_space<vmem>>, vector<1x128xf32>,
      %121 = vector.extract_strided_slice %117 {offsets = [0, 0], sizes = [383, 128], strides = [1, 1]} : vector<384x128xf32> to vector<383x128xf32>
      %c1_70 = arith.constant 1 : index
      %c128_71 = arith.constant 128 : index
      %122 = vector.load %arg6[%c1_70, %c128_71] : memref<384x896xf32, #tpu.memory_space<vmem>>, vector<383x128xf32>
      tpu.vector_store %arg6[%c1_70, %c128_71], %121 {strides = array<i32>} : memref<384x896xf32, #tpu.memory_space<vmem>>, vector<383x128xf32>,
      %cst_72 = arith.constant 0.000000e+00 : f32
      %123 = vector.broadcast %cst_72 : f32 to vector<2x128xf32>
      %c0_73 = arith.constant 0 : index
      %c256_74 = arith.constant 256 : index
      %124 = vector.load %arg6[%c0_73, %c256_74] : memref<384x896xf32, #tpu.memory_space<vmem>>, vector<2x128xf32>
      tpu.vector_store %arg6[%c0_73, %c256_74], %123 {strides = array<i32>} : memref<384x896xf32, #tpu.memory_space<vmem>>, vector<2x128xf32>,
      %125 = vector.extract_strided_slice %117 {offsets = [0, 0], sizes = [382, 128], strides = [1, 1]} : vector<384x128xf32> to vector<382x128xf32>
      %c2_75 = arith.constant 2 : index
      %c256_76 = arith.constant 256 : index
      %126 = vector.load %arg6[%c2_75, %c256_76] : memref<384x896xf32, #tpu.memory_space<vmem>>, vector<382x128xf32>
      tpu.vector_store %arg6[%c2_75, %c256_76], %125 {strides = array<i32>} : memref<384x896xf32, #tpu.memory_space<vmem>>, vector<382x128xf32>,
      %cst_77 = arith.constant 0.000000e+00 : f32
      %127 = vector.broadcast %cst_77 : f32 to vector<3x128xf32>
      %c0_78 = arith.constant 0 : index
      %c384 = arith.constant 384 : index
      %128 = vector.load %arg6[%c0_78, %c384] : memref<384x896xf32, #tpu.memory_space<vmem>>, vector<3x128xf32>
      tpu.vector_store %arg6[%c0_78, %c384], %127 {strides = array<i32>} : memref<384x896xf32, #tpu.memory_space<vmem>>, vector<3x128xf32>,
      %129 = vector.extract_strided_slice %117 {offsets = [0, 0], sizes = [381, 128], strides = [1, 1]} : vector<384x128xf32> to vector<381x128xf32>
      %c3_79 = arith.constant 3 : index
      %c384_80 = arith.constant 384 : index
      %130 = vector.load %arg6[%c3_79, %c384_80] : memref<384x896xf32, #tpu.memory_space<vmem>>, vector<381x128xf32>
      tpu.vector_store %arg6[%c3_79, %c384_80], %129 {strides = array<i32>} : memref<384x896xf32, #tpu.memory_space<vmem>>, vector<381x128xf32>,
      %cst_81 = arith.constant 0.000000e+00 : f32
      %131 = vector.broadcast %cst_81 : f32 to vector<4x128xf32>
      %c0_82 = arith.constant 0 : index
      %c512 = arith.constant 512 : index
      %132 = vector.load %arg6[%c0_82, %c512] : memref<384x896xf32, #tpu.memory_space<vmem>>, vector<4x128xf32>
      tpu.vector_store %arg6[%c0_82, %c512], %131 {strides = array<i32>} : memref<384x896xf32, #tpu.memory_space<vmem>>, vector<4x128xf32>,
      %133 = vector.extract_strided_slice %117 {offsets = [0, 0], sizes = [380, 128], strides = [1, 1]} : vector<384x128xf32> to vector<380x128xf32>
      %c4_83 = arith.constant 4 : index
      %c512_84 = arith.constant 512 : index
      %134 = vector.load %arg6[%c4_83, %c512_84] : memref<384x896xf32, #tpu.memory_space<vmem>>, vector<380x128xf32>
      tpu.vector_store %arg6[%c4_83, %c512_84], %133 {strides = array<i32>} : memref<384x896xf32, #tpu.memory_space<vmem>>, vector<380x128xf32>,
      %cst_85 = arith.constant 0.000000e+00 : f32
      %135 = vector.broadcast %cst_85 : f32 to vector<5x128xf32>
      %c0_86 = arith.constant 0 : index
      %c640 = arith.constant 640 : index
      %136 = vector.load %arg6[%c0_86, %c640] : memref<384x896xf32, #tpu.memory_space<vmem>>, vector<5x128xf32>
      tpu.vector_store %arg6[%c0_86, %c640], %135 {strides = array<i32>} : memref<384x896xf32, #tpu.memory_space<vmem>>, vector<5x128xf32>,
      %137 = vector.extract_strided_slice %117 {offsets = [0, 0], sizes = [379, 128], strides = [1, 1]} : vector<384x128xf32> to vector<379x128xf32>
      %c5_87 = arith.constant 5 : index
      %c640_88 = arith.constant 640 : index
      %138 = vector.load %arg6[%c5_87, %c640_88] : memref<384x896xf32, #tpu.memory_space<vmem>>, vector<379x128xf32>
      tpu.vector_store %arg6[%c5_87, %c640_88], %137 {strides = array<i32>} : memref<384x896xf32, #tpu.memory_space<vmem>>, vector<379x128xf32>,
      %cst_89 = arith.constant 0.000000e+00 : f32
      %139 = vector.broadcast %cst_89 : f32 to vector<6x128xf32>
      %c0_90 = arith.constant 0 : index
      %c768 = arith.constant 768 : index
      %140 = vector.load %arg6[%c0_90, %c768] : memref<384x896xf32, #tpu.memory_space<vmem>>, vector<6x128xf32>
      tpu.vector_store %arg6[%c0_90, %c768], %139 {strides = array<i32>} : memref<384x896xf32, #tpu.memory_space<vmem>>, vector<6x128xf32>,
      %141 = vector.extract_strided_slice %117 {offsets = [0, 0], sizes = [378, 128], strides = [1, 1]} : vector<384x128xf32> to vector<378x128xf32>
      %c6_91 = arith.constant 6 : index
      %c768_92 = arith.constant 768 : index
      %142 = vector.load %arg6[%c6_91, %c768_92] : memref<384x896xf32, #tpu.memory_space<vmem>>, vector<378x128xf32>
      tpu.vector_store %arg6[%c6_91, %c768_92], %141 {strides = array<i32>} : memref<384x896xf32, #tpu.memory_space<vmem>>, vector<378x128xf32>,
    } else {
    }
    %cst = arith.constant 0.000000e+00 : f32
    %3 = vector.broadcast %cst : f32 to vector<128x384xf32>
    %c0 = arith.constant 0 : index
    %c0_1 = arith.constant 0 : index
    %4 = vector.load %arg5[%c0, %c0_1] : memref<128x384xf32, #tpu.memory_space<vmem>>, vector<128x384xf32>
    tpu.vector_store %arg5[%c0, %c0_1], %3 {strides = array<i32>} : memref<128x384xf32, #tpu.memory_space<vmem>>, vector<128x384xf32>,
    %c0_2 = arith.constant 0 : index
    %c0_3 = arith.constant 0 : index
    %c0_4 = arith.constant 0 : index
    %c0_5 = arith.constant 0 : index
    %5 = vector.load %arg1[%c0_2, %c0_3, %c0_4, %c0_5] : memref<2x1x64x16xf32, #tpu.memory_space<vmem>>, vector<1x1x64x16xf32>
    %6 = vector.shape_cast %5 : vector<1x1x64x16xf32> to vector<1x64x16xf32>
    %7 = vector.shape_cast %6 : vector<1x64x16xf32> to vector<64x16xf32>
    %8 = vector.extract_strided_slice %7 {offsets = [0, 0], sizes = [56, 16], strides = [1, 1]} : vector<64x16xf32> to vector<56x16xf32>
    %c8 = arith.constant 8 : index
    %c0_6 = arith.constant 0 : index
    %9 = vector.load %arg5[%c8, %c0_6] : memref<128x384xf32, #tpu.memory_space<vmem>>, vector<56x16xf32>
    tpu.vector_store %arg5[%c8, %c0_6], %8 {strides = array<i32>} : memref<128x384xf32, #tpu.memory_space<vmem>>, vector<56x16xf32>,
    %10 = vector.extract_strided_slice %7 {offsets = [0, 0], sizes = [57, 16], strides = [1, 1]} : vector<64x16xf32> to vector<57x16xf32>
    %c7 = arith.constant 7 : index
    %c16 = arith.constant 16 : index
    %11 = vector.load %arg5[%c7, %c16] : memref<128x384xf32, #tpu.memory_space<vmem>>, vector<57x16xf32>
    tpu.vector_store %arg5[%c7, %c16], %10 {strides = array<i32>} : memref<128x384xf32, #tpu.memory_space<vmem>>, vector<57x16xf32>,
    %12 = vector.extract_strided_slice %7 {offsets = [0, 0], sizes = [58, 16], strides = [1, 1]} : vector<64x16xf32> to vector<58x16xf32>
    %c6 = arith.constant 6 : index
    %c32 = arith.constant 32 : index
    %13 = vector.load %arg5[%c6, %c32] : memref<128x384xf32, #tpu.memory_space<vmem>>, vector<58x16xf32>
    tpu.vector_store %arg5[%c6, %c32], %12 {strides = array<i32>} : memref<128x384xf32, #tpu.memory_space<vmem>>, vector<58x16xf32>,
    %14 = vector.extract_strided_slice %7 {offsets = [0, 0], sizes = [59, 16], strides = [1, 1]} : vector<64x16xf32> to vector<59x16xf32>
    %c5 = arith.constant 5 : index
    %c48 = arith.constant 48 : index
    %15 = vector.load %arg5[%c5, %c48] : memref<128x384xf32, #tpu.memory_space<vmem>>, vector<59x16xf32>
    tpu.vector_store %arg5[%c5, %c48], %14 {strides = array<i32>} : memref<128x384xf32, #tpu.memory_space<vmem>>, vector<59x16xf32>,
    %16 = vector.extract_strided_slice %7 {offsets = [0, 0], sizes = [60, 16], strides = [1, 1]} : vector<64x16xf32> to vector<60x16xf32>
    %c4 = arith.constant 4 : index
    %c64 = arith.constant 64 : index
    %17 = vector.load %arg5[%c4, %c64] : memref<128x384xf32, #tpu.memory_space<vmem>>, vector<60x16xf32>
    tpu.vector_store %arg5[%c4, %c64], %16 {strides = array<i32>} : memref<128x384xf32, #tpu.memory_space<vmem>>, vector<60x16xf32>,
    %18 = vector.extract_strided_slice %7 {offsets = [0, 0], sizes = [61, 16], strides = [1, 1]} : vector<64x16xf32> to vector<61x16xf32>
    %c3 = arith.constant 3 : index
    %c80 = arith.constant 80 : index
    %19 = vector.load %arg5[%c3, %c80] : memref<128x384xf32, #tpu.memory_space<vmem>>, vector<61x16xf32>
    tpu.vector_store %arg5[%c3, %c80], %18 {strides = array<i32>} : memref<128x384xf32, #tpu.memory_space<vmem>>, vector<61x16xf32>,
    %20 = vector.extract_strided_slice %7 {offsets = [0, 0], sizes = [62, 16], strides = [1, 1]} : vector<64x16xf32> to vector<62x16xf32>
    %c2 = arith.constant 2 : index
    %c96 = arith.constant 96 : index
    %21 = vector.load %arg5[%c2, %c96] : memref<128x384xf32, #tpu.memory_space<vmem>>, vector<62x16xf32>
    tpu.vector_store %arg5[%c2, %c96], %20 {strides = array<i32>} : memref<128x384xf32, #tpu.memory_space<vmem>>, vector<62x16xf32>,
    %22 = vector.extract_strided_slice %7 {offsets = [0, 0], sizes = [63, 16], strides = [1, 1]} : vector<64x16xf32> to vector<63x16xf32>
    %c1 = arith.constant 1 : index
    %c112 = arith.constant 112 : index
    %23 = vector.load %arg5[%c1, %c112] : memref<128x384xf32, #tpu.memory_space<vmem>>, vector<63x16xf32>
    tpu.vector_store %arg5[%c1, %c112], %22 {strides = array<i32>} : memref<128x384xf32, #tpu.memory_space<vmem>>, vector<63x16xf32>,
    %c0_7 = arith.constant 0 : index
    %c128 = arith.constant 128 : index
    %24 = vector.load %arg5[%c0_7, %c128] : memref<128x384xf32, #tpu.memory_space<vmem>>, vector<64x16xf32>
    tpu.vector_store %arg5[%c0_7, %c128], %7 {strides = array<i32>} : memref<128x384xf32, #tpu.memory_space<vmem>>, vector<64x16xf32>,
    %25 = vector.extract_strided_slice %7 {offsets = [1, 0], sizes = [63, 16], strides = [1, 1]} : vector<64x16xf32> to vector<63x16xf32>
    %c0_8 = arith.constant 0 : index
    %c144 = arith.constant 144 : index
    %26 = vector.load %arg5[%c0_8, %c144] : memref<128x384xf32, #tpu.memory_space<vmem>>, vector<63x16xf32>
    tpu.vector_store %arg5[%c0_8, %c144], %25 {strides = array<i32>} : memref<128x384xf32, #tpu.memory_space<vmem>>, vector<63x16xf32>,
    %27 = vector.extract_strided_slice %7 {offsets = [2, 0], sizes = [62, 16], strides = [1, 1]} : vector<64x16xf32> to vector<62x16xf32>
    %c0_9 = arith.constant 0 : index
    %c160 = arith.constant 160 : index
    %28 = vector.load %arg5[%c0_9, %c160] : memref<128x384xf32, #tpu.memory_space<vmem>>, vector<62x16xf32>
    tpu.vector_store %arg5[%c0_9, %c160], %27 {strides = array<i32>} : memref<128x384xf32, #tpu.memory_space<vmem>>, vector<62x16xf32>,
    %29 = vector.extract_strided_slice %7 {offsets = [3, 0], sizes = [61, 16], strides = [1, 1]} : vector<64x16xf32> to vector<61x16xf32>
    %c0_10 = arith.constant 0 : index
    %c176 = arith.constant 176 : index
    %30 = vector.load %arg5[%c0_10, %c176] : memref<128x384xf32, #tpu.memory_space<vmem>>, vector<61x16xf32>
    tpu.vector_store %arg5[%c0_10, %c176], %29 {strides = array<i32>} : memref<128x384xf32, #tpu.memory_space<vmem>>, vector<61x16xf32>,
    %31 = vector.extract_strided_slice %7 {offsets = [4, 0], sizes = [60, 16], strides = [1, 1]} : vector<64x16xf32> to vector<60x16xf32>
    %c0_11 = arith.constant 0 : index
    %c192 = arith.constant 192 : index
    %32 = vector.load %arg5[%c0_11, %c192] : memref<128x384xf32, #tpu.memory_space<vmem>>, vector<60x16xf32>
    tpu.vector_store %arg5[%c0_11, %c192], %31 {strides = array<i32>} : memref<128x384xf32, #tpu.memory_space<vmem>>, vector<60x16xf32>,
    %33 = vector.extract_strided_slice %7 {offsets = [5, 0], sizes = [59, 16], strides = [1, 1]} : vector<64x16xf32> to vector<59x16xf32>
    %c0_12 = arith.constant 0 : index
    %c208 = arith.constant 208 : index
    %34 = vector.load %arg5[%c0_12, %c208] : memref<128x384xf32, #tpu.memory_space<vmem>>, vector<59x16xf32>
    tpu.vector_store %arg5[%c0_12, %c208], %33 {strides = array<i32>} : memref<128x384xf32, #tpu.memory_space<vmem>>, vector<59x16xf32>,
    %35 = vector.extract_strided_slice %7 {offsets = [6, 0], sizes = [58, 16], strides = [1, 1]} : vector<64x16xf32> to vector<58x16xf32>
    %c0_13 = arith.constant 0 : index
    %c224 = arith.constant 224 : index
    %36 = vector.load %arg5[%c0_13, %c224] : memref<128x384xf32, #tpu.memory_space<vmem>>, vector<58x16xf32>
    tpu.vector_store %arg5[%c0_13, %c224], %35 {strides = array<i32>} : memref<128x384xf32, #tpu.memory_space<vmem>>, vector<58x16xf32>,
    %37 = vector.extract_strided_slice %7 {offsets = [7, 0], sizes = [57, 16], strides = [1, 1]} : vector<64x16xf32> to vector<57x16xf32>
    %c0_14 = arith.constant 0 : index
    %c240 = arith.constant 240 : index
    %38 = vector.load %arg5[%c0_14, %c240] : memref<128x384xf32, #tpu.memory_space<vmem>>, vector<57x16xf32>
    tpu.vector_store %arg5[%c0_14, %c240], %37 {strides = array<i32>} : memref<128x384xf32, #tpu.memory_space<vmem>>, vector<57x16xf32>,
    %39 = vector.extract_strided_slice %7 {offsets = [8, 0], sizes = [56, 16], strides = [1, 1]} : vector<64x16xf32> to vector<56x16xf32>
    %c0_15 = arith.constant 0 : index
    %c256 = arith.constant 256 : index
    %40 = vector.load %arg5[%c0_15, %c256] : memref<128x384xf32, #tpu.memory_space<vmem>>, vector<56x16xf32>
    tpu.vector_store %arg5[%c0_15, %c256], %39 {strides = array<i32>} : memref<128x384xf32, #tpu.memory_space<vmem>>, vector<56x16xf32>,
    %c1_16 = arith.constant 1 : index
    %c0_17 = arith.constant 0 : index
    %c0_18 = arith.constant 0 : index
    %c0_19 = arith.constant 0 : index
    %41 = vector.load %arg1[%c1_16, %c0_17, %c0_18, %c0_19] : memref<2x1x64x16xf32, #tpu.memory_space<vmem>>, vector<1x1x64x16xf32>
    %42 = vector.shape_cast %41 : vector<1x1x64x16xf32> to vector<1x64x16xf32>
    %43 = vector.shape_cast %42 : vector<1x64x16xf32> to vector<64x16xf32>
    %44 = vector.extract_strided_slice %43 {offsets = [0, 0], sizes = [56, 16], strides = [1, 1]} : vector<64x16xf32> to vector<56x16xf32>
    %c72 = arith.constant 72 : index
    %c0_20 = arith.constant 0 : index
    %45 = vector.load %arg5[%c72, %c0_20] : memref<128x384xf32, #tpu.memory_space<vmem>>, vector<56x16xf32>
    tpu.vector_store %arg5[%c72, %c0_20], %44 {strides = array<i32>} : memref<128x384xf32, #tpu.memory_space<vmem>>, vector<56x16xf32>,
    %46 = vector.extract_strided_slice %43 {offsets = [0, 0], sizes = [57, 16], strides = [1, 1]} : vector<64x16xf32> to vector<57x16xf32>
    %c71 = arith.constant 71 : index
    %c16_21 = arith.constant 16 : index
    %47 = vector.load %arg5[%c71, %c16_21] : memref<128x384xf32, #tpu.memory_space<vmem>>, vector<57x16xf32>
    tpu.vector_store %arg5[%c71, %c16_21], %46 {strides = array<i32>} : memref<128x384xf32, #tpu.memory_space<vmem>>, vector<57x16xf32>,
    %48 = vector.extract_strided_slice %43 {offsets = [0, 0], sizes = [58, 16], strides = [1, 1]} : vector<64x16xf32> to vector<58x16xf32>
    %c70 = arith.constant 70 : index
    %c32_22 = arith.constant 32 : index
    %49 = vector.load %arg5[%c70, %c32_22] : memref<128x384xf32, #tpu.memory_space<vmem>>, vector<58x16xf32>
    tpu.vector_store %arg5[%c70, %c32_22], %48 {strides = array<i32>} : memref<128x384xf32, #tpu.memory_space<vmem>>, vector<58x16xf32>,
    %50 = vector.extract_strided_slice %43 {offsets = [0, 0], sizes = [59, 16], strides = [1, 1]} : vector<64x16xf32> to vector<59x16xf32>
    %c69 = arith.constant 69 : index
    %c48_23 = arith.constant 48 : index
    %51 = vector.load %arg5[%c69, %c48_23] : memref<128x384xf32, #tpu.memory_space<vmem>>, vector<59x16xf32>
    tpu.vector_store %arg5[%c69, %c48_23], %50 {strides = array<i32>} : memref<128x384xf32, #tpu.memory_space<vmem>>, vector<59x16xf32>,
    %52 = vector.extract_strided_slice %43 {offsets = [0, 0], sizes = [60, 16], strides = [1, 1]} : vector<64x16xf32> to vector<60x16xf32>
    %c68 = arith.constant 68 : index
    %c64_24 = arith.constant 64 : index
    %53 = vector.load %arg5[%c68, %c64_24] : memref<128x384xf32, #tpu.memory_space<vmem>>, vector<60x16xf32>
    tpu.vector_store %arg5[%c68, %c64_24], %52 {strides = array<i32>} : memref<128x384xf32, #tpu.memory_space<vmem>>, vector<60x16xf32>,
    %54 = vector.extract_strided_slice %43 {offsets = [0, 0], sizes = [61, 16], strides = [1, 1]} : vector<64x16xf32> to vector<61x16xf32>
    %c67 = arith.constant 67 : index
    %c80_25 = arith.constant 80 : index
    %55 = vector.load %arg5[%c67, %c80_25] : memref<128x384xf32, #tpu.memory_space<vmem>>, vector<61x16xf32>
    tpu.vector_store %arg5[%c67, %c80_25], %54 {strides = array<i32>} : memref<128x384xf32, #tpu.memory_space<vmem>>, vector<61x16xf32>,
    %56 = vector.extract_strided_slice %43 {offsets = [0, 0], sizes = [62, 16], strides = [1, 1]} : vector<64x16xf32> to vector<62x16xf32>
    %c66 = arith.constant 66 : index
    %c96_26 = arith.constant 96 : index
    %57 = vector.load %arg5[%c66, %c96_26] : memref<128x384xf32, #tpu.memory_space<vmem>>, vector<62x16xf32>
    tpu.vector_store %arg5[%c66, %c96_26], %56 {strides = array<i32>} : memref<128x384xf32, #tpu.memory_space<vmem>>, vector<62x16xf32>,
    %58 = vector.extract_strided_slice %43 {offsets = [0, 0], sizes = [63, 16], strides = [1, 1]} : vector<64x16xf32> to vector<63x16xf32>
    %c65 = arith.constant 65 : index
    %c112_27 = arith.constant 112 : index
    %59 = vector.load %arg5[%c65, %c112_27] : memref<128x384xf32, #tpu.memory_space<vmem>>, vector<63x16xf32>
    tpu.vector_store %arg5[%c65, %c112_27], %58 {strides = array<i32>} : memref<128x384xf32, #tpu.memory_space<vmem>>, vector<63x16xf32>,
    %c64_28 = arith.constant 64 : index
    %c128_29 = arith.constant 128 : index
    %60 = vector.load %arg5[%c64_28, %c128_29] : memref<128x384xf32, #tpu.memory_space<vmem>>, vector<64x16xf32>
    tpu.vector_store %arg5[%c64_28, %c128_29], %43 {strides = array<i32>} : memref<128x384xf32, #tpu.memory_space<vmem>>, vector<64x16xf32>,
    %61 = vector.extract_strided_slice %43 {offsets = [1, 0], sizes = [63, 16], strides = [1, 1]} : vector<64x16xf32> to vector<63x16xf32>
    %c64_30 = arith.constant 64 : index
    %c144_31 = arith.constant 144 : index
    %62 = vector.load %arg5[%c64_30, %c144_31] : memref<128x384xf32, #tpu.memory_space<vmem>>, vector<63x16xf32>
    tpu.vector_store %arg5[%c64_30, %c144_31], %61 {strides = array<i32>} : memref<128x384xf32, #tpu.memory_space<vmem>>, vector<63x16xf32>,
    %63 = vector.extract_strided_slice %43 {offsets = [2, 0], sizes = [62, 16], strides = [1, 1]} : vector<64x16xf32> to vector<62x16xf32>
    %c64_32 = arith.constant 64 : index
    %c160_33 = arith.constant 160 : index
    %64 = vector.load %arg5[%c64_32, %c160_33] : memref<128x384xf32, #tpu.memory_space<vmem>>, vector<62x16xf32>
    tpu.vector_store %arg5[%c64_32, %c160_33], %63 {strides = array<i32>} : memref<128x384xf32, #tpu.memory_space<vmem>>, vector<62x16xf32>,
    %65 = vector.extract_strided_slice %43 {offsets = [3, 0], sizes = [61, 16], strides = [1, 1]} : vector<64x16xf32> to vector<61x16xf32>
    %c64_34 = arith.constant 64 : index
    %c176_35 = arith.constant 176 : index
    %66 = vector.load %arg5[%c64_34, %c176_35] : memref<128x384xf32, #tpu.memory_space<vmem>>, vector<61x16xf32>
    tpu.vector_store %arg5[%c64_34, %c176_35], %65 {strides = array<i32>} : memref<128x384xf32, #tpu.memory_space<vmem>>, vector<61x16xf32>,
    %67 = vector.extract_strided_slice %43 {offsets = [4, 0], sizes = [60, 16], strides = [1, 1]} : vector<64x16xf32> to vector<60x16xf32>
    %c64_36 = arith.constant 64 : index
    %c192_37 = arith.constant 192 : index
    %68 = vector.load %arg5[%c64_36, %c192_37] : memref<128x384xf32, #tpu.memory_space<vmem>>, vector<60x16xf32>
    tpu.vector_store %arg5[%c64_36, %c192_37], %67 {strides = array<i32>} : memref<128x384xf32, #tpu.memory_space<vmem>>, vector<60x16xf32>,
    %69 = vector.extract_strided_slice %43 {offsets = [5, 0], sizes = [59, 16], strides = [1, 1]} : vector<64x16xf32> to vector<59x16xf32>
    %c64_38 = arith.constant 64 : index
    %c208_39 = arith.constant 208 : index
    %70 = vector.load %arg5[%c64_38, %c208_39] : memref<128x384xf32, #tpu.memory_space<vmem>>, vector<59x16xf32>
    tpu.vector_store %arg5[%c64_38, %c208_39], %69 {strides = array<i32>} : memref<128x384xf32, #tpu.memory_space<vmem>>, vector<59x16xf32>,
    %71 = vector.extract_strided_slice %43 {offsets = [6, 0], sizes = [58, 16], strides = [1, 1]} : vector<64x16xf32> to vector<58x16xf32>
    %c64_40 = arith.constant 64 : index
    %c224_41 = arith.constant 224 : index
    %72 = vector.load %arg5[%c64_40, %c224_41] : memref<128x384xf32, #tpu.memory_space<vmem>>, vector<58x16xf32>
    tpu.vector_store %arg5[%c64_40, %c224_41], %71 {strides = array<i32>} : memref<128x384xf32, #tpu.memory_space<vmem>>, vector<58x16xf32>,
    %73 = vector.extract_strided_slice %43 {offsets = [7, 0], sizes = [57, 16], strides = [1, 1]} : vector<64x16xf32> to vector<57x16xf32>
    %c64_42 = arith.constant 64 : index
    %c240_43 = arith.constant 240 : index
    %74 = vector.load %arg5[%c64_42, %c240_43] : memref<128x384xf32, #tpu.memory_space<vmem>>, vector<57x16xf32>
    tpu.vector_store %arg5[%c64_42, %c240_43], %73 {strides = array<i32>} : memref<128x384xf32, #tpu.memory_space<vmem>>, vector<57x16xf32>,
    %75 = vector.extract_strided_slice %43 {offsets = [8, 0], sizes = [56, 16], strides = [1, 1]} : vector<64x16xf32> to vector<56x16xf32>
    %c64_44 = arith.constant 64 : index
    %c256_45 = arith.constant 256 : index
    %76 = vector.load %arg5[%c64_44, %c256_45] : memref<128x384xf32, #tpu.memory_space<vmem>>, vector<56x16xf32>
    tpu.vector_store %arg5[%c64_44, %c256_45], %75 {strides = array<i32>} : memref<128x384xf32, #tpu.memory_space<vmem>>, vector<56x16xf32>,
    %c0_46 = arith.constant 0 : index
    %c0_47 = arith.constant 0 : index
    %77 = vector.load %arg5[%c0_46, %c0_47] : memref<128x384xf32, #tpu.memory_space<vmem>>, vector<128x384xf32>
    %c0_48 = arith.constant 0 : index
    %c0_49 = arith.constant 0 : index
    %78 = vector.load %arg6[%c0_48, %c0_49] : memref<384x896xf32, #tpu.memory_space<vmem>>, vector<384x896xf32>
    %cst_50 = arith.constant dense<0.000000e+00> : vector<128x896xf32>
    %79 = tpu.matmul %77, %78, %cst_50 {dimension_numbers = #tpu.dot_dimension_numbers<[1], [0], [0], [1], [0, 0, 1, 1], [], []>} : vector<128x384xf32>, vector<384x896xf32>, vector<128x896xf32> -> vector<128x896xf32>
    %c0_51 = arith.constant 0 : index
    %c0_52 = arith.constant 0 : index
    %80 = vector.load %arg3[%c0_51, %c0_52] : memref<1x896xf32, #tpu.memory_space<vmem>>, vector<1x896xf32>
    %81 = vector.extract_strided_slice %79 {offsets = [0, 0], sizes = [64, 896], strides = [1, 1]} : vector<128x896xf32> to vector<64x896xf32>
    %82 = vector.extract_strided_slice %81 {offsets = [0, 0], sizes = [32, 896], strides = [1, 1]} : vector<64x896xf32> to vector<32x896xf32>
    %83 = vector.extract_strided_slice %81 {offsets = [32, 0], sizes = [32, 896], strides = [1, 1]} : vector<64x896xf32> to vector<32x896xf32>
    %84 = arith.maximumf %82, %83 : vector<32x896xf32>
    %85 = vector.extract_strided_slice %84 {offsets = [0, 0], sizes = [16, 896], strides = [1, 1]} : vector<32x896xf32> to vector<16x896xf32>
    %86 = vector.extract_strided_slice %84 {offsets = [16, 0], sizes = [16, 896], strides = [1, 1]} : vector<32x896xf32> to vector<16x896xf32>
    %87 = arith.maximumf %85, %86 : vector<16x896xf32>
    %88 = vector.extract_strided_slice %87 {offsets = [0, 0], sizes = [8, 896], strides = [1, 1]} : vector<16x896xf32> to vector<8x896xf32>
    %89 = vector.extract_strided_slice %87 {offsets = [8, 0], sizes = [8, 896], strides = [1, 1]} : vector<16x896xf32> to vector<8x896xf32>
    %90 = arith.maximumf %88, %89 : vector<8x896xf32>
    %cst_53 = arith.constant dense<0xFF800000> : vector<896xf32>
    %91 = vector.multi_reduction <maximumf>, %90, %cst_53 [0] : vector<8x896xf32> to vector<896xf32>
    %92 = vector.shape_cast %91 : vector<896xf32> to vector<1x896xf32>
    %93 = arith.addf %92, %80 : vector<1x896xf32>
    %cst_54 = arith.constant 0.000000e+00 : f32
    %94 = vector.broadcast %cst_54 : f32 to vector<1x896xf32>
    %95 = arith.maximumf %93, %94 : vector<1x896xf32>
    %c0_55 = arith.constant 0 : index
    %c0_56 = arith.constant 0 : index
    %c0_57 = arith.constant 0 : index
    %96 = vector.load %arg4[%c0_55, %c0_56, %c0_57] : memref<2x1x896xf32, #tpu.memory_space<vmem>>, vector<1x1x896xf32>
    %97 = vector.shape_cast %96 : vector<1x1x896xf32> to vector<1x896xf32>
    %98 = vector.shape_cast %95 : vector<1x896xf32> to vector<1x1x896xf32>
    tpu.vector_store %arg4[%c0_55, %c0_56, %c0_57], %98 {strides = array<i32>} : memref<2x1x896xf32, #tpu.memory_space<vmem>>, vector<1x1x896xf32>,
    %99 = vector.extract_strided_slice %79 {offsets = [64, 0], sizes = [64, 896], strides = [1, 1]} : vector<128x896xf32> to vector<64x896xf32>
    %100 = vector.extract_strided_slice %99 {offsets = [0, 0], sizes = [32, 896], strides = [1, 1]} : vector<64x896xf32> to vector<32x896xf32>
    %101 = vector.extract_strided_slice %99 {offsets = [32, 0], sizes = [32, 896], strides = [1, 1]} : vector<64x896xf32> to vector<32x896xf32>
    %102 = arith.maximumf %100, %101 : vector<32x896xf32>
    %103 = vector.extract_strided_slice %102 {offsets = [0, 0], sizes = [16, 896], strides = [1, 1]} : vector<32x896xf32> to vector<16x896xf32>
    %104 = vector.extract_strided_slice %102 {offsets = [16, 0], sizes = [16, 896], strides = [1, 1]} : vector<32x896xf32> to vector<16x896xf32>
    %105 = arith.maximumf %103, %104 : vector<16x896xf32>
    %106 = vector.extract_strided_slice %105 {offsets = [0, 0], sizes = [8, 896], strides = [1, 1]} : vector<16x896xf32> to vector<8x896xf32>
    %107 = vector.extract_strided_slice %105 {offsets = [8, 0], sizes = [8, 896], strides = [1, 1]} : vector<16x896xf32> to vector<8x896xf32>
    %108 = arith.maximumf %106, %107 : vector<8x896xf32>
    %cst_58 = arith.constant dense<0xFF800000> : vector<896xf32>
    %109 = vector.multi_reduction <maximumf>, %108, %cst_58 [0] : vector<8x896xf32> to vector<896xf32>
    %110 = vector.shape_cast %109 : vector<896xf32> to vector<1x896xf32>
    %111 = arith.addf %110, %80 : vector<1x896xf32>
    %cst_59 = arith.constant 0.000000e+00 : f32
    %112 = vector.broadcast %cst_59 : f32 to vector<1x896xf32>
    %113 = arith.maximumf %111, %112 : vector<1x896xf32>
    %c1_60 = arith.constant 1 : index
    %c0_61 = arith.constant 0 : index
    %c0_62 = arith.constant 0 : index
    %114 = vector.load %arg4[%c1_60, %c0_61, %c0_62] : memref<2x1x896xf32, #tpu.memory_space<vmem>>, vector<1x1x896xf32>
    %115 = vector.shape_cast %114 : vector<1x1x896xf32> to vector<1x896xf32>
    %116 = vector.shape_cast %113 : vector<1x896xf32> to vector<1x1x896xf32>
    tpu.vector_store %arg4[%c1_60, %c0_61, %c0_62], %116 {strides = array<i32>} : memref<2x1x896xf32, #tpu.memory_space<vmem>>, vector<1x1x896xf32>,
    return
  }
  func.func @transform_0(%arg0: i32) -> (i32, i32, i32, i32) {
    %c0_i32 = arith.constant 0 : i32
    %c0_i32_0 = arith.constant 0 : i32
    %c0_i32_1 = arith.constant 0 : i32
    %c0_i32_2 = arith.constant 0 : i32
    return %arg0, %c0_i32, %c0_i32_0, %c0_i32_1 : i32, i32, i32, i32
  }
  func.func @transform_1(%arg0: i32) -> (i32, i32) {
    %c0_i32 = arith.constant 0 : i32
    %c0_i32_0 = arith.constant 0 : i32
    %c0_i32_1 = arith.constant 0 : i32
    return %c0_i32, %c0_i32_0 : i32, i32
  }
  func.func @transform_2(%arg0: i32) -> (i32, i32) {
    %c0_i32 = arith.constant 0 : i32
    %c0_i32_0 = arith.constant 0 : i32
    %c0_i32_1 = arith.constant 0 : i32
    return %c0_i32, %c0_i32_0 : i32, i32
  }
  func.func @transform_3(%arg0: i32) -> (i32, i32, i32) {
    %c0_i32 = arith.constant 0 : i32
    %c0_i32_0 = arith.constant 0 : i32
    %c0_i32_1 = arith.constant 0 : i32
    return %arg0, %c0_i32, %c0_i32_0 : i32, i32, i32
  }
}

</mosaic_0001>

<bundles_post_ra>
// kernel: cnn_forward.1
= control target key start
LH: loop header
LB: loop body
LE: loop exit
PB: predicated region body
PF: predicated region fallthrough
CT: control target
= control target key end

     0   :  { %8 = vsyncpa [#allocation5], 0  ;;  %s5045_s12 = smov [#allocation4]   ;;  %s8007_s0 = inlined_call_operand.vmem [shape: f32[2,1,64,16], index: 0, kind: input, shape index: {}]   ;;  %s8008_s1 = inlined_call_operand.hbm [shape: f32[384,128], index: 1, kind: input, shape index: {}]   ;;  %s8009_s2 = inlined_call_operand.vmem [shape: f32[1,896], index: 2, kind: input, shape index: {}]   ;;  %s8010_s3 = inlined_call_operand.vmem [shape: f32[2,1,896], index: 3, kind: output, shape index: {}]  }
   0x1   :  { %s16_s13 = sshll.u32 %s5045_s12, 4  ;;  %s5021_s16 = scalar_lea.hbm %s8008_s1, 6144  ;;  %s17_s13 = int_to_ptr.vmem [resolvable:$true] %s16_s13 }
   0x2   :  { %p5022_p0 = scmp.ne.s32.totalorder %s8008_s1, %s5021_s16  ;;  %p5025_p1 = scmp.lt.u32.totalorder %s5021_s16, %s8008_s1 }
   0x4   :  { %p5027_p2 = pnand %p5025_p1, %p5022_p0 }
   0x6   :  { %5030 = shalt.err (!%p5027_p2)
}
   0x7   :  { %s5031_s21 = scalar_lea.vmem %s17_s13, 6144  ;;  %p5036_p4 = scmp.lt.s32.totalorder %s17_s13, %s17_s13 }
   0x8   :  { %p5032_p3 = scmp.ne.s32.totalorder %s17_s13, %s5031_s21  ;;  %p5037_p5 = scmp.lt.s32.totalorder %s5031_s21, %s5031_s21 }
   0xa   :  { %p5038_p6 = por %p5037_p5, %p5036_p4 }
   0xc   :  { %p5039_p7 = pnand %p5038_p6, %p5032_p3 }
   0xe   :  { %5042 = shalt.err (!%p5039_p7)
}
   0xf   :  { %s5046_s22 = smov 128   ;;  %s5047_s23 = smov 8  }
  0x10   :  { %22 = dma.hbm_to_vmem [thread:$0]  %s8008_s1, 6144, %s17_s13, [#allocation5], %s5046_s22, %s5046_s22, %s5047_s23  }
  0x11   :  { %5043 = dma.done.wait [#allocation5], 6144  }
  0x12   :  { %5044 = vsyncadd [#allocation5], 4294961152  ;;  %v5048_v0 = vmov 0.0   ;;  %vm1390_vm0 = vcmask 130048   ;;  %v5092_v1 = vld [vmem:[%s8007_s0] sm:$0xff]  ;;  %v5097_v2 = vld [vmem:[%s8007_s0 + $0x8] sm:$0xff] }
  0x13   :  { %128 = vst [vmem:[#allocation3 + $0x8] sm:$0x1] %v5048_v0  ;;  %369 = vst [vmem:[#allocation3 + $0x10] sm:$0x3] %v5048_v0  ;;  %v5102_v3 = vld [vmem:[%s8007_s0 + $0x10] sm:$0xff]  ;;  %v1457_v4 = vrot.slane %v5092_v1, 2 }
  0x14   :  { %562 = vst [vmem:[#allocation3 + $0x18] sm:$0x7] %v5048_v0  ;;  %755 = vst [vmem:[#allocation3 + $0x20] sm:$0xf] %v5048_v0  ;;  %v1407_v5 = vrot.slane %v5092_v1, 1  ;;  %vm1406_vm1 = vcmask 1046528  }
  0x15   :  { %948 = vst [vmem:[#allocation3 + $0x28] sm:$0x1f] %v5048_v0  ;;  %1141 = vst [vmem:[#allocation3 + $0x30] sm:$0x3f] %v5048_v0  ;;  %v1408_v6 = vrot.slane %v5097_v2, 1  ;;  %v5110_v7 = vld [vmem:[%s8007_s0 + $0x18] sm:$0xff] }
  0x16   :  { %1334 = vst [vmem:[#allocation2] sm:$0xff] %v5048_v0  ;;  %1335 = vst [vmem:[#allocation2 + $0x8] sm:$0xff] %v5048_v0  ;;  %v5115_v8 = vld [vmem:[%s8007_s0 + $0x20] sm:$0xff]  ;;  %vm8059_vm2 = vcmask 1045504   ;;  %vm949_vm3 = vcmask 1044480   ;;  %v5136_v9 = vld [vmem:[%s8007_s0 + $0x28] sm:$0xff] }
  0x17   :  { %1336 = vst [vmem:[#allocation2 + $0x10] sm:$0xff] %v5048_v0  ;;  %1337 = vst [vmem:[#allocation2 + $0x18] sm:$0xff] %v5048_v0  ;;  %v5141_v10 = vld [vmem:[%s8007_s0 + $0x30] sm:$0xff]  ;;  %s5049_s12 = smov 32   ;;  %s5050_s13 = smov 16   ;;  %v1507_v11 = vrot.slane %v5092_v1, 3  ;;  %v1409_v17 = vsel %vm1406_vm1, %v1407_v5, %v1408_v6 }
  0x18   :  { %1338 = vst [vmem:[#allocation2 + $0x20] sm:$0xff] %v5048_v0  ;;  %1339 = vst [vmem:[#allocation2 + $0x28] sm:$0xff] %v5048_v0  ;;  %1472 = vrot.lane.b32.xlu1 %v1457_v4, %s5049_s12  ;;  %1422 = vrot.lane.b32.xlu0 %v1407_v5, %s5050_s13  ;;  %v1458_v12 = vrot.slane %v5097_v2, 2  ;;  %v1508_v13 = vrot.slane %v5097_v2, 3  ;;  %v5165_v14 = vld [vmem:[%s8007_s0 + $0x38] sm:$0xff]  ;;  %v5167_v15 = vld [vmem:[#allocation4] sm:$0xff] }
  0x19   :  { %1340 = vst [vmem:[#allocation2 + $0x30] sm:$0xff] %v5048_v0  ;;  %1341 = vst [vmem:[#allocation2 + $0x38] sm:$0xff] %v5048_v0  ;;  %v5169_v16 = vld [vmem:[#allocation4 + $0x8] sm:$0xff]  ;;  %v1410_v18 = vrot.slane %v5102_v3, 1  ;;  %vm756_vm4 = vcmask 1043456   ;;  %vm563_vm5 = vcmask 1042432  }
  0x1a   :  { %1342 = vst [vmem:[#allocation2 + $0x40] sm:$0xff] %v5048_v0  ;;  %1343 = vst [vmem:[#allocation2 + $0x48] sm:$0xff] %v5048_v0  ;;  %v5189_v19 = vld [vmem:[#allocation4 + $0x10] sm:$0xff]  ;;  %v5191_v20 = vld [vmem:[#allocation4 + $0x18] sm:$0xff]  ;;  %v8012_v22 = vrot.slane %v5092_v1, 4  ;;  %v1558_v23 = vrot.slane %v5097_v2, 4  ;;  %v1459_v32 = vsel %vm8059_vm2, %v1457_v4, %v1458_v12  ;;  %v1509_v33 = vsel %vm949_vm3, %v1507_v11, %v1508_v13 }
  0x1b   :  { %1344 = vst [vmem:[#allocation2 + $0x50] sm:$0xff] %v5048_v0  ;;  %1345 = vst [vmem:[#allocation2 + $0x58] sm:$0xff] %v5048_v0  ;;  %v5193_v21 = vld [vmem:[#allocation4 + $0x20] sm:$0xff]  ;;  %vm370_vm6 = vcmask 1041408   ;;  %v5203_v24 = vld [vmem:[#allocation4 + $0x28] sm:$0xff]  ;;  %v8011_v27 = vrot.slane %v5092_v1, 5  ;;  %v5247_v39 = vsel %vm1406_vm1, %v1408_v6, %v1410_v18 }
  0x1c   :  { %1346 = vst [vmem:[#allocation2 + $0x60] sm:$0xff] %v5048_v0  ;;  %1347 = vst [vmem:[#allocation2 + $0x68] sm:$0xff] %v5048_v0  ;;  %v5206_v25 = vld [vmem:[#allocation4 + $0x30] sm:$0xff]  ;;  %v5208_v26 = vld [vmem:[#allocation4 + $0x38] sm:$0xff]  ;;  %v1608_v28 = vrot.slane %v5097_v2, 5  ;;  %vm177_vm7 = vcmask 1040384   ;;  %1424 = vrot.lane.b32.xlu0 %v1409_v17, %s5050_s13  ;;  %v5272_v46 = vsel %vm756_vm4, %v8012_v22, %v1558_v23 }
  0x1d   :  { %1348 = vst [vmem:[#allocation2 + $0x70] sm:$0xff] %v5048_v0  ;;  %1349 = vst [vmem:[#allocation2 + $0x78] sm:$0xff] %v5048_v0  ;;  %v5215_v29 = vld [vmem:[#allocation4 + $0x40] sm:$0xff]  ;;  %v5217_v30 = vld [vmem:[#allocation4 + $0x48] sm:$0xff]  ;;  %s5051_s16 = smov 48   ;;  %v1460_v34 = vrot.slane %v5102_v3, 2 }
  0x1e   :  { %1350 = vst [vmem:[#allocation2 + $0x80] sm:$0xff] %v5048_v0  ;;  %1351 = vst [vmem:[#allocation2 + $0x88] sm:$0xff] %v5048_v0  ;;  %v5219_v31 = vld [vmem:[#allocation4 + $0x50] sm:$0xff]  ;;  %1522 = vrot.lane.b32.xlu1 %v1507_v11, %s5051_s16  ;;  %v1510_v35 = vrot.slane %v5102_v3, 3  ;;  %v5235_v36 = vld [vmem:[#allocation4 + $0x58] sm:$0xff]  ;;  %v8013_v40 = vrot.slane %v5092_v1, 6  ;;  %v5299_v53 = vsel %vm563_vm5, %v8011_v27, %v1608_v28 }
  0x1f   :  { %1352 = vst [vmem:[#allocation2 + $0x90] sm:$0xff] %v5048_v0  ;;  %1353 = vst [vmem:[#allocation2 + $0x98] sm:$0xff] %v5048_v0  ;;  %v5238_v37 = vld [vmem:[#allocation4 + $0x60] sm:$0xff]  ;;  %v5240_v38 = vld [vmem:[#allocation4 + $0x68] sm:$0xff]  ;;  %v1658_v41 = vrot.slane %v5097_v2, 6  ;;  %v8014_v42 = vrot.slane %v5092_v1, 7  ;;  %v5320_v60 = vsel %vm8059_vm2, %v1458_v12, %v1460_v34 }
  0x20   :  { %1354 = vst [vmem:[#allocation2 + $0xa0] sm:$0xff] %v5048_v0  ;;  %1355 = vst [vmem:[#allocation2 + $0xa8] sm:$0xff] %v5048_v0  ;;  %v5258_v43 = vld [vmem:[%s8007_s0 + $0x40] sm:$0xff]  ;;  %v5263_v44 = vld [vmem:[%s8007_s0 + $0x48] sm:$0xff]  ;;  %v1708_v47 = vrot.slane %v5097_v2, 7  ;;  %v1560_v48 = vrot.slane %v5102_v3, 4  ;;  %1524 = vrot.lane.b32.xlu0 %v1509_v33, %s5051_s16  ;;  %v5339_v6 = vsel %vm949_vm3, %v1508_v13, %v1510_v35 }
  0x21   :  { %1356 = vst [vmem:[#allocation2 + $0xb0] sm:$0xff] %v5048_v0  ;;  %1357 = vst [vmem:[#allocation2 + $0xb8] sm:$0xff] %v5048_v0  ;;  %v5265_v45 = vld [vmem:[#allocation4 + $0x70] sm:$0xff]  ;;  %v1610_v49 = vrot.slane %v5102_v3, 5  ;;  %v5287_v50 = vld [vmem:[#allocation4 + $0x78] sm:$0xff]  ;;  %v1412_v54 = vrot.slane %v5110_v7, 1  ;;  %v5361_v27 = vsel %vm370_vm6, %v8013_v40, %v1658_v41 }
  0x22   :  { %1358 = vst [vmem:[#allocation2 + $0xc0] sm:$0xff] %v5048_v0  ;;  %1359 = vst [vmem:[#allocation2 + $0xc8] sm:$0xff] %v5048_v0  ;;  %v5290_v51 = vld [vmem:[#allocation4 + $0x80] sm:$0xff]  ;;  %v5292_v52 = vld [vmem:[#allocation4 + $0x88] sm:$0xff]  ;;  %v1660_v55 = vrot.slane %v5102_v3, 6  ;;  %v1462_v56 = vrot.slane %v5110_v7, 2  ;;  %1474 = vrot.lane.b32.xlu1 %v1459_v32, %s5049_s12  ;;  %v5368_v22 = vsel %vm177_vm7, %v8014_v42, %v1708_v47  ;;  %v5389_v12 = vsel %vm756_vm4, %v1558_v23, %v1560_v48 }
  0x23   :  { %1360 = vst [vmem:[#allocation2 + $0xd0] sm:$0xff] %v5048_v0  ;;  %1361 = vst [vmem:[#allocation2 + $0xd8] sm:$0xff] %v5048_v0  ;;  %v5307_v57 = vld [vmem:[#allocation4 + $0x90] sm:$0xff]  ;;  %v5309_v58 = vld [vmem:[#allocation4 + $0x98] sm:$0xff]  ;;  %v8015_v61 = vrot.slane %v5102_v3, 7  ;;  %v1512_v62 = vrot.slane %v5110_v7, 3  ;;  %v5396_v17 = vsel %vm563_vm5, %v1608_v28, %v1610_v49  ;;  %v5401_v11 = vsel %vm1406_vm1, %v1410_v18, %v1412_v54 }
  0x24   :  { %1362 = vst [vmem:[#allocation2 + $0xe0] sm:$0xff] %v5048_v0  ;;  %1363 = vst [vmem:[#allocation2 + $0xe8] sm:$0xff] %v5048_v0  ;;  %v5311_v59 = vld [vmem:[#allocation4 + $0xa0] sm:$0xff]  ;;  %v5330_v4 = vld [vmem:[#allocation4 + $0xb0] sm:$0xff]  ;;  %v5406_v63 = vsel %vm370_vm6, %v1658_v41, %v1660_v55  ;;  %s5052_s23 = smov 64   ;;  %v5417_v18 = vsel %vm8059_vm2, %v1460_v34, %v1462_v56  ;;  %v8175_v34 = vrot.slane %v5110_v7, 4 }
  0x25   :  { %1364 = vst [vmem:[#allocation2 + $0xf0] sm:$0xff] %v5048_v0  ;;  %1365 = vst [vmem:[#allocation2 + $0xf8] sm:$0xff] %v5048_v0  ;;  %v5332_v5 = vld [vmem:[#allocation4 + $0xb8] sm:$0xff]  ;;  %v5350_v32 = vld [vmem:[%s8007_s0 + $0x50] sm:$0xff]  ;;  %1574 = vrot.lane.b32.xlu0 %v5272_v46, %s5052_s23  ;;  %v5424_v23 = vsel %vm177_vm7, %v1708_v47, %v8015_v61  ;;  %v5429_v28 = vsel %vm949_vm3, %v1510_v35, %v1512_v62  ;;  %v8177_v35 = vrot.slane %v5110_v7, 5  ;;  %s5053_s24 = smov 80  }
  0x26   :  { %1366 = vst [vmem:[#allocation2 + $0x100] sm:$0xff] %v5048_v0  ;;  %1367 = vst [vmem:[#allocation2 + $0x108] sm:$0xff] %v5048_v0  ;;  %v5352_v33 = vld [vmem:[#allocation4 + $0xc0] sm:$0xff]  ;;  %v5354_v13 = vld [vmem:[#allocation4 + $0xc8] sm:$0xff]  ;;  %1426 = vrot.lane.b32.xlu1 %v5247_v39, %s5050_s13  ;;  %v8174_v39 = vrot.slane %v5115_v8, 1  ;;  %v5441_v46 = vsel %vm756_vm4, %v1560_v48, %v8175_v34  ;;  %v8179_v48 = vrot.slane %v5110_v7, 6 }
  0x27   :  { %1368 = vst [vmem:[#allocation2 + $0x110] sm:$0xff] %v5048_v0  ;;  %1369 = vst [vmem:[#allocation2 + $0x118] sm:$0xff] %v5048_v0  ;;  %v5380_v40 = vld [vmem:[#allocation4 + $0xd0] sm:$0xff]  ;;  %v5382_v42 = vld [vmem:[#allocation4 + $0xd8] sm:$0xff]  ;;  %v5453_v61 = vsel %vm563_vm5, %v1610_v49, %v8177_v35  ;;  %v8026_v35 = vrot.slane %v5136_v9, 2  ;;  %v8185_v49 = vrot.slane %v5115_v8, 6 }
  0x28   :  { %1370 = vst [vmem:[#allocation2 + $0x120] sm:$0xff] %v5048_v0  ;;  %1371 = vst [vmem:[#allocation2 + $0x128] sm:$0xff] %v5048_v0  ;;  %v5434_v41 = vsel %vm1406_vm1, %v1412_v54, %v8174_v39  ;;  %v8178_v54 = vrot.slane %v5115_v8, 3  ;;  %v5463_v34 = vsel %vm370_vm6, %v1660_v55, %v8179_v48  ;;  %v8182_v55 = vrot.slane %v5092_v1, 4  ;;  %s5054_s25 = smov 96   ;;  %s5055_s1 = smov 112  }
  0x29   :  { %1372 = vst [vmem:[#allocation2 + $0x130] sm:$0xff] %v5048_v0  ;;  %1373 = vst [vmem:[#allocation2 + $0x138] sm:$0xff] %v5048_v0  ;;  %v8031_v48 = vrot.slane %v5136_v9, 3  ;;  %vm8058_vm8 = vcmask 261255   ;;  %vm8057_vm9 = vcmask 392454   ;;  %vm8054_vm10 = vcmask 523653  }
  0x2a   :  { %1374 = vst [vmem:[#allocation2 + $0x140] sm:$0xff] %v5048_v0  ;;  %1375 = vst [vmem:[#allocation2 + $0x148] sm:$0xff] %v5048_v0  ;;  %v5458_v39 = vsel %vm949_vm3, %v1512_v62, %v8178_v54  ;;  %v1468_v54 = vrot.slane %v5141_v10, 2  ;;  %1624 = vrot.lane.b32.xlu1 %v5299_v53, %s5053_s24  ;;  %1572 = vrot.lane.b32.xlu0 %v8182_v55, %s5052_s23  ;;  %v1666_v62 = vrot.slane %v5136_v9, 6  ;;  %v5510_v53 = vld [vmem:[#allocation4 + $0xf8] sm:$0xff]  ;;  %v8189_v55 = vrot.slane %v5141_v10, 4 }
  0x2b   :  { %1376 = vst [vmem:[#allocation2 + $0x150] sm:$0xff] %v5048_v0  ;;  %1377 = vst [vmem:[#allocation2 + $0x158] sm:$0xff] %v5048_v0  ;;  %vm1448_vm11 = vcmask 261248   ;;  %vm1498_vm12 = vcmask 392448   ;;  %vm1548_vm13 = vcmask 523648   ;;  %vm1598_vm14 = vcmask 654848  }
  0x2c   :  { %1378 = vst [vmem:[#allocation2 + $0x160] sm:$0xff] %v5048_v0  ;;  %1379 = vst [vmem:[#allocation2 + $0x168] sm:$0xff] %v5048_v0  ;;  %vm1648_vm15 = vcmask 786048  }
  0x2d   :  { %1380 = vst [vmem:[#allocation2 + $0x170] sm:$0xff] %v5048_v0  ;;  %1391 = vst.msk [vmem:[#allocation2 + $0x18] sm:$0xff] %vm1390_vm0, %v5092_v1  ;;  %v5327_v0 = vld [vmem:[#allocation4 + $0xa8] sm:$0xff] }
  0x2e   :  { %1756 = vst.msk [vmem:[#allocation2 + $0x8] sm:$0xff] %vm1390_vm0, %v5092_v1  ;;  %1392 = vst.msk [vmem:[#allocation2 + $0x30] sm:$0xff] %vm1390_vm0, %v5097_v2  ;;  %1476 = vrot.lane.b32.xlu0 %v5320_v60, %s5049_s12  ;;  %v8200_v60 = vrot.slane %v5165_v14, 1 }
  0x2f   :  { %1393 = vst.msk [vmem:[#allocation2 + $0x48] sm:$0xff] %vm1390_vm0, %v5102_v3  ;;  %1757 = vst.msk [vmem:[#allocation2 + $0x20] sm:$0xff] %vm1390_vm0, %v5097_v2 }
  0x30   :  { %1758 = vst.msk [vmem:[#allocation2 + $0x38] sm:$0xff] %vm1390_vm0, %v5102_v3  ;;  %1848 = vst.msk [vmem:[#allocation2 + $0x10] sm:$0xff] %vm1390_vm0, %v5097_v2  ;;  %v8176_v2 = vrot.slane %v5115_v8, 2 }
  0x31   :  { %1849 = vst.msk [vmem:[#allocation2 + $0x28] sm:$0xff] %vm1390_vm0, %v5102_v3  ;;  %1394 = vst.msk [vmem:[#allocation2 + $0x60] sm:$0xff] %vm1390_vm0, %v5110_v7 }
  0x32   :  { %1395 = vst.msk [vmem:[#allocation2 + $0x78] sm:$0xff] %vm1390_vm0, %v5115_v8  ;;  %1759 = vst.msk [vmem:[#allocation2 + $0x50] sm:$0xff] %vm1390_vm0, %v5110_v7  ;;  %v5446_v47 = vsel %vm8059_vm2, %v1462_v56, %v8176_v2  ;;  %v8032_v56 = vrot.slane %v5141_v10, 3  ;;  %1674 = vrot.lane.b32.xlu0 %v5361_v27, %s5054_s25 }
  0x33   :  { %1760 = vst.msk [vmem:[#allocation2 + $0x68] sm:$0xff] %vm1390_vm0, %v5115_v8  ;;  %1850 = vst.msk [vmem:[#allocation2 + $0x40] sm:$0xff] %vm1390_vm0, %v5110_v7 }
  0x34   :  { %1851 = vst.msk [vmem:[#allocation2 + $0x58] sm:$0xff] %vm1390_vm0, %v5115_v8  ;;  %1396 = vst.msk [vmem:[#allocation2 + $0x90] sm:$0xff] %vm1390_vm0, %v5136_v9  ;;  %v5500_v2 = vsel %vm949_vm3, %v8031_v48, %v8032_v56  ;;  %v8192_v48 = vrot.slane %v5115_v8, 7 }
  0x35   :  { %1397 = vst.msk [vmem:[#allocation2 + $0xa8] sm:$0xff] %vm1390_vm0, %v5141_v10  ;;  %1761 = vst.msk [vmem:[#allocation2 + $0x80] sm:$0xff] %vm1390_vm0, %v5136_v9 }
  0x36   :  { %1762 = vst.msk [vmem:[#allocation2 + $0x98] sm:$0xff] %vm1390_vm0, %v5141_v10  ;;  %1852 = vst.msk [vmem:[#allocation2 + $0x70] sm:$0xff] %vm1390_vm0, %v5136_v9 }
  0x37   :  { %1853 = vst.msk [vmem:[#allocation2 + $0x88] sm:$0xff] %vm1390_vm0, %v5141_v10  ;;  %80 = vst [vmem:[#allocation3] sm:$0xff] %v5167_v15 }
  0x38   :  { %81 = vst [vmem:[#allocation3 + $0x38] sm:$0xff] %v5169_v16  ;;  %1763 = vst.msk [vmem:[#allocation2 + $0xb0] sm:$0xff] %vm1390_vm0, %v5165_v14 }
  0x39   :  { %1854 = vst.msk [vmem:[#allocation2 + $0xa0] sm:$0xff] %vm1390_vm0, %v5165_v14  ;;  %82 = vst [vmem:[#allocation3 + $0x70] sm:$0xff] %v5189_v19 }
  0x3a   :  { %83 = vst [vmem:[#allocation3 + $0xa8] sm:$0xff] %v5191_v20  ;;  %84 = vst [vmem:[#allocation3 + $0xe0] sm:$0xff] %v5193_v21 }
  0x3b   :  { %85 = vst [vmem:[#allocation3 + $0x118] sm:$0xff] %v5203_v24  ;;  %86 = vst [vmem:[#allocation3 + $0x150] sm:$0xff] %v5206_v25 }
  0x3c   :  { %87 = vst [vmem:[#allocation3 + $0x188] sm:$0xff] %v5208_v26  ;;  %88 = vst [vmem:[#allocation3 + $0x1c0] sm:$0xff] %v5215_v29 }
  0x3d   :  { %89 = vst [vmem:[#allocation3 + $0x1f8] sm:$0xff] %v5217_v30  ;;  %90 = vst [vmem:[#allocation3 + $0x230] sm:$0xff] %v5219_v31 }
  0x3e   :  { %91 = vst [vmem:[#allocation3 + $0x268] sm:$0xff] %v5235_v36  ;;  %92 = vst [vmem:[#allocation3 + $0x2a0] sm:$0xff] %v5238_v37 }
  0x3f   :  { %93 = vst [vmem:[#allocation3 + $0x2d8] sm:$0xff] %v5240_v38  ;;  %8162 = vst [vmem:[#allocation7_spill] sm:$0xff] %v5258_v43 }
  0x40   :  { %8163 = vst [vmem:[#allocation8_spill] sm:$0xff] %v5263_v44  ;;  %1864 = vst.msk [vmem:[#allocation2 + $0xd8] sm:$0xff] %vm1390_vm0, %v5258_v43 }
  0x41   :  { %1865 = vst.msk [vmem:[#allocation2 + $0xf0] sm:$0xff] %vm1390_vm0, %v5263_v44  ;;  %2208 = vst.msk [vmem:[#allocation2 + $0xc8] sm:$0xff] %vm1390_vm0, %v5258_v43  ;;  %v5490_v43 = vsel %vm8059_vm2, %v8026_v35, %v1468_v54  ;;  %v178_v35 = vrot.slane %v5167_v15, 7 }
  0x42   :  { %2209 = vst.msk [vmem:[#allocation2 + $0xe0] sm:$0xff] %vm1390_vm0, %v5263_v44  ;;  %2293 = vst.msk [vmem:[#allocation2 + $0xd0] sm:$0xff] %vm1390_vm0, %v5263_v44  ;;  %v5469_v44 = vld [vmem:[#allocation4 + $0xe8] sm:$0xff] }
  0x43   :  { %94 = vst [vmem:[#allocation3 + $0x310] sm:$0xff] %v5265_v45  ;;  %95 = vst [vmem:[#allocation3 + $0x348] sm:$0xff] %v5287_v50 }
  0x44   :  { %96 = vst [vmem:[#allocation3 + $0x380] sm:$0xff] %v5290_v51  ;;  %97 = vst [vmem:[#allocation3 + $0x3b8] sm:$0xff] %v5292_v52 }
  0x45   :  { %8164 = vst [vmem:[#allocation9_spill] sm:$0xff] %v5309_v58  ;;  %8165 = vst [vmem:[#allocation10_spill] sm:$0xff] %v5311_v59 }
  0x46   :  { %98 = vst [vmem:[#allocation3 + $0x3f0] sm:$0xff] %v5307_v57  ;;  %99 = vst [vmem:[#allocation3 + $0x428] sm:$0xff] %v5309_v58 }
  0x47   :  { %8166 = vst [vmem:[#allocation11_spill] sm:$0xff] %v5327_v0  ;;  %100 = vst [vmem:[#allocation3 + $0x460] sm:$0xff] %v5311_v59  ;;  %v8207_v59 = vrot.slane %v5165_v14, 3 }
  0x48   :  { %8167 = vst [vmem:[#allocation12_spill] sm:$0xff] %v5330_v4  ;;  %8168 = vst [vmem:[#allocation13_spill] sm:$0xff] %v5332_v5 }
  0x49   :  { %101 = vst [vmem:[#allocation3 + $0x498] sm:$0xff] %v5327_v0  ;;  %102 = vst [vmem:[#allocation3 + $0x4d0] sm:$0xff] %v5330_v4  ;;  %v569_v4 = vrot.slane %v5191_v20, 5 }
  0x4a   :  { %103 = vst [vmem:[#allocation3 + $0x508] sm:$0xff] %v5332_v5  ;;  %8169 = vst [vmem:[#allocation14_spill] sm:$0xff] %v5350_v32 }
  0x4b   :  { %8170 = vst [vmem:[#allocation15_spill] sm:$0xff] %v5352_v33  ;;  %8171 = vst [vmem:[#allocation16_spill] sm:$0xff] %v5354_v13 }
  0x4c   :  { %1866 = vst.msk [vmem:[#allocation2 + $0x108] sm:$0xff] %vm1390_vm0, %v5350_v32  ;;  %2210 = vst.msk [vmem:[#allocation2 + $0xf8] sm:$0xff] %vm1390_vm0, %v5350_v32 }
  0x4d   :  { %2294 = vst.msk [vmem:[#allocation2 + $0xe8] sm:$0xff] %vm1390_vm0, %v5350_v32  ;;  %104 = vst [vmem:[#allocation3 + $0x540] sm:$0xff] %v5352_v33  ;;  %v5467_v32 = vld [vmem:[#allocation4 + $0xe0] sm:$0xff] }
  0x4e   :  { %105 = vst [vmem:[#allocation3 + $0x578] sm:$0xff] %v5354_v13  ;;  %8172 = vst [vmem:[#allocation17_spill] sm:$0xff] %v5380_v40 }
  0x4f   :  { %8173 = vst [vmem:[#allocation18_spill] sm:$0xff] %v5382_v42  ;;  %106 = vst [vmem:[#allocation3 + $0x5b0] sm:$0xff] %v5380_v40  ;;  %v8190_v40 = vrot.slane %v5136_v9, 4 }
  0x50   :  { %107 = vst [vmem:[#allocation3 + $0x5e8] sm:$0xff] %v5382_v42  ;;  %8180 = vst [vmem:[#allocation19_spill] sm:$0xff] %v5467_v32  ;;  %v5508_v42 = vld [vmem:[#allocation4 + $0xf0] sm:$0xff] }
  0x51   :  { %8181 = vst [vmem:[#allocation20_spill] sm:$0xff] %v5469_v44  ;;  %108 = vst [vmem:[#allocation3 + $0x620] sm:$0xff] %v5467_v32  ;;  %v5505_v32 = vsel %vm370_vm6, %v8185_v49, %v1666_v62  ;;  %v179_v49 = vrot.slane %v5169_v16, 7 }
  0x52   :  { %109 = vst [vmem:[#allocation3 + $0x658] sm:$0xff] %v5469_v44  ;;  %8183 = vst [vmem:[#allocation21_spill] sm:$0xff] %v5490_v43  ;;  %v1716_v44 = vrot.slane %v5136_v9, 7  ;;  %v5517_v43 = vsel %vm756_vm4, %v8190_v40, %v8189_v55  ;;  %v8195_v40 = vrot.slane %v5141_v10, 5 }
  0x53   :  { %8184 = vst [vmem:[#allocation22_spill] sm:$0xff] %v5500_v2  ;;  %8186 = vst [vmem:[#allocation23_spill] sm:$0xff] %v5505_v32  ;;  %v8194_v32 = vrot.slane %v5092_v1, 5  ;;  %v8201_v2 = vrot.slane %v5141_v10, 1  ;;  %v180_v13 = vsel %vm177_vm7, %v178_v35, %v179_v49 }
  0x54   :  { %8187 = vst [vmem:[#allocation24_spill] sm:$0xff] %v5508_v42  ;;  %8188 = vst [vmem:[#allocation25_spill] sm:$0xff] %v5510_v53  ;;  %v5522_v56 = vsel %vm177_vm7, %v8192_v48, %v1716_v44  ;;  %v8196_v48 = vrot.slane %v5136_v9, 5 }
  0x55   :  { %8191 = vst [vmem:[#allocation26_spill] sm:$0xff] %v5517_v43  ;;  %8193 = vst [vmem:[#allocation27_spill] sm:$0xff] %v5522_v56  ;;  %1622 = vrot.lane.b32.xlu1 %v8194_v32, %s5053_s24  ;;  %v8198_v56 = vrot.slane %v5115_v8, 4  ;;  %v8199_v32 = vrot.slane %v5110_v7, 4 }
  0x56   :  { %110 = vst [vmem:[#allocation3 + $0x690] sm:$0xff] %v5508_v42  ;;  %111 = vst [vmem:[#allocation3 + $0x6c8] sm:$0xff] %v5510_v53  ;;  %v5538_v55 = vsel %vm563_vm5, %v8196_v48, %v8195_v40  ;;  %v564_v42 = vrot.slane %v5167_v15, 5  ;;  %v565_v53 = vrot.slane %v5169_v16, 5  ;;  %v5555_v40 = vsel %vm1406_vm1, %v8201_v2, %v8200_v60 }
  0x57   :  { %8197 = vst [vmem:[#allocation28_spill] sm:$0xff] %v5538_v55  ;;  %v5548_v43 = vsel %vm756_vm4, %v8199_v32, %v8198_v56  ;;  %8202 = vst [vmem:[#allocation29_spill] sm:$0xff] %v5555_v40  ;;  %v371_v48 = vrot.slane %v5167_v15, 6  ;;  %v372_v55 = vrot.slane %v5169_v16, 6  ;;  %v8047_v56 = vrot.slane %v5141_v10, 6 }
  0x58   :  { %321 = vst [vmem:[#allocation3 + $0x8] sm:$0xfe] %v178_v35  ;;  %v566_v33 = vsel %vm563_vm5, %v564_v42, %v565_v53  ;;  %707 = vst [vmem:[#allocation3 + $0x18] sm:$0xf8] %v564_v42  ;;  %v8048_v32 = vrot.slane %v5165_v14, 2  ;;  %v181_v2 = vrot.slane %v5189_v19, 7  ;;  %v4490_v42 = vpack.c.bf16 %v5169_v16, %v5167_v15 }
  0x59   :  { %v5564_v5 = vsel %vm370_vm6, %v371_v48, %v372_v55  ;;  %514 = vst [vmem:[#allocation3 + $0x10] sm:$0xfc] %v371_v48  ;;  %v183_v60 = vrot.slane %v5191_v20, 7  ;;  %v567_v40 = vrot.slane %v5189_v19, 5  ;;  %1526 = vrot.lane.b32.xlu1 %v5339_v6, %s5051_s16  ;;  %v5578_v35 = vsel %vm370_vm6, %v1666_v62, %v8047_v56 }
  0x5a   :  { %8203 = vst [vmem:[#allocation30_spill] sm:$0xff] %v5578_v35  ;;  %v5583_v48 = vsel %vm8059_vm2, %v1468_v54, %v8048_v32  ;;  %v182_v6 = vsel %vm177_vm7, %v179_v49, %v181_v2  ;;  %v374_v15 = vrot.slane %v5189_v19, 6  ;;  %v376_v56 = vrot.slane %v5191_v20, 6 }
  0x5b   :  { %8204 = vst [vmem:[#allocation31_spill] sm:$0xff] %v5583_v48  ;;  %v184_v0 = vsel %vm177_vm7, %v181_v2, %v183_v60  ;;  %v568_v27 = vsel %vm563_vm5, %v565_v53, %v567_v40  ;;  %v570_v16 = vsel %vm563_vm5, %v567_v40, %v569_v4  ;;  %v8053_v54 = vrot.slane %v5141_v10, 7 }
  0x5c   :  { %v4492_v32 = vpack.c.bf16 %v184_v0, %v182_v6  ;;  %v5596_v48 = vsel %vm370_vm6, %v372_v55, %v374_v15  ;;  %v185_v2 = vrot.slane %v5193_v21, 7  ;;  %v8205_v53 = vrot.slane %v5092_v1, 6 }
  0x5d   :  { %1724 = vrot.lane.b32.xlu1 %v5368_v22, %s5055_s1  ;;  %v377_v62 = vsel %vm370_vm6, %v374_v15, %v376_v56  ;;  %v5609_v0 = vsel %vm177_vm7, %v1716_v44, %v8053_v54  ;;  %v187_v55 = vrot.slane %v5203_v24, 7  ;;  %v571_v6 = vrot.slane %v5193_v21, 5  ;;  %v5616_v22 = vld [vmem:[%s8007_s0 + $0x58] sm:$0xff] }
  0x5e   :  { %1672 = vrot.lane.b32.xlu0 %v8205_v53, %s5054_s25  ;;  %8206 = vst [vmem:[#allocation32_spill] sm:$0xff] %v5609_v0  ;;  %v4588_v53 = vpack.c.bf16 %v570_v16, %v568_v27  ;;  %v8208_v15 = vrot.slane %v5141_v10, 3  ;;  %v186_v44 = vsel %vm177_vm7, %v183_v60, %v185_v2  ;;  %1867 = vst.msk [vmem:[#allocation2 + $0x120] sm:$0xff] %vm1390_vm0, %v5616_v22  ;;  %v8210_v0 = vrot.slane %v5092_v1, 7 }
  0x5f   :  { %v2349_v40 = vld [vmem:[#allocation3 + $0x8] sm:$0xff]  ;;  %v2351_v35 = vld [vmem:[#allocation3 + $0x18] sm:$0xff]  ;;  %2211 = vst.msk [vmem:[#allocation2 + $0x110] sm:$0xff] %vm1390_vm0, %v5616_v22  ;;  %2295 = vst.msk [vmem:[#allocation2 + $0x100] sm:$0xff] %vm1390_vm0, %v5616_v22  ;;  %v188_v16 = vsel %vm177_vm7, %v185_v2, %v187_v55  ;;  %v189_v1 = vrot.slane %v5206_v25, 7  ;;  %v8211_v2 = vrot.slane %v5141_v10, 5 }
  0x60   :  { %v4488_v49 = vpack.c.bf16 %v180_v13, %v2349_v40  ;;  %v5623_v58 = vsel %vm949_vm3, %v8208_v15, %v8207_v59  ;;  %v4584_v13 = vpack.c.bf16 %v566_v33, %v2351_v35  ;;  %v2350_v27 = vld [vmem:[#allocation3 + $0x10] sm:$0xff]  ;;  %v572_v40 = vsel %vm563_vm5, %v569_v4, %v571_v6 }
  0x61   :  { %8209 = vst [vmem:[#allocation33_spill] sm:$0xff] %v5623_v58  ;;  %v573_v59 = vrot.slane %v5203_v24, 5  ;;  %v4586_v60 = vpack.c.bf16 %v5564_v5, %v2350_v27  ;;  %v4590_v15 = vpack.c.bf16 %v377_v62, %v5596_v48  ;;  %v4496_v54 = vpack.c.bf16 %v188_v16, %v186_v44  ;;  %1722 = vrot.lane.b32.xlu1 %v8210_v0, %s5055_s1 }
  0x62   :  { %4489 = vmatprep.subr.bf16.mxu0 %v4488_v49  ;;  %v378_v58 = vrot.slane %v5193_v21, 6  ;;  %1576 = vrot.lane.b32.xlu0 %v5389_v12, %s5052_s23  ;;  %v380_v4 = vrot.slane %v5203_v24, 6  ;;  %v1620_v35 = vrot.slane %v5165_v14, 5  ;;  %v1570_v5 = vrot.slane %v5165_v14, 4 }
  0x63   :  { %v574_v33 = vsel %vm563_vm5, %v571_v6, %v573_v59  ;;  %4585 = vmatprep.subr.bf16.mxu1 %v4584_v13  ;;  %4491 = vmatpush1.bf16.msra.mxu0 %v4490_v42  ;;  %v4498_v48 = vpack.c.bf16 %v5203_v24, %v5193_v21  ;;  %v191_v49 = vrot.slane %v5208_v26, 7  ;;  %v8212_v21 = vrot.slane %v5141_v10, 4 }
  0x64   :  { %v379_v62 = vsel %vm370_vm6, %v376_v56, %v378_v58  ;;  %4587 = vmatpush1.bf16.msra.mxu1 %v4586_v60  ;;  %4493 = vmatprep.subr.bf16.mxu0 %v4492_v32  ;;  %v381_v12 = vsel %vm370_vm6, %v378_v58, %v380_v4  ;;  %v5658_v0 = vsel %vm563_vm5, %v8211_v2, %v1620_v35  ;;  %v575_v56 = vrot.slane %v5206_v25, 5 }
  0x65   :  { %v5665_v24 = vsel %vm756_vm4, %v8212_v21, %v1570_v5  ;;  %4589 = vmatprep.subr.bf16.mxu1 %v4588_v53  ;;  %v4592_v32 = vpack.c.bf16 %v574_v33, %v572_v40  ;;  %v190_v58 = vsel %vm177_vm7, %v187_v55, %v189_v1  ;;  %v192_v42 = vsel %vm177_vm7, %v189_v1, %v191_v49 }
  0x66   :  { %v577_v6 = vrot.slane %v5208_v26, 5  ;;  %1626 = vrot.lane.b32.xlu1 %v5396_v17, %s5053_s24  ;;  %1428 = vrot.lane.b32.xlu0 %v5401_v11, %s5050_s13  ;;  %v4594_v44 = vpack.c.bf16 %v381_v12, %v379_v62  ;;  %v4500_v13 = vpack.c.bf16 %v192_v42, %v190_v58  ;;  %v576_v27 = vsel %vm563_vm5, %v573_v59, %v575_v56 }
  0x67   :  { %v382_v16 = vrot.slane %v5206_v25, 6  ;;  %v8213_v53 = vpack.c.bf16 %v5191_v20, %v5189_v19  ;;  %v384_v40 = vrot.slane %v5208_v26, 6  ;;  %v1670_v60 = vrot.slane %v5165_v14, 6 }
  0x68   :  { %v578_v55 = vsel %vm563_vm5, %v575_v56, %v577_v6  ;;  %v193_v17 = vrot.slane %v5215_v29, 7  ;;  %4591 = vmatpush1.bf16.msra.mxu1 %v4590_v15  ;;  %v195_v59 = vrot.slane %v5217_v30, 7  ;;  %v579_v62 = vrot.slane %v5215_v29, 5 }
  0x69   :  { %4495 = vmatpush1.bf16.msra.mxu0 %v8213_v53  ;;  %v4596_v11 = vpack.c.bf16 %v578_v55, %v576_v27  ;;  %v383_v33 = vsel %vm370_vm6, %v380_v4, %v382_v16  ;;  %4593 = vmatprep.subr.bf16.mxu1 %v4592_v32  ;;  %v385_v19 = vsel %vm370_vm6, %v382_v16, %v384_v40  ;;  %v8214_v20 = vrot.slane %v5141_v10, 6 }
  0x6a   :  { %4497 = vmatprep.subr.bf16.mxu0 %v4496_v54  ;;  %v194_v15 = vsel %vm177_vm7, %v191_v49, %v193_v17  ;;  %v581_v54 = vrot.slane %v5217_v30, 5  ;;  %1676 = vrot.lane.b32.xlu1 %v5406_v63, %s5054_s25  ;;  %v4502_v4 = vpack.c.bf16 %v5208_v26, %v5206_v25  ;;  %v196_v12 = vsel %vm177_vm7, %v193_v17, %v195_v59 }
  0x6b   :  { %v5693_v1 = vsel %vm370_vm6, %v8214_v20, %v1670_v60  ;;  %1478 = vrot.lane.b32.xlu0 %v5417_v18, %s5049_s12  ;;  %v580_v2 = vsel %vm563_vm5, %v577_v6, %v579_v62  ;;  %v386_v21 = vrot.slane %v5215_v29, 6  ;;  %v4598_v56 = vpack.c.bf16 %v385_v19, %v383_v33 }
  0x6c   :  { %v4504_v49 = vpack.c.bf16 %v196_v12, %v194_v15  ;;  %v582_v32 = vsel %vm563_vm5, %v579_v62, %v581_v54  ;;  %v388_v58 = vrot.slane %v5217_v30, 6  ;;  %4595 = vmatpush1.bf16.msra.mxu1 %v4594_v44  ;;  %v1720_v25 = vrot.slane %v5165_v14, 7 }
  0x6d   :  { %4499 = vmatpush1.bf16.msra.mxu0 %v4498_v48  ;;  %v4600_v63 = vpack.c.bf16 %v582_v32, %v580_v2  ;;  %v387_v18 = vsel %vm370_vm6, %v384_v40, %v386_v21  ;;  %v197_v26 = vrot.slane %v5219_v31, 7  ;;  %4597 = vmatprep.subr.bf16.mxu1 %v4596_v11  ;;  %v199_v48 = vrot.slane %v5235_v36, 7 }
  0x6e   :  { %4501 = vmatprep.subr.bf16.mxu0 %v4500_v13  ;;  %v389_v42 = vsel %vm370_vm6, %v386_v21, %v388_v58  ;;  %v583_v6 = vrot.slane %v5219_v31, 5  ;;  %v585_v27 = vrot.slane %v5235_v36, 5  ;;  %1726 = vrot.lane.b32.xlu1 %v5424_v23, %s5055_s1  ;;  %v4506_v44 = vpack.c.bf16 %v5217_v30, %v5215_v29  ;;  %v5736_v29 = vld [vmem:[%s8007_s0 + $0x60] sm:$0xff] }
  0x6f   :  { %1528 = vrot.lane.b32.xlu0 %v5429_v28, %s5051_s16  ;;  %v8215_v13 = vrot.slane %v5141_v10, 7  ;;  %v198_v53 = vsel %vm177_vm7, %v195_v59, %v197_v26  ;;  %v390_v55 = vrot.slane %v5219_v31, 6  ;;  %v4602_v40 = vpack.c.bf16 %v389_v42, %v387_v18  ;;  %1868 = vst.msk [vmem:[#allocation2 + $0x138] sm:$0xff] %vm1390_vm0, %v5736_v29  ;;  %2212 = vst.msk [vmem:[#allocation2 + $0x128] sm:$0xff] %vm1390_vm0, %v5736_v29 }
  0x70   :  { %v200_v23 = vsel %vm177_vm7, %v197_v26, %v199_v48  ;;  %v584_v28 = vsel %vm563_vm5, %v581_v54, %v583_v6  ;;  %v586_v17 = vsel %vm563_vm5, %v583_v6, %v585_v27  ;;  %4599 = vmatpush1.bf16.msra.mxu1 %v4598_v56  ;;  %v392_v59 = vrot.slane %v5235_v36, 6  ;;  %2296 = vst.msk [vmem:[#allocation2 + $0x118] sm:$0xff] %vm1390_vm0, %v5736_v29 }
  0x71   :  { %v5726_v16 = vsel %vm177_vm7, %v8215_v13, %v1720_v25  ;;  %4503 = vmatpush1.bf16.msra.mxu0 %v4502_v4  ;;  %v4508_v30 = vpack.c.bf16 %v200_v23, %v198_v53  ;;  %v4604_v11 = vpack.c.bf16 %v586_v17, %v584_v28  ;;  %v391_v33 = vsel %vm370_vm6, %v388_v58, %v390_v55 }
  0x72   :  { %4505 = vmatprep.subr.bf16.mxu0 %v4504_v49  ;;  %4601 = vmatprep.subr.bf16.mxu1 %v4600_v63  ;;  %v201_v62 = vrot.slane %v5238_v37, 7  ;;  %v203_v19 = vrot.slane %v5240_v38, 7  ;;  %v587_v20 = vrot.slane %v5238_v37, 5  ;;  %v589_v15 = vrot.slane %v5240_v38, 5 }
  0x73   :  { %1430 = vrot.lane.b32.xlu1 %v5434_v41, %s5050_s13  ;;  %1578 = vrot.lane.b32.xlu0 %v5441_v46, %s5052_s23  ;;  %v4510_v54 = vpack.c.bf16 %v5235_v36, %v5219_v31  ;;  %v393_v4 = vsel %vm370_vm6, %v390_v55, %v392_v59  ;;  %v394_v12 = vrot.slane %v5238_v37, 6  ;;  %v396_v2 = vrot.slane %v5240_v38, 6 }
  0x74   :  { %v4606_v21 = vpack.c.bf16 %v393_v4, %v391_v33  ;;  %v202_v56 = vsel %vm177_vm7, %v199_v48, %v201_v62  ;;  %v204_v49 = vsel %vm177_vm7, %v201_v62, %v203_v19  ;;  %v588_v41 = vsel %vm563_vm5, %v585_v27, %v587_v20  ;;  %4603 = vmatpush1.bf16.msra.mxu1 %v4602_v40 }
  0x75   :  { %4507 = vmatpush1.bf16.msra.mxu0 %v4506_v44  ;;  %v1614_v32 = vrot.slane %v5115_v8, 5  ;;  %v4512_v46 = vpack.c.bf16 %v204_v49, %v202_v56  ;;  %v590_v31 = vsel %vm563_vm5, %v587_v20, %v589_v15  ;;  %v395_v36 = vsel %vm370_vm6, %v392_v59, %v394_v12  ;;  %4605 = vmatprep.subr.bf16.mxu1 %v4604_v11 }
  0x76   :  { %4509 = vmatprep.subr.bf16.mxu0 %v4508_v30  ;;  %v1416_v58 = vrot.slane %v5136_v9, 1  ;;  %v4608_v63 = vpack.c.bf16 %v590_v31, %v588_v41  ;;  %v397_v18 = vsel %vm370_vm6, %v394_v12, %v396_v2  ;;  %v205_v26 = vrot.slane %v5265_v45, 7 }
  0x77   :  { %1480 = vrot.lane.b32.xlu1 %v5446_v47, %s5049_s12  ;;  %1628 = vrot.lane.b32.xlu0 %v5453_v61, %s5053_s24  ;;  %v8216_v42 = vrot.slane %v5110_v7, 7  ;;  %v8217_v48 = vrot.slane %v5102_v3, 7  ;;  %v207_v27 = vrot.slane %v5287_v50, 7  ;;  %v591_v44 = vrot.slane %v5265_v45, 5 }
  0x78   :  { %v593_v13 = vrot.slane %v5287_v50, 5  ;;  %v4514_v53 = vpack.c.bf16 %v5240_v38, %v5238_v37  ;;  %v4610_v47 = vpack.c.bf16 %v397_v18, %v395_v36  ;;  %v206_v55 = vsel %vm177_vm7, %v203_v19, %v205_v26  ;;  %4607 = vmatpush1.bf16.msra.mxu1 %v4606_v21 }
  0x79   :  { %v1713_v6 = vsel %vm177_vm7, %v8217_v48, %v8216_v42  ;;  %4511 = vmatpush1.bf16.msra.mxu0 %v4510_v54  ;;  %v398_v61 = vrot.slane %v5265_v45, 6  ;;  %v208_v3 = vsel %vm177_vm7, %v205_v26, %v207_v27  ;;  %v592_v40 = vsel %vm563_vm5, %v589_v15, %v591_v44  ;;  %4609 = vmatprep.subr.bf16.mxu1 %v4608_v63  ;;  %v8220_v63 = vld [vmem:[#allocation9_spill] sm:$0xff] }
  0x7a   :  { %4513 = vmatprep.subr.bf16.mxu0 %v4512_v46  ;;  %v594_v23 = vsel %vm563_vm5, %v591_v44, %v593_v13  ;;  %v400_v28 = vrot.slane %v5287_v50, 6  ;;  %v4516_v17 = vpack.c.bf16 %v208_v3, %v206_v55  ;;  %v209_v38 = vrot.slane %v5290_v51, 7 }
  0x7b   :  { %v4612_v30 = vpack.c.bf16 %v594_v23, %v592_v40  ;;  %v399_v37 = vsel %vm370_vm6, %v396_v2, %v398_v61  ;;  %1530 = vrot.lane.b32.xlu1 %v5458_v39, %s5051_s16  ;;  %1678 = vrot.lane.b32.xlu0 %v5463_v34, %s5054_s25  ;;  %v211_v33 = vrot.slane %v5292_v52, 7  ;;  %v595_v59 = vrot.slane %v5290_v51, 5  ;;  %v5805_v34 = vld [vmem:[%s8007_s0 + $0x68] sm:$0xff] }
  0x7c   :  { %v401_v11 = vsel %vm370_vm6, %v398_v61, %v400_v28  ;;  %v597_v62 = vrot.slane %v5292_v52, 5  ;;  %v4518_v19 = vpack.c.bf16 %v5287_v50, %v5265_v45  ;;  %v210_v15 = vsel %vm177_vm7, %v207_v27, %v209_v38  ;;  %4611 = vmatpush1.bf16.msra.mxu1 %v4610_v47  ;;  %1869 = vst.msk [vmem:[#allocation2 + $0x150] sm:$0xff] %vm1390_vm0, %v5805_v34 }
  0x7d   :  { %4515 = vmatpush1.bf16.msra.mxu0 %v4514_v53  ;;  %v4614_v20 = vpack.c.bf16 %v401_v11, %v399_v37  ;;  %v402_v39 = vrot.slane %v5290_v51, 6  ;;  %v212_v54 = vsel %vm177_vm7, %v209_v38, %v211_v33  ;;  %v596_v4 = vsel %vm563_vm5, %v593_v13, %v595_v59  ;;  %2213 = vst.msk [vmem:[#allocation2 + $0x140] sm:$0xff] %vm1390_vm0, %v5805_v34  ;;  %v8225_v11 = vld [vmem:[#allocation10_spill] sm:$0xff] }
  0x7e   :  { %4517 = vmatprep.subr.bf16.mxu0 %v4516_v17  ;;  %v598_v12 = vsel %vm563_vm5, %v595_v59, %v597_v62  ;;  %v404_v45 = vrot.slane %v5292_v52, 6  ;;  %2297 = vst.msk [vmem:[#allocation2 + $0x130] sm:$0xff] %vm1390_vm0, %v5805_v34  ;;  %4613 = vmatprep.subr.bf16.mxu1 %v4612_v30  ;;  %v4520_v50 = vpack.c.bf16 %v212_v54, %v210_v15  ;;  %v8218_v56 = vrot.slane %v5110_v7, 5  ;;  %v8226_v59 = vld [vmem:[#allocation11_spill] sm:$0xff] }
  0x7f   :  { %v4616_v2 = vpack.c.bf16 %v598_v12, %v596_v4  ;;  %v403_v21 = vsel %vm370_vm6, %v400_v28, %v402_v39  ;;  %1580 = vrot.lane.b32.xlu1 %v5548_v43, %s5052_s23  ;;  %1728 = vrot.lane.b32.xlu0 %v1713_v6, %s5055_s1  ;;  %v8219_v41 = vrot.slane %v5115_v8, 1  ;;  %v213_v36 = vrot.slane %v5307_v57, 7 }
  0x80   :  { %v1615_v49 = vsel %vm563_vm5, %v8218_v56, %v1614_v32  ;;  %v405_v31 = vsel %vm370_vm6, %v402_v39, %v404_v45  ;;  %v4522_v43 = vpack.c.bf16 %v5292_v52, %v5290_v51  ;;  %v215_v18 = vrot.slane %v8220_v63, 7  ;;  %4615 = vmatpush1.bf16.msra.mxu1 %v4614_v20 }
  0x81   :  { %v1417_v46 = vsel %vm1406_vm1, %v8219_v41, %v1416_v58  ;;  %4519 = vmatpush1.bf16.msra.mxu0 %v4518_v19  ;;  %v599_v26 = vrot.slane %v5307_v57, 5  ;;  %v601_v42 = vrot.slane %v8220_v63, 5  ;;  %v4618_v48 = vpack.c.bf16 %v405_v31, %v403_v21  ;;  %4617 = vmatprep.subr.bf16.mxu1 %v4616_v2 }
  0x82   :  { %4521 = vmatprep.subr.bf16.mxu0 %v4520_v50  ;;  %v214_v6 = vsel %vm177_vm7, %v211_v33, %v213_v36  ;;  %v406_v27 = vrot.slane %v5307_v57, 6  ;;  %v216_v44 = vsel %vm177_vm7, %v213_v36, %v215_v18  ;;  %v408_v52 = vrot.slane %v8220_v63, 6 }
  0x83   :  { %v600_v13 = vsel %vm563_vm5, %v597_v62, %v599_v26  ;;  %v602_v51 = vsel %vm563_vm5, %v599_v26, %v601_v42  ;;  %1630 = vrot.lane.b32.xlu1 %v1615_v49, %s5053_s24  ;;  %1432 = vrot.lane.b32.xlu0 %v1417_v46, %s5050_s13  ;;  %v4524_v53 = vpack.c.bf16 %v216_v44, %v214_v6  ;;  %v8221_v61 = vrot.slane %v5115_v8, 6  ;;  %v8232_v26 = vld [vmem:[#allocation13_spill] sm:$0xff] }
  0x84   :  { %v4620_v47 = vpack.c.bf16 %v602_v51, %v600_v13  ;;  %v407_v55 = vsel %vm370_vm6, %v404_v45, %v406_v27  ;;  %v8222_v3 = vrot.slane %v5110_v7, 6  ;;  %v8223_v23 = vrot.slane %v5136_v9, 2  ;;  %4619 = vmatpush1.bf16.msra.mxu1 %v4618_v48 }
  0x85   :  { %v8224_v28 = vrot.slane %v5115_v8, 2  ;;  %4523 = vmatpush1.bf16.msra.mxu0 %v4522_v43  ;;  %v4526_v30 = vpack.c.bf16 %v8220_v63, %v5307_v57  ;;  %v409_v37 = vsel %vm370_vm6, %v406_v27, %v408_v52  ;;  %v217_v33 = vrot.slane %v8225_v11, 7  ;;  %v8231_v63 = vld [vmem:[#allocation12_spill] sm:$0xff] }
  0x86   :  { %v1665_v40 = vsel %vm370_vm6, %v8222_v3, %v8221_v61  ;;  %4525 = vmatprep.subr.bf16.mxu0 %v4524_v53  ;;  %v4622_v38 = vpack.c.bf16 %v409_v37, %v407_v55  ;;  %v219_v62 = vrot.slane %v8226_v59, 7  ;;  %v603_v19 = vrot.slane %v8225_v11, 5  ;;  %4621 = vmatprep.subr.bf16.mxu1 %v4620_v47  ;;  %v5910_v61 = vld [vmem:[%s8007_s0 + $0x70] sm:$0xff]  ;;  %v8236_v37 = vld [vmem:[#allocation15_spill] sm:$0xff] }
  0x87   :  { %v1467_v17 = vsel %vm8059_vm2, %v8224_v28, %v8223_v23  ;;  %v8227_v20 = vrot.slane %v5115_v8, 7  ;;  %v8228_v15 = vrot.slane %v5110_v7, 7  ;;  %v8229_v54 = vrot.slane %v5136_v9, 3  ;;  %1680 = vrot.lane.b32.xlu1 %v1665_v40, %s5054_s25  ;;  %1870 = vst.msk [vmem:[#allocation2 + $0x168] sm:$0xff] %vm1390_vm0, %v5910_v61  ;;  %2214 = vst.msk [vmem:[#allocation2 + $0x158] sm:$0xff] %vm1390_vm0, %v5910_v61 }
  0x88   :  { %v8230_v57 = vrot.slane %v5115_v8, 3  ;;  %v605_v12 = vrot.slane %v8226_v59, 5  ;;  %v410_v45 = vrot.slane %v8225_v11, 6  ;;  %1482 = vrot.lane.b32.xlu0 %v1467_v17, %s5049_s12  ;;  %v218_v50 = vsel %vm177_vm7, %v215_v18, %v217_v33  ;;  %4623 = vmatpush1.bf16.msra.mxu1 %v4622_v38  ;;  %2298 = vst.msk [vmem:[#allocation2 + $0x148] sm:$0xff] %vm1390_vm0, %v5910_v61 }
  0x89   :  { %v1715_v39 = vsel %vm177_vm7, %v8228_v15, %v8227_v20  ;;  %v220_v7 = vsel %vm177_vm7, %v217_v33, %v219_v62  ;;  %v604_v2 = vsel %vm563_vm5, %v601_v42, %v603_v19  ;;  %v412_v21 = vrot.slane %v8226_v59, 6  ;;  %4527 = vmatpush1.bf16.msra.mxu0 %v4526_v30  ;;  %v8237_v33 = vld [vmem:[#allocation16_spill] sm:$0xff] }
  0x8a   :  { %v1517_v4 = vsel %vm949_vm3, %v8230_v57, %v8229_v54  ;;  %v4528_v56 = vpack.c.bf16 %v220_v7, %v218_v50  ;;  %v606_v49 = vsel %vm563_vm5, %v603_v19, %v605_v12  ;;  %v4530_v41 = vpack.c.bf16 %v8226_v59, %v8225_v11  ;;  %v8239_v7 = vld [vmem:[#allocation21_spill] sm:$0xff] }
  0x8b   :  { %v411_v46 = vsel %vm370_vm6, %v408_v52, %v410_v45  ;;  %v4624_v31 = vpack.c.bf16 %v606_v49, %v604_v2  ;;  %v413_v36 = vsel %vm370_vm6, %v410_v45, %v412_v21  ;;  %v221_v18 = vrot.slane %v8231_v63, 7  ;;  %1730 = vrot.lane.b32.xlu1 %v1715_v39, %s5055_s1 }
  0x8c   :  { %4529 = vmatprep.subr.bf16.mxu0 %v4528_v56  ;;  %v4626_v43 = vpack.c.bf16 %v413_v36, %v411_v46  ;;  %v223_v42 = vrot.slane %v8232_v26, 7  ;;  %v607_v48 = vrot.slane %v8231_v63, 5  ;;  %1532 = vrot.lane.b32.xlu0 %v1517_v4, %s5051_s16  ;;  %v8233_v6 = vrot.slane %v5141_v10, 1  ;;  %v8240_v56 = vld [vmem:[#allocation17_spill] sm:$0xff] }
  0x8d   :  { %v8234_v44 = vrot.slane %v5136_v9, 4  ;;  %v8235_v13 = vrot.slane %v5115_v8, 4  ;;  %v609_v52 = vrot.slane %v8232_v26, 5  ;;  %v414_v53 = vrot.slane %v8231_v63, 6  ;;  %4625 = vmatprep.subr.bf16.mxu1 %v4624_v31  ;;  %4531 = vmatpush1.bf16.msra.mxu0 %v4530_v41  ;;  %v8241_v41 = vld [vmem:[#allocation18_spill] sm:$0xff] }
  0x8e   :  { %v1419_v27 = vsel %vm1406_vm1, %v1416_v58, %v8233_v6  ;;  %v222_v47 = vsel %vm177_vm7, %v219_v62, %v221_v18  ;;  %v224_v10 = vsel %vm177_vm7, %v221_v18, %v223_v42  ;;  %v608_v55 = vsel %vm563_vm5, %v605_v12, %v607_v48  ;;  %4627 = vmatpush1.bf16.msra.mxu1 %v4626_v43 }
  0x8f   :  { %v1567_v51 = vsel %vm756_vm4, %v8235_v13, %v8234_v44  ;;  %v416_v58 = vrot.slane %v8232_v26, 6  ;;  %v4532_v3 = vpack.c.bf16 %v224_v10, %v222_v47  ;;  %v610_v40 = vsel %vm563_vm5, %v607_v48, %v609_v52  ;;  %1434 = vrot.lane.b32.xlu1 %v1419_v27, %s5050_s13  ;;  %v8243_v48 = vld [vmem:[#allocation23_spill] sm:$0xff] }
  0x90   :  { %v4534_v23 = vpack.c.bf16 %v8232_v26, %v8231_v63  ;;  %v415_v28 = vsel %vm370_vm6, %v412_v21, %v414_v53  ;;  %v4628_v17 = vpack.c.bf16 %v610_v40, %v608_v55  ;;  %v225_v38 = vrot.slane %v8236_v37, 7  ;;  %1582 = vrot.lane.b32.xlu0 %v1567_v51, %s5052_s23  ;;  %v8244_v47 = vld [vmem:[#allocation19_spill] sm:$0xff]  ;;  %v8245_v55 = vld [vmem:[#allocation20_spill] sm:$0xff] }
  0x91   :  { %v417_v30 = vsel %vm370_vm6, %v414_v53, %v416_v58  ;;  %v227_v59 = vrot.slane %v8237_v33, 7  ;;  %v611_v62 = vrot.slane %v8236_v37, 5  ;;  %v613_v19 = vrot.slane %v8237_v33, 5  ;;  %4533 = vmatprep.subr.bf16.mxu0 %v4532_v3  ;;  %v5970_v3 = vld [vmem:[%s8007_s0 + $0x78] sm:$0xff] }
  0x92   :  { %v4630_v11 = vpack.c.bf16 %v417_v30, %v415_v28  ;;  %v8238_v20 = vrot.slane %v5136_v9, 5  ;;  %4629 = vmatprep.subr.bf16.mxu1 %v4628_v17  ;;  %v226_v39 = vsel %vm177_vm7, %v223_v42, %v225_v38  ;;  %v4538_v54 = vpack.c.bf16 %v8237_v33, %v8236_v37  ;;  %4535 = vmatpush1.bf16.msra.mxu0 %v4534_v23  ;;  %v8242_v42 = vld [vmem:[#allocation22_spill] sm:$0xff]  ;;  %v8247_v30 = vld [vmem:[#allocation27_spill] sm:$0xff] }
  0x93   :  { %v418_v57 = vrot.slane %v8236_v37, 6  ;;  %v228_v4 = vsel %vm177_vm7, %v225_v38, %v227_v59  ;;  %v612_v12 = vsel %vm563_vm5, %v609_v52, %v611_v62  ;;  %v614_v9 = vsel %vm563_vm5, %v611_v62, %v613_v19  ;;  %1484 = vrot.lane.b32.xlu1 %v8239_v7, %s5049_s12  ;;  %2215 = vst.msk [vmem:[#allocation2 + $0x170] sm:$0xff] %vm1390_vm0, %v5970_v3  ;;  %v8246_v17 = vld [vmem:[#allocation26_spill] sm:$0xff] }
  0x94   :  { %v1617_v15 = vsel %vm563_vm5, %v1614_v32, %v8238_v20  ;;  %4631 = vmatpush1.bf16.msra.mxu1 %v4630_v11  ;;  %v420_v8 = vrot.slane %v8237_v33, 6  ;;  %v4536_v32 = vpack.c.bf16 %v228_v4, %v226_v39  ;;  %v4632_v45 = vpack.c.bf16 %v614_v9, %v612_v12  ;;  %2299 = vst.msk [vmem:[#allocation2 + $0x160] sm:$0xff] %vm1390_vm0, %v5970_v3  ;;  %v8249_v12 = vld [vmem:[#allocation25_spill] sm:$0xff] }
  0x95   :  { %v419_v50 = vsel %vm370_vm6, %v416_v58, %v418_v57  ;;  %1632 = vrot.lane.b32.xlu0 %v1617_v15, %s5053_s24  ;;  %v229_v49 = vrot.slane %v8240_v56, 7  ;;  %v231_v46 = vrot.slane %v8241_v41, 7  ;;  %v615_v31 = vrot.slane %v8240_v56, 5 }
  0x96   :  { %v421_v2 = vsel %vm370_vm6, %v418_v57, %v420_v8  ;;  %4537 = vmatprep.subr.bf16.mxu0 %v4536_v32  ;;  %4633 = vmatprep.subr.bf16.mxu1 %v4632_v45  ;;  %v617_v36 = vrot.slane %v8241_v41, 5  ;;  %v4542_v18 = vpack.c.bf16 %v8241_v41, %v8240_v56  ;;  %v422_v26 = vrot.slane %v8240_v56, 6  ;;  %v8250_v45 = vld [vmem:[#allocation28_spill] sm:$0xff] }
  0x97   :  { %v4634_v21 = vpack.c.bf16 %v421_v2, %v419_v50  ;;  %4539 = vmatpush1.bf16.msra.mxu0 %v4538_v54  ;;  %v230_v43 = vsel %vm177_vm7, %v227_v59, %v229_v49  ;;  %v232_v63 = vsel %vm177_vm7, %v229_v49, %v231_v46  ;;  %1534 = vrot.lane.b32.xlu1 %v8242_v42, %s5051_s16  ;;  %v424_v13 = vrot.slane %v8241_v41, 6  ;;  %v8248_v54 = vld [vmem:[#allocation24_spill] sm:$0xff]  ;;  %v8251_v50 = vld [vmem:[#allocation29_spill] sm:$0xff]  ;;  %v8253_v42 = vld [vmem:[#allocation31_spill] sm:$0xff] }
  0x98   :  { %v4540_v6 = vpack.c.bf16 %v232_v63, %v230_v43  ;;  %v616_v27 = vsel %vm563_vm5, %v613_v19, %v615_v31  ;;  %v618_v44 = vsel %vm563_vm5, %v615_v31, %v617_v36  ;;  %v423_v52 = vsel %vm370_vm6, %v420_v8, %v422_v26 }
  0x99   :  { %4635 = vmatpush1.bf16.msra.mxu1 %v4634_v21  ;;  %1682 = vrot.lane.b32.xlu0 %v8243_v48, %s5054_s25  ;;  %v4636_v51 = vpack.c.bf16 %v618_v44, %v616_v27  ;;  %v425_v53 = vsel %vm370_vm6, %v422_v26, %v424_v13  ;;  %v233_v10 = vrot.slane %v8244_v47, 7  ;;  %v235_v58 = vrot.slane %v8245_v55, 7  ;;  %v8252_v26 = vld [vmem:[#allocation30_spill] sm:$0xff]  ;;  %v8255_v27 = vld [vmem:[#allocation33_spill] sm:$0xff] }
  0x9a   :  { %4541 = vmatprep.subr.bf16.mxu0 %v4540_v6  ;;  %v4638_v40 = vpack.c.bf16 %v425_v53, %v423_v52  ;;  %v619_v23 = vrot.slane %v8244_v47, 5  ;;  %v621_v28 = vrot.slane %v8245_v55, 5  ;;  %v4546_v11 = vpack.c.bf16 %v8245_v55, %v8244_v47  ;;  %v8254_v6 = vld [vmem:[#allocation32_spill] sm:$0xff] }
  0x9b   :  { %4637 = vmatprep.subr.bf16.mxu1 %v4636_v51  ;;  %4543 = vmatpush1.bf16.msra.mxu0 %v4542_v18  ;;  %v234_v37 = vsel %vm177_vm7, %v231_v46, %v233_v10  ;;  %v236_v38 = vsel %vm177_vm7, %v233_v10, %v235_v58  ;;  %v426_v33 = vrot.slane %v8244_v47, 6  ;;  %v428_v20 = vrot.slane %v8245_v55, 6 }
  0x9c   :  { %1584 = vrot.lane.b32.xlu1 %v8246_v17, %s5052_s23  ;;  %v4544_v59 = vpack.c.bf16 %v236_v38, %v234_v37  ;;  %v620_v62 = vsel %vm563_vm5, %v617_v36, %v619_v23  ;;  %v622_v19 = vsel %vm563_vm5, %v619_v23, %v621_v28  ;;  %v237_v57 = vrot.slane %v8248_v54, 7 }
  0x9d   :  { %1732 = vrot.lane.b32.xlu0 %v8247_v30, %s5055_s1  ;;  %4639 = vmatpush1.bf16.msra.mxu1 %v4638_v40  ;;  %v4640_v15 = vpack.c.bf16 %v622_v19, %v620_v62  ;;  %v427_v39 = vsel %vm370_vm6, %v424_v13, %v426_v33  ;;  %v429_v4 = vsel %vm370_vm6, %v426_v33, %v428_v20  ;;  %v239_v9 = vrot.slane %v8249_v12, 7 }
  0x9e   :  { %4545 = vmatprep.subr.bf16.mxu0 %v4544_v59  ;;  %v623_v8 = vrot.slane %v8248_v54, 5  ;;  %v625_v32 = vrot.slane %v8249_v12, 5  ;;  %v4642_v7 = vpack.c.bf16 %v429_v4, %v427_v39  ;;  %v238_v2 = vsel %vm177_vm7, %v235_v58, %v237_v57 }
  0x9f   :  { %v430_v21 = vrot.slane %v8248_v54, 6  ;;  %4641 = vmatprep.subr.bf16.mxu1 %v4640_v15  ;;  %4547 = vmatpush1.bf16.msra.mxu0 %v4546_v11  ;;  %v240_v56 = vsel %vm177_vm7, %v237_v57, %v239_v9  ;;  %v432_v46 = vrot.slane %v8249_v12, 6  ;;  %v4550_v43 = vpack.c.bf16 %v8249_v12, %v8248_v54 }
  0xa0   :  { %1634 = vrot.lane.b32.xlu1 %v8250_v45, %s5053_s24  ;;  %v624_v49 = vsel %vm563_vm5, %v621_v28, %v623_v8  ;;  %v626_v41 = vsel %vm563_vm5, %v623_v8, %v625_v32  ;;  %v4548_v31 = vpack.c.bf16 %v240_v56, %v238_v2  ;;  %v1886_v44 = vrot.slane %v5736_v29, 1  ;;  %v8258_v2 = vld [vmem:[#allocation7_spill] sm:$0xff] }
  0xa1   :  { %1436 = vrot.lane.b32.xlu0 %v8251_v50, %s5050_s13  ;;  %4643 = vmatpush1.bf16.msra.mxu1 %v4642_v7  ;;  %v4644_v36 = vpack.c.bf16 %v626_v41, %v624_v49  ;;  %v431_v63 = vsel %vm370_vm6, %v428_v20, %v430_v21  ;;  %v433_v18 = vsel %vm370_vm6, %v430_v21, %v432_v46  ;;  %v1888_v13 = vrot.slane %v5805_v34, 1 }
  0xa2   :  { %v4646_v48 = vpack.c.bf16 %v433_v18, %v431_v63  ;;  %4549 = vmatprep.subr.bf16.mxu0 %v4548_v31  ;;  %v1933_v51 = vrot.slane %v5736_v29, 2  ;;  %v1935_v52 = vrot.slane %v5805_v34, 2  ;;  %v1980_v53 = vrot.slane %v5736_v29, 3  ;;  %v8259_v31 = vld [vmem:[#allocation8_spill] sm:$0xff]  ;;  %v1473_v18 = vpop.permute.xlu1 %1472 }
  0xa3   :  { %4645 = vmatprep.subr.bf16.mxu1 %v4644_v36  ;;  %4551 = vmatpush1.bf16.msra.mxu0 %v4550_v43  ;;  %v6036_v47 = vsel %vm1406_vm1, %v1886_v44, %v1888_v13  ;;  %v1982_v10 = vrot.slane %v5805_v34, 3  ;;  %v2027_v55 = vrot.slane %v5736_v29, 4  ;;  %v2121_v23 = vrot.slane %v5736_v29, 6 }
  0xa4   :  { %1684 = vrot.lane.b32.xlu1 %v8252_v26, %s5054_s25  ;;  %v6043_v58 = vsel %vm8059_vm2, %v1933_v51, %v1935_v52  ;;  %v2076_v28 = vrot.slane %v5805_v34, 5  ;;  %v2168_v30 = vrot.slane %v5736_v29, 7  ;;  %v1890_v37 = vrot.slane %v5910_v61, 1  ;;  %v1423_v26 = vpop.permute.xlu0 %1422 }
  0xa5   :  { %1486 = vrot.lane.b32.xlu0 %v8253_v42, %s5049_s12  ;;  %4647 = vmatpush1.bf16.msra.mxu1 %v4646_v48  ;;  %v6050_v40 = vsel %vm949_vm3, %v1980_v53, %v1982_v10  ;;  %v2123_v38 = vrot.slane %v5805_v34, 6  ;;  %v8256_v11 = vrot.slane %v5165_v14, 1  ;;  %v1937_v59 = vrot.slane %v5910_v61, 2  ;;  %1447 = vst.msk [vmem:[#allocation2] sm:$0x80] %vm8058_vm8, %v1423_v26 }
  0xa6   :  { %v2170_v62 = vrot.slane %v5805_v34, 7  ;;  %v1984_v19 = vrot.slane %v5910_v61, 3  ;;  %v6076_v20 = vsel %vm1406_vm1, %v1888_v13, %v1890_v37  ;;  %v2031_v15 = vrot.slane %v5910_v61, 4  ;;  %1497 = vst.msk [vmem:[#allocation2] sm:$0xc0] %vm8057_vm9, %v1473_v18 }
  0xa7   :  { %v1892_v39 = vrot.slane %v5970_v3, 1  ;;  %v6086_v54 = vsel %vm8059_vm2, %v1935_v52, %v1937_v59  ;;  %v2078_v4 = vrot.slane %v5910_v61, 5  ;;  %v1939_v50 = vrot.slane %v5970_v3, 2 }
  0xa8   :  { %1734 = vrot.lane.b32.xlu1 %v8254_v6, %s5055_s1  ;;  %v6094_v57 = vsel %vm949_vm3, %v1982_v10, %v1984_v19  ;;  %v8257_v7 = vrot.slane %v5165_v14, 2  ;;  %v1879_v21 = vrot.slane %v8258_v2, 1  ;;  %v2125_v49 = vrot.slane %v5910_v61, 6 }
  0xa9   :  { %1536 = vrot.lane.b32.xlu0 %v8255_v27, %s5051_s16  ;;  %v6103_v45 = vsel %vm1406_vm1, %v1890_v37, %v1892_v39  ;;  %v6113_v56 = vsel %vm563_vm5, %v2076_v28, %v2078_v4  ;;  %v1986_v41 = vrot.slane %v5970_v3, 3  ;;  %v1880_v36 = vrot.slane %v8259_v31, 1  ;;  %v1523_v37 = vpop.permute.xlu1 %1522 }
  0xaa   :  { %v6121_v43 = vsel %vm8059_vm2, %v1937_v59, %v1939_v50  ;;  %v2033_v63 = vrot.slane %v5970_v3, 4  ;;  %v6126_v42 = vsel %vm370_vm6, %v2123_v38, %v2125_v49  ;;  %v2080_v6 = vrot.slane %v5970_v3, 5  ;;  %1547 = vst.msk [vmem:[#allocation2] sm:$0xe0] %vm8054_vm10, %v1523_v37 }
  0xab   :  { %v6131_v48 = vsel %vm949_vm3, %v1984_v19, %v1986_v41  ;;  %v2127_v13 = vrot.slane %v5970_v3, 6  ;;  %v8260_v52 = vrot.slane %v5165_v14, 3  ;;  %v1926_v59 = vrot.slane %v8258_v2, 2 }
  0xac   :  { %1636 = vrot.lane.b32.xlu1 %v5658_v0, %s5053_s24  ;;  %v2029_v0 = vrot.slane %v5805_v34, 4  ;;  %v6091_v34 = vsel %vm177_vm7, %v2168_v30, %v2170_v62  ;;  %v6154_v10 = vsel %vm563_vm5, %v2078_v4, %v2080_v6  ;;  %v1973_v4 = vrot.slane %v8258_v2, 3 }
  0xad   :  { %1586 = vrot.lane.b32.xlu0 %v5665_v24, %s5052_s23  ;;  %v2074_v24 = vrot.slane %v5736_v29, 5  ;;  %v1475_v19 = vpop.permute.xlu1 %1474  ;;  %vm8055_vm0 = vcmask 654852   ;;  %v2021_v18 = vrot.slane %v8259_v31, 4  ;;  %vm8056_vm10 = vcmask 786051  }
  0xae   :  { %v6057_v17 = vsel %vm756_vm4, %v2027_v55, %v2029_v0  ;;  %v6098_v8 = vsel %vm756_vm4, %v2029_v0, %v2031_v15  ;;  %v2174_v0 = vrot.slane %v5970_v3, 7  ;;  %vm1696_vm9 = vcmask 917250  }
  0xaf   :  { %v6070_v33 = vsel %vm563_vm5, %v2074_v24, %v2076_v28  ;;  %v1881_v28 = vsel %vm1406_vm1, %v1879_v21, %v1880_v36  ;;  %vm8061_vm8 = vcmask 1048449  }
  0xb0   :  { %1686 = vrot.lane.b32.xlu1 %v5693_v1, %s5054_s25  ;;  %v6081_v1 = vsel %vm370_vm6, %v2121_v23, %v2123_v38  ;;  %v1425_v38 = vpop.permute.xlu0 %1424 }
  0xb1   :  { %1764 = vrot.lane.b32.xlu0 %v8256_v11, %s5050_s13  ;;  %1449 = vst.msk [vmem:[#allocation2 + $0x18] sm:$0xff] %vm1448_vm11, %v1425_v38  ;;  %1767 = vst.msk [vmem:[#allocation2 + $0x8] sm:$0xff] %vm1448_vm11, %v1425_v38 }
  0xb2   :  { %1499 = vst.msk [vmem:[#allocation2 + $0x18] sm:$0xff] %vm1498_vm12, %v1475_v19  ;;  %1779 = vst.msk [vmem:[#allocation2 + $0x8] sm:$0xff] %vm1498_vm12, %v1475_v19 }
  0xb4   :  { %1736 = vrot.lane.b32.xlu1 %v5726_v16, %s5055_s1  ;;  %v2172_v16 = vrot.slane %v5910_v61, 7  ;;  %v6141_v61 = vsel %vm756_vm4, %v2031_v15, %v2033_v63  ;;  %v1525_v15 = vpop.permute.xlu0 %1524 }
  0xb5   :  { %1776 = vrot.lane.b32.xlu0 %v8257_v7, %s5049_s12  ;;  %1549 = vst.msk [vmem:[#allocation2 + $0x18] sm:$0xff] %vm1548_vm13, %v1525_v15  ;;  %1791 = vst.msk [vmem:[#allocation2 + $0x8] sm:$0xff] %vm1548_vm13, %v1525_v15  ;;  %v1974_v7 = vrot.slane %v8259_v31, 3  ;;  %v2067_v15 = vrot.slane %v8258_v2, 5 }
  0xb6   :  { %v6136_v27 = vsel %vm177_vm7, %v2170_v62, %v2172_v16  ;;  %v6168_v11 = vsel %vm177_vm7, %v2172_v16, %v2174_v0  ;;  %v1927_v62 = vrot.slane %v8259_v31, 2 }
  0xb8   :  { %1800 = vrot.lane.b32.xlu1 %v1570_v5, %s5052_s23  ;;  %v6163_v5 = vsel %vm370_vm6, %v2125_v49, %v2127_v13  ;;  %v1427_v49 = vpop.permute.xlu1 %1426  ;;  %v1575_v16 = vpop.permute.xlu0 %1574 }
  0xb9   :  { %1788 = vrot.lane.b32.xlu0 %v8260_v52, %s5051_s16  ;;  %1450 = vst.msk [vmem:[#allocation2 + $0x30] sm:$0xff] %vm1448_vm11, %v1427_v49  ;;  %1768 = vst.msk [vmem:[#allocation2 + $0x20] sm:$0xff] %vm1448_vm11, %v1427_v49 }
  0xba   :  { %1599 = vst.msk [vmem:[#allocation2 + $0x18] sm:$0xff] %vm1598_vm14, %v1575_v16  ;;  %1803 = vst.msk [vmem:[#allocation2 + $0x8] sm:$0xff] %vm1598_vm14, %v1575_v16 }
  0xbc   :  { %1896 = vrot.lane.b32.xlu1 %v1881_v28, %s5050_s13  ;;  %v1625_v26 = vpop.permute.xlu1 %1624  ;;  %v1573_v52 = vpop.permute.xlu0 %1572 }
  0xbd   :  { %1812 = vrot.lane.b32.xlu0 %v1620_v35, %s5053_s24  ;;  %v1928_v35 = vsel %vm8059_vm2, %v1926_v59, %v1927_v62  ;;  %1649 = vst.msk [vmem:[#allocation2 + $0x18] sm:$0xff] %vm1648_vm15, %v1625_v26  ;;  %1815 = vst.msk [vmem:[#allocation2 + $0x8] sm:$0xff] %vm1648_vm15, %v1625_v26  ;;  %v2115_v26 = vrot.slane %v8259_v31, 6 }
  0xbe   :  { %1597 = vst.msk [vmem:[#allocation2] sm:$0xf0] %vm8055_vm0, %v1573_v52  ;;  %vm1698_vm0 = vcmask 917248  }
  0xc0   :  { %1894 = vrot.lane.b32.xlu1 %v1879_v21, %s5050_s13  ;;  %v2020_v21 = vrot.slane %v8258_v2, 4  ;;  %v1477_v38 = vpop.permute.xlu0 %1476 }
  0xc1   :  { %1824 = vrot.lane.b32.xlu0 %v1670_v60, %s5054_s25  ;;  %v1975_v60 = vsel %vm949_vm3, %v1973_v4, %v1974_v7  ;;  %1500 = vst.msk [vmem:[#allocation2 + $0x30] sm:$0xff] %vm1498_vm12, %v1477_v38  ;;  %1780 = vst.msk [vmem:[#allocation2 + $0x20] sm:$0xff] %vm1498_vm12, %v1477_v38 }
  0xc2   :  { %v2022_v14 = vsel %vm756_vm4, %v2020_v21, %v2021_v18 }
  0xc4   :  { %1836 = vrot.lane.b32.xlu1 %v1720_v25, %s5055_s1  ;;  %v8261_v25 = vld [vmem:[#allocation14_spill] sm:$0xff]  ;;  %v1675_v16 = vpop.permute.xlu0 %1674 }
  0xc5   :  { %1943 = vrot.lane.b32.xlu0 %v1928_v35, %s5049_s12  ;;  %v1882_v28 = vrot.slane %v8261_v25, 1  ;;  %v1929_v19 = vrot.slane %v8261_v25, 2  ;;  %v2068_v35 = vrot.slane %v8259_v31, 5  ;;  %1699 = vst.msk [vmem:[#allocation2 + $0x18] sm:$0xff] %vm1698_vm0, %v1675_v16  ;;  %1827 = vst.msk [vmem:[#allocation2 + $0x8] sm:$0xff] %vm1698_vm0, %v1675_v16  ;;  %v2161_v16 = vrot.slane %v8258_v2, 7 }
  0xc7   :  { %v1623_v37 = vpop.permute.xlu1 %1622 }
  0xc8   :  { %1990 = vrot.lane.b32.xlu1 %v1975_v60, %s5051_s16  ;;  %1647 = vst.msk [vmem:[#allocation2] sm:$0xf8] %vm8056_vm10, %v1623_v37  ;;  %vm1748_vm10 = vcmask 1048448   ;;  %v2114_v60 = vrot.slane %v8258_v2, 6 }
  0xc9   :  { %1941 = vrot.lane.b32.xlu0 %v1926_v59, %s5049_s12  ;;  %v1883_v59 = vsel %vm1406_vm1, %v1880_v36, %v1882_v28  ;;  %v1930_v36 = vsel %vm8059_vm2, %v1927_v62, %v1929_v19 }
  0xca   :  { %v2116_v62 = vsel %vm370_vm6, %v2114_v60, %v2115_v26 }
  0xcb   :  { %v1527_v49 = vpop.permute.xlu1 %1526 }
  0xcc   :  { %2037 = vrot.lane.b32.xlu1 %v2022_v14, %s5052_s23  ;;  %1550 = vst.msk [vmem:[#allocation2 + $0x30] sm:$0xff] %vm1548_vm13, %v1527_v49  ;;  %1792 = vst.msk [vmem:[#allocation2 + $0x20] sm:$0xff] %vm1548_vm13, %v1527_v49  ;;  %v2023_v49 = vrot.slane %v8261_v25, 4 }
  0xcd   :  { %1988 = vrot.lane.b32.xlu0 %v1973_v4, %s5051_s16  ;;  %v2069_v4 = vsel %vm563_vm5, %v2067_v15, %v2068_v35 }
  0xce   :  { %v2024_v2 = vsel %vm756_vm4, %v2021_v18, %v2023_v49 }
  0xcf   :  { %v1725_v52 = vpop.permute.xlu1 %1724 }
  0xd0   :  { %2035 = vrot.lane.b32.xlu1 %v2020_v21, %s5052_s23  ;;  %v1673_v14 = vpop.permute.xlu0 %1672  ;;  %1749 = vst.msk [vmem:[#allocation2 + $0x18] sm:$0xff] %vm1748_vm10, %v1725_v52  ;;  %1839 = vst.msk [vmem:[#allocation2 + $0x8] sm:$0xff] %vm1748_vm10, %v1725_v52  ;;  %v1976_v21 = vrot.slane %v8261_v25, 3 }
  0xd1   :  { %1898 = vrot.lane.b32.xlu0 %v1883_v59, %s5050_s13  ;;  %1697 = vst.msk [vmem:[#allocation2] sm:$0xfc] %vm1696_vm9, %v1673_v14 }
  0xd2   :  { %v1977_v59 = vsel %vm949_vm3, %v1974_v7, %v1976_v21 }
  0xd3   :  { %v1723_v37 = vpop.permute.xlu1 %1722 }
  0xd4   :  { %1945 = vrot.lane.b32.xlu1 %v1930_v36, %s5049_s12  ;;  %v1577_v38 = vpop.permute.xlu0 %1576  ;;  %1747 = vst.msk [vmem:[#allocation2] sm:$0xfe] %vm8061_vm8, %v1723_v37  ;;  %v2162_v36 = vrot.slane %v8259_v31, 7  ;;  %vm8065_vm8 = vcmask 650752  }
  0xd5   :  { %2084 = vrot.lane.b32.xlu0 %v2069_v4, %s5053_s24  ;;  %1600 = vst.msk [vmem:[#allocation2 + $0x30] sm:$0xff] %vm1598_vm14, %v1577_v38  ;;  %1804 = vst.msk [vmem:[#allocation2 + $0x20] sm:$0xff] %vm1598_vm14, %v1577_v38 }
  0xd6   :  { %v2163_v7 = vsel %vm177_vm7, %v2161_v16, %v2162_v36 }
  0xd7   :  { %v2301_v14 = vld [vmem:[#allocation2 + $0x8] sm:$0xff] }
  0xd8   :  { %2131 = vrot.lane.b32.xlu1 %v2116_v62, %s5054_s25  ;;  %v1627_v4 = vpop.permute.xlu1 %1626  ;;  %v1429_v52 = vpop.permute.xlu0 %1428  ;;  %2748 = vmatprep.mubr.f32.mxu0 %v2301_v14 }
  0xd9   :  { %2082 = vrot.lane.b32.xlu0 %v2067_v15, %s5053_s24  ;;  %1650 = vst.msk [vmem:[#allocation2 + $0x30] sm:$0xff] %vm1648_vm15, %v1627_v4  ;;  %1816 = vst.msk [vmem:[#allocation2 + $0x20] sm:$0xff] %vm1648_vm15, %v1627_v4  ;;  %3070 = vmatprep.mubr.f32.mxu1 %v2301_v14  ;;  %v1884_v15 = vrot.slane %v5616_v22, 1 }
  0xda   :  { %1451 = vst.msk [vmem:[#allocation2 + $0x48] sm:$0xff] %vm1448_vm11, %v1429_v52  ;;  %1769 = vst.msk [vmem:[#allocation2 + $0x38] sm:$0xff] %vm1448_vm11, %v1429_v52 }
  0xdb   :  { %v2300_v38 = vld [vmem:[#allocation2] sm:$0xff]  ;;  %v1885_v18 = vsel %vm1406_vm1, %v1882_v28, %v1884_v15 }
  0xdc   :  { %2129 = vrot.lane.b32.xlu1 %v2114_v60, %s5054_s25  ;;  %v1677_v62 = vpop.permute.xlu1 %1676  ;;  %2749 = vmatmul.mubr.f32.vlgmr.msra.gmra.mrb[0].mxu0 %v2300_v38  ;;  %v1931_v60 = vrot.slane %v5616_v22, 2 }
  0xdd   :  { %1992 = vrot.lane.b32.xlu0 %v1977_v59, %s5051_s16  ;;  %v1479_v37 = vpop.permute.xlu0 %1478  ;;  %1700 = vst.msk [vmem:[#allocation2 + $0x30] sm:$0xff] %vm1698_vm0, %v1677_v62  ;;  %1828 = vst.msk [vmem:[#allocation2 + $0x20] sm:$0xff] %vm1698_vm0, %v1677_v62  ;;  %3071 = vmatmul.mubr.f32.vlgmr.msra.gmra.mrb[0].mxu1 %v2300_v38  ;;  %v2070_v59 = vrot.slane %v8261_v25, 5  ;;  %v2164_v38 = vrot.slane %v8261_v25, 7 }
  0xde   :  { %1501 = vst.msk [vmem:[#allocation2 + $0x48] sm:$0xff] %vm1498_vm12, %v1479_v37  ;;  %1781 = vst.msk [vmem:[#allocation2 + $0x38] sm:$0xff] %vm1498_vm12, %v1479_v37  ;;  %v1932_v28 = vsel %vm8059_vm2, %v1929_v19, %v1931_v60 }
  0xdf   :  { %v2071_v14 = vsel %vm563_vm5, %v2068_v35, %v2070_v59 }
  0xe0   :  { %2039 = vrot.lane.b32.xlu1 %v2024_v2, %s5052_s23  ;;  %v1727_v4 = vpop.permute.xlu1 %1726  ;;  %v1978_v2 = vrot.slane %v5616_v22, 3 }
  0xe1   :  { %2178 = vrot.lane.b32.xlu0 %v2163_v7, %s5055_s1  ;;  %v1529_v52 = vpop.permute.xlu0 %1528  ;;  %1750 = vst.msk [vmem:[#allocation2 + $0x30] sm:$0xff] %vm1748_vm10, %v1727_v4  ;;  %1840 = vst.msk [vmem:[#allocation2 + $0x20] sm:$0xff] %vm1748_vm10, %v1727_v4  ;;  %v2117_v7 = vrot.slane %v8261_v25, 6  ;;  %v1887_v25 = vsel %vm1406_vm1, %v1884_v15, %v1886_v44  ;;  %v1934_v15 = vsel %vm8059_vm2, %v1931_v60, %v1933_v51  ;;  %vm8060_vm1 = vcmask 260224  }
  0xe2   :  { %1551 = vst.msk [vmem:[#allocation2 + $0x48] sm:$0xff] %vm1548_vm13, %v1529_v52  ;;  %1793 = vst.msk [vmem:[#allocation2 + $0x38] sm:$0xff] %vm1548_vm13, %v1529_v52  ;;  %v1979_v19 = vsel %vm949_vm3, %v1976_v21, %v1978_v2  ;;  %v1981_v60 = vsel %vm949_vm3, %v1978_v2, %v1980_v53  ;;  %vm8062_vm2 = vcmask 390400  }
  0xe3   :  { %v2118_v35 = vsel %vm370_vm6, %v2115_v26, %v2117_v7  ;;  %v2303_v26 = vld [vmem:[#allocation2 + $0x18] sm:$0xff] }
  0xe4   :  { %1900 = vrot.lane.b32.xlu1 %v1885_v18, %s5050_s13 }
  0xe5   :  { %2176 = vrot.lane.b32.xlu0 %v2161_v16, %s5055_s1  ;;  %v1431_v62 = vpop.permute.xlu1 %1430  ;;  %v1579_v37 = vpop.permute.xlu0 %1578  ;;  %v2025_v16 = vrot.slane %v5616_v22, 4 }
  0xe6   :  { %1452 = vst.msk [vmem:[#allocation2 + $0x60] sm:$0xff] %vm1448_vm11, %v1431_v62  ;;  %1770 = vst.msk [vmem:[#allocation2 + $0x50] sm:$0xff] %vm1448_vm11, %v1431_v62 }
  0xe7   :  { %1601 = vst.msk [vmem:[#allocation2 + $0x48] sm:$0xff] %vm1598_vm14, %v1579_v37  ;;  %1805 = vst.msk [vmem:[#allocation2 + $0x38] sm:$0xff] %vm1598_vm14, %v1579_v37  ;;  %v2026_v21 = vsel %vm756_vm4, %v2023_v49, %v2025_v16  ;;  %v2119_v49 = vrot.slane %v5616_v22, 6 }
  0xe8   :  { %1947 = vrot.lane.b32.xlu1 %v1932_v28, %s5049_s12  ;;  %v2304_v52 = vld [vmem:[#allocation2 + $0x20] sm:$0xff]  ;;  %v2165_v28 = vsel %vm177_vm7, %v2162_v36, %v2164_v38  ;;  %v2306_v53 = vld [vmem:[#allocation2 + $0x30] sm:$0xff] }
  0xe9   :  { %2086 = vrot.lane.b32.xlu0 %v2071_v14, %s5053_s24  ;;  %v1481_v18 = vpop.permute.xlu1 %1480  ;;  %v1629_v4 = vpop.permute.xlu0 %1628  ;;  %2754 = vmatprep.mubr.f32.mxu0 %v2304_v52  ;;  %v2072_v14 = vrot.slane %v5616_v22, 5  ;;  %v2120_v44 = vsel %vm370_vm6, %v2117_v7, %v2119_v49 }
  0xea   :  { %1502 = vst.msk [vmem:[#allocation2 + $0x60] sm:$0xff] %vm1498_vm12, %v1481_v18  ;;  %1782 = vst.msk [vmem:[#allocation2 + $0x50] sm:$0xff] %vm1498_vm12, %v1481_v18  ;;  %3076 = vmatprep.mubr.f32.mxu1 %v2304_v52  ;;  %2755 = vmatmul.mubr.f32.gmra.mrb[2].mxu0 %v2303_v26 }
  0xeb   :  { %1651 = vst.msk [vmem:[#allocation2 + $0x48] sm:$0xff] %vm1648_vm15, %v1629_v4  ;;  %1817 = vst.msk [vmem:[#allocation2 + $0x38] sm:$0xff] %vm1648_vm15, %v1629_v4  ;;  %3077 = vmatmul.mubr.f32.gmra.mrb[2].mxu1 %v2303_v26  ;;  %v2073_v31 = vsel %vm563_vm5, %v2070_v59, %v2072_v14  ;;  %v2166_v59 = vrot.slane %v5616_v22, 7  ;;  %v6382_v26 = vld [vmem:[#allocation4 + $0x108] sm:$0xff] }
  0xec   :  { %1994 = vrot.lane.b32.xlu1 %v1979_v19, %s5051_s16  ;;  %113 = vst [vmem:[#allocation3 + $0x738] sm:$0xff] %v6382_v26 }
  0xed   :  { %2133 = vrot.lane.b32.xlu0 %v2118_v35, %s5054_s25  ;;  %v1531_v62 = vpop.permute.xlu1 %1530  ;;  %v1679_v37 = vpop.permute.xlu0 %1678  ;;  %v2167_v51 = vsel %vm177_vm7, %v2164_v38, %v2166_v59  ;;  %v6380_v38 = vld [vmem:[#allocation4 + $0x100] sm:$0xff] }
  0xee   :  { %1552 = vst.msk [vmem:[#allocation2 + $0x60] sm:$0xff] %vm1548_vm13, %v1531_v62  ;;  %1794 = vst.msk [vmem:[#allocation2 + $0x50] sm:$0xff] %vm1548_vm13, %v1531_v62  ;;  %v241_v2 = vrot.slane %v6380_v38, 7 }
  0xef   :  { %1701 = vst.msk [vmem:[#allocation2 + $0x48] sm:$0xff] %vm1698_vm0, %v1679_v37  ;;  %1829 = vst.msk [vmem:[#allocation2 + $0x38] sm:$0xff] %vm1698_vm0, %v1679_v37 }
  0xf0   :  { %2041 = vrot.lane.b32.xlu1 %v2026_v21, %s5052_s23  ;;  %v243_v21 = vrot.slane %v6382_v26, 7  ;;  %112 = vst [vmem:[#allocation3 + $0x700] sm:$0xff] %v6380_v38 }
  0xf1   :  { %2180 = vrot.lane.b32.xlu0 %v2165_v28, %s5055_s1  ;;  %v1581_v36 = vpop.permute.xlu1 %1580  ;;  %v1729_v19 = vpop.permute.xlu0 %1728  ;;  %v2028_v28 = vsel %vm756_vm4, %v2025_v16, %v2027_v55 }
  0xf2   :  { %1602 = vst.msk [vmem:[#allocation2 + $0x60] sm:$0xff] %vm1598_vm14, %v1581_v36  ;;  %1806 = vst.msk [vmem:[#allocation2 + $0x50] sm:$0xff] %vm1598_vm14, %v1581_v36  ;;  %v4554_v36 = vpack.c.bf16 %v6382_v26, %v6380_v38 }
  0xf3   :  { %1751 = vst.msk [vmem:[#allocation2 + $0x48] sm:$0xff] %vm1748_vm10, %v1729_v19  ;;  %1841 = vst.msk [vmem:[#allocation2 + $0x38] sm:$0xff] %vm1748_vm10, %v1729_v19 }
  0xf4   :  { %2088 = vrot.lane.b32.xlu1 %v2073_v31, %s5053_s24  ;;  %v242_v31 = vsel %vm177_vm7, %v239_v9, %v241_v2  ;;  %v2075_v9 = vsel %vm563_vm5, %v2072_v14, %v2074_v24 }
  0xf5   :  { %1902 = vrot.lane.b32.xlu0 %v1887_v25, %s5050_s13  ;;  %v1631_v35 = vpop.permute.xlu1 %1630  ;;  %v1433_v18 = vpop.permute.xlu0 %1432  ;;  %v244_v25 = vsel %vm177_vm7, %v241_v2, %v243_v21  ;;  %v6455_v2 = vld [vmem:[#allocation4 + $0x128] sm:$0xff] }
  0xf6   :  { %1652 = vst.msk [vmem:[#allocation2 + $0x60] sm:$0xff] %vm1648_vm15, %v1631_v35  ;;  %1818 = vst.msk [vmem:[#allocation2 + $0x50] sm:$0xff] %vm1648_vm15, %v1631_v35  ;;  %v4552_v55 = vpack.c.bf16 %v244_v25, %v242_v31  ;;  %v251_v29 = vrot.slane %v6455_v2, 7 }
  0xf7   :  { %1453 = vst.msk [vmem:[#allocation2 + $0x78] sm:$0xff] %vm1448_vm11, %v1433_v18  ;;  %1771 = vst.msk [vmem:[#allocation2 + $0x68] sm:$0xff] %vm1448_vm11, %v1433_v18 }
  0xf8   :  { %2135 = vrot.lane.b32.xlu1 %v2120_v44, %s5054_s25  ;;  %4553 = vmatprep.subr.bf16.mxu0 %v4552_v55  ;;  %v6419_v44 = vld [vmem:[#allocation4 + $0x118] sm:$0xff]  ;;  %117 = vst [vmem:[#allocation3 + $0x818] sm:$0xff] %v6455_v2 }
  0xf9   :  { %1949 = vrot.lane.b32.xlu0 %v1934_v15, %s5049_s12  ;;  %v1681_v7 = vpop.permute.xlu1 %1680  ;;  %4555 = vmatpush1.bf16.msra.mxu0 %v4554_v36  ;;  %v247_v14 = vrot.slane %v6419_v44, 7  ;;  %115 = vst [vmem:[#allocation3 + $0x7a8] sm:$0xff] %v6419_v44  ;;  %v2122_v15 = vsel %vm370_vm6, %v2119_v49, %v2121_v23  ;;  %v633_v12 = vrot.slane %v6419_v44, 5 }
  0xfa   :  { %v1483_v4 = vpop.permute.xlu0 %1482  ;;  %v2307_v52 = vld [vmem:[#allocation2 + $0x38] sm:$0xff]  ;;  %1702 = vst.msk [vmem:[#allocation2 + $0x60] sm:$0xff] %vm1698_vm0, %v1681_v7  ;;  %1830 = vst.msk [vmem:[#allocation2 + $0x50] sm:$0xff] %vm1698_vm0, %v1681_v7  ;;  %v2309_v49 = vld [vmem:[#allocation2 + $0x48] sm:$0xff] }
  0xfb   :  { %1503 = vst.msk [vmem:[#allocation2 + $0x78] sm:$0xff] %vm1498_vm12, %v1483_v4  ;;  %1783 = vst.msk [vmem:[#allocation2 + $0x68] sm:$0xff] %vm1498_vm12, %v1483_v4  ;;  %2760 = vmatprep.mubr.f32.mxu0 %v2307_v52  ;;  %3082 = vmatprep.mubr.f32.mxu1 %v2307_v52  ;;  %v2169_v4 = vsel %vm177_vm7, %v2166_v59, %v2168_v30 }
  0xfc   :  { %2182 = vrot.lane.b32.xlu1 %v2167_v51, %s5055_s1  ;;  %2761 = vmatmul.mubr.f32.gmra.mrb[4].mxu0 %v2306_v53 }
  0xfd   :  { %1996 = vrot.lane.b32.xlu0 %v1981_v60, %s5051_s16  ;;  %3083 = vmatmul.mubr.f32.gmra.mrb[4].mxu1 %v2306_v53  ;;  %v1731_v62 = vpop.permute.xlu1 %1730 }
  0xfe   :  { %v1533_v37 = vpop.permute.xlu0 %1532  ;;  %1752 = vst.msk [vmem:[#allocation2 + $0x60] sm:$0xff] %vm1748_vm10, %v1731_v62  ;;  %1842 = vst.msk [vmem:[#allocation2 + $0x50] sm:$0xff] %vm1748_vm10, %v1731_v62 }
  0xff   :  { %1553 = vst.msk [vmem:[#allocation2 + $0x78] sm:$0xff] %vm1548_vm13, %v1533_v37  ;;  %1795 = vst.msk [vmem:[#allocation2 + $0x68] sm:$0xff] %vm1548_vm13, %v1533_v37 }
 0x100   :  { %1904 = vrot.lane.b32.xlu1 %v6036_v47, %s5050_s13  ;;  %v6417_v47 = vld [vmem:[#allocation4 + $0x110] sm:$0xff] }
 0x101   :  { %2043 = vrot.lane.b32.xlu0 %v2028_v28, %s5052_s23  ;;  %v1435_v16 = vpop.permute.xlu1 %1434  ;;  %v245_v24 = vrot.slane %v6417_v47, 7  ;;  %114 = vst [vmem:[#allocation3 + $0x770] sm:$0xff] %v6417_v47  ;;  %v4558_v23 = vpack.c.bf16 %v6419_v44, %v6417_v47 }
 0x102   :  { %v1583_v19 = vpop.permute.xlu0 %1582  ;;  %1454 = vst.msk [vmem:[#allocation2 + $0x90] sm:$0xff] %vm1448_vm11, %v1435_v16  ;;  %1772 = vst.msk [vmem:[#allocation2 + $0x80] sm:$0xff] %vm1448_vm11, %v1435_v16 }
 0x103   :  { %1603 = vst.msk [vmem:[#allocation2 + $0x78] sm:$0xff] %vm1598_vm14, %v1583_v19  ;;  %1807 = vst.msk [vmem:[#allocation2 + $0x68] sm:$0xff] %vm1598_vm14, %v1583_v19  ;;  %v248_v60 = vsel %vm177_vm7, %v245_v24, %v247_v14 }
 0x104   :  { %1951 = vrot.lane.b32.xlu1 %v6043_v58, %s5049_s12  ;;  %v246_v58 = vsel %vm177_vm7, %v243_v21, %v245_v24 }
 0x105   :  { %2090 = vrot.lane.b32.xlu0 %v2075_v9, %s5053_s24  ;;  %v1485_v35 = vpop.permute.xlu1 %1484  ;;  %v2310_v51 = vld [vmem:[#allocation2 + $0x50] sm:$0xff]  ;;  %v4556_v7 = vpack.c.bf16 %v248_v60, %v246_v58  ;;  %v2312_v24 = vld [vmem:[#allocation2 + $0x60] sm:$0xff]  ;;  %v434_v58 = vrot.slane %v6380_v38, 6  ;;  %v436_v60 = vrot.slane %v6382_v26, 6 }
 0x106   :  { %1504 = vst.msk [vmem:[#allocation2 + $0x90] sm:$0xff] %vm1498_vm12, %v1485_v35  ;;  %1784 = vst.msk [vmem:[#allocation2 + $0x80] sm:$0xff] %vm1498_vm12, %v1485_v35  ;;  %2766 = vmatprep.mubr.f32.mxu0 %v2310_v51  ;;  %3088 = vmatprep.mubr.f32.mxu1 %v2310_v51  ;;  %v629_v35 = vrot.slane %v6382_v26, 5  ;;  %v6522_v26 = vld [vmem:[#allocation4 + $0x148] sm:$0xff] }
 0x107   :  { %v1633_v18 = vpop.permute.xlu0 %1632  ;;  %2767 = vmatmul.mubr.f32.gmra.mrb[6].mxu0 %v2309_v49  ;;  %3089 = vmatmul.mubr.f32.gmra.mrb[6].mxu1 %v2309_v49  ;;  %v437_v49 = vsel %vm370_vm6, %v434_v58, %v436_v60  ;;  %121 = vst [vmem:[#allocation3 + $0x8f8] sm:$0xff] %v6522_v26 }
 0x108   :  { %1653 = vst.msk [vmem:[#allocation2 + $0x78] sm:$0xff] %vm1648_vm15, %v1633_v18  ;;  %1819 = vst.msk [vmem:[#allocation2 + $0x68] sm:$0xff] %vm1648_vm15, %v1633_v18  ;;  %1998 = vrot.lane.b32.xlu1 %v6050_v40, %s5051_s16  ;;  %4557 = vmatprep.subr.bf16.mxu0 %v4556_v7  ;;  %v6453_v40 = vld [vmem:[#allocation4 + $0x120] sm:$0xff] }
 0x109   :  { %2137 = vrot.lane.b32.xlu0 %v2122_v15, %s5054_s25  ;;  %v1535_v52 = vpop.permute.xlu1 %1534  ;;  %4559 = vmatpush1.bf16.msra.mxu0 %v4558_v23  ;;  %v249_v22 = vrot.slane %v6453_v40, 7  ;;  %116 = vst [vmem:[#allocation3 + $0x7e0] sm:$0xff] %v6453_v40  ;;  %v4562_v62 = vpack.c.bf16 %v6455_v2, %v6453_v40  ;;  %v627_v15 = vrot.slane %v6380_v38, 5  ;;  %v6520_v38 = vld [vmem:[#allocation4 + $0x140] sm:$0xff]  ;;  %v435_v23 = vsel %vm370_vm6, %v432_v46, %v434_v58 }
 0x10a   :  { %1554 = vst.msk [vmem:[#allocation2 + $0x90] sm:$0xff] %vm1548_vm13, %v1535_v52  ;;  %1796 = vst.msk [vmem:[#allocation2 + $0x80] sm:$0xff] %vm1548_vm13, %v1535_v52  ;;  %v438_v46 = vrot.slane %v6417_v47, 6 }
 0x10b   :  { %v1683_v53 = vpop.permute.xlu0 %1682  ;;  %v250_v21 = vsel %vm177_vm7, %v247_v14, %v249_v22  ;;  %v252_v28 = vsel %vm177_vm7, %v249_v22, %v251_v29  ;;  %120 = vst [vmem:[#allocation3 + $0x8c0] sm:$0xff] %v6520_v38  ;;  %v440_v22 = vrot.slane %v6419_v44, 6 }
 0x10c   :  { %1703 = vst.msk [vmem:[#allocation2 + $0x78] sm:$0xff] %vm1698_vm0, %v1683_v53  ;;  %1831 = vst.msk [vmem:[#allocation2 + $0x68] sm:$0xff] %vm1698_vm0, %v1683_v53  ;;  %2045 = vrot.lane.b32.xlu1 %v6057_v17, %s5052_s23  ;;  %v4560_v17 = vpack.c.bf16 %v252_v28, %v250_v21  ;;  %v631_v53 = vrot.slane %v6417_v47, 5  ;;  %v4570_v21 = vpack.c.bf16 %v6522_v26, %v6520_v38 }
 0x10d   :  { %2184 = vrot.lane.b32.xlu0 %v2169_v4, %s5055_s1  ;;  %v259_v4 = vrot.slane %v6522_v26, 7  ;;  %v439_v28 = vsel %vm370_vm6, %v436_v60, %v438_v46 }
 0x10e   :  { %v1585_v30 = vpop.permute.xlu1 %1584  ;;  %4561 = vmatprep.subr.bf16.mxu0 %v4560_v17  ;;  %v632_v44 = vsel %vm563_vm5, %v629_v35, %v631_v53  ;;  %v635_v17 = vrot.slane %v6453_v40, 5 }
 0x10f   :  { %v1733_v59 = vpop.permute.xlu0 %1732  ;;  %1604 = vst.msk [vmem:[#allocation2 + $0x90] sm:$0xff] %vm1598_vm14, %v1585_v30  ;;  %1808 = vst.msk [vmem:[#allocation2 + $0x80] sm:$0xff] %vm1598_vm14, %v1585_v30  ;;  %4563 = vmatpush1.bf16.msra.mxu0 %v4562_v62  ;;  %v441_v62 = vsel %vm370_vm6, %v438_v46, %v440_v22  ;;  %v452_v46 = vrot.slane %v6522_v26, 6 }
 0x110   :  { %1753 = vst.msk [vmem:[#allocation2 + $0x78] sm:$0xff] %vm1748_vm10, %v1733_v59  ;;  %1843 = vst.msk [vmem:[#allocation2 + $0x68] sm:$0xff] %vm1748_vm10, %v1733_v59  ;;  %2092 = vrot.lane.b32.xlu1 %v6070_v33, %s5053_s24  ;;  %v6484_v33 = vld [vmem:[#allocation4 + $0x130] sm:$0xff]  ;;  %v634_v59 = vsel %vm563_vm5, %v631_v53, %v633_v12  ;;  %v645_v53 = vrot.slane %v6522_v26, 5 }
 0x111   :  { %1906 = vrot.lane.b32.xlu0 %v6076_v20, %s5050_s13  ;;  %v6486_v20 = vld [vmem:[#allocation4 + $0x138] sm:$0xff]  ;;  %v253_v25 = vrot.slane %v6484_v33, 7  ;;  %118 = vst [vmem:[#allocation3 + $0x850] sm:$0xff] %v6484_v33  ;;  %v639_v58 = vrot.slane %v6484_v33, 5  ;;  %v446_v60 = vrot.slane %v6484_v33, 6 }
 0x112   :  { %v1635_v37 = vpop.permute.xlu1 %1634  ;;  %v255_v36 = vrot.slane %v6486_v20, 7  ;;  %119 = vst [vmem:[#allocation3 + $0x888] sm:$0xff] %v6486_v20  ;;  %v4566_v19 = vpack.c.bf16 %v6486_v20, %v6484_v33 }
 0x113   :  { %v1437_v31 = vpop.permute.xlu0 %1436  ;;  %1654 = vst.msk [vmem:[#allocation2 + $0x90] sm:$0xff] %vm1648_vm15, %v1635_v37  ;;  %1820 = vst.msk [vmem:[#allocation2 + $0x80] sm:$0xff] %vm1648_vm15, %v1635_v37 }
 0x114   :  { %1455 = vst.msk [vmem:[#allocation2 + $0xa8] sm:$0xff] %vm1448_vm11, %v1437_v31  ;;  %1773 = vst.msk [vmem:[#allocation2 + $0x98] sm:$0xff] %vm1448_vm11, %v1437_v31  ;;  %2139 = vrot.lane.b32.xlu1 %v6081_v1, %s5054_s25  ;;  %v254_v1 = vsel %vm177_vm7, %v251_v29, %v253_v25 }
 0x115   :  { %1953 = vrot.lane.b32.xlu0 %v6086_v54, %s5049_s12  ;;  %v256_v54 = vsel %vm177_vm7, %v253_v25, %v255_v36  ;;  %v637_v25 = vrot.slane %v6455_v2, 5 }
 0x116   :  { %v1685_v55 = vpop.permute.xlu1 %1684  ;;  %v4564_v14 = vpack.c.bf16 %v256_v54, %v254_v1  ;;  %v636_v1 = vsel %vm563_vm5, %v633_v12, %v635_v17  ;;  %v450_v12 = vrot.slane %v6520_v38, 6 }
 0x117   :  { %v1487_v9 = vpop.permute.xlu0 %1486  ;;  %v2313_v16 = vld [vmem:[#allocation2 + $0x68] sm:$0xff]  ;;  %1704 = vst.msk [vmem:[#allocation2 + $0x90] sm:$0xff] %vm1698_vm0, %v1685_v55  ;;  %1832 = vst.msk [vmem:[#allocation2 + $0x80] sm:$0xff] %vm1698_vm0, %v1685_v55  ;;  %v444_v55 = vrot.slane %v6455_v2, 6  ;;  %v6566_v2 = vld [vmem:[#allocation4 + $0x158] sm:$0xff]  ;;  %v638_v54 = vsel %vm563_vm5, %v635_v17, %v637_v25 }
 0x118   :  { %1505 = vst.msk [vmem:[#allocation2 + $0xa8] sm:$0xff] %vm1498_vm12, %v1487_v9  ;;  %1785 = vst.msk [vmem:[#allocation2 + $0x98] sm:$0xff] %vm1498_vm12, %v1487_v9  ;;  %2772 = vmatprep.mubr.f32.mxu0 %v2313_v16  ;;  %3094 = vmatprep.mubr.f32.mxu1 %v2313_v16  ;;  %v2315_v9 = vld [vmem:[#allocation2 + $0x78] sm:$0xff]  ;;  %v4654_v16 = vpack.c.bf16 %v441_v62, %v439_v28  ;;  %v649_v17 = vrot.slane %v6566_v2, 5 }
 0x119   :  { %2186 = vrot.lane.b32.xlu1 %v6091_v34, %s5055_s1  ;;  %2000 = vrot.lane.b32.xlu0 %v6094_v57, %s5051_s16  ;;  %v628_v34 = vsel %vm563_vm5, %v625_v32, %v627_v15  ;;  %v630_v57 = vsel %vm563_vm5, %v627_v15, %v629_v35  ;;  %v257_v32 = vrot.slane %v6520_v38, 7  ;;  %123 = vst [vmem:[#allocation3 + $0x968] sm:$0xff] %v6566_v2 }
 0x11a   :  { %2773 = vmatmul.mubr.f32.gmra.mrb[8].mxu0 %v2312_v24  ;;  %3095 = vmatmul.mubr.f32.gmra.mrb[8].mxu1 %v2312_v24  ;;  %v1735_v18 = vpop.permute.xlu1 %1734  ;;  %v4648_v7 = vpack.c.bf16 %v630_v57, %v628_v34  ;;  %v4656_v15 = vpack.c.bf16 %v638_v54, %v636_v1  ;;  %v78_v1 = vld [vmem:[#allocation4 + $0x170] sm:$0xff] }
 0x11b   :  { %v1537_v51 = vpop.permute.xlu0 %1536  ;;  %4565 = vmatprep.subr.bf16.mxu0 %v4564_v14  ;;  %1754 = vst.msk [vmem:[#allocation2 + $0x90] sm:$0xff] %vm1748_vm10, %v1735_v18  ;;  %1844 = vst.msk [vmem:[#allocation2 + $0x80] sm:$0xff] %vm1748_vm10, %v1735_v18  ;;  %v258_v29 = vsel %vm177_vm7, %v255_v36, %v257_v32  ;;  %v260_v30 = vsel %vm177_vm7, %v257_v32, %v259_v4  ;;  %v442_v36 = vrot.slane %v6453_v40, 6  ;;  %v6564_v40 = vld [vmem:[#allocation4 + $0x150] sm:$0xff] }
 0x11c   :  { %1555 = vst.msk [vmem:[#allocation2 + $0xa8] sm:$0xff] %vm1548_vm13, %v1537_v51  ;;  %1797 = vst.msk [vmem:[#allocation2 + $0x98] sm:$0xff] %vm1548_vm13, %v1537_v51  ;;  %4567 = vmatpush1.bf16.msra.mxu0 %v4566_v19  ;;  %4649 = vmatprep.subr.bf16.mxu1 %v4648_v7  ;;  %v4568_v47 = vpack.c.bf16 %v260_v30, %v258_v29  ;;  %v261_v14 = vrot.slane %v6564_v40, 7  ;;  %v4574_v51 = vpack.c.bf16 %v6566_v2, %v6564_v40  ;;  %v6615_v29 = vld [vmem:[#allocation4 + $0x168] sm:$0xff] }
 0x11d   :  { %2047 = vrot.lane.b32.xlu0 %v6098_v8, %s5052_s23  ;;  %1908 = vrot.lane.b32.xlu1 %v6103_v45, %s5050_s13  ;;  %v4650_v8 = vpack.c.bf16 %v437_v49, %v435_v23  ;;  %v443_v19 = vsel %vm370_vm6, %v440_v22, %v442_v36  ;;  %v445_v24 = vsel %vm370_vm6, %v442_v36, %v444_v55  ;;  %v448_v23 = vrot.slane %v6486_v20, 6  ;;  %v6613_v22 = vld [vmem:[#allocation4 + $0x160] sm:$0xff] }
 0x11e   :  { %v1637_v45 = vpop.permute.xlu1 %1636  ;;  %4569 = vmatprep.subr.bf16.mxu0 %v4568_v47  ;;  %122 = vst [vmem:[#allocation3 + $0x930] sm:$0xff] %v6564_v40  ;;  %v262_v34 = vsel %vm177_vm7, %v259_v4, %v261_v14  ;;  %v4658_v7 = vpack.c.bf16 %v445_v24, %v443_v19  ;;  %v640_v49 = vsel %vm563_vm5, %v637_v25, %v639_v58  ;;  %v265_v47 = vrot.slane %v6613_v22, 7 }
 0x11f   :  { %v1587_v52 = vpop.permute.xlu0 %1586  ;;  %4651 = vmatpush1.bf16.msra.mxu1 %v4650_v8  ;;  %v6599_v8 = vsel %vm370_vm6, %v444_v55, %v446_v60  ;;  %v6619_v26 = vsel %vm370_vm6, %v448_v23, %v450_v12  ;;  %v6622_v30 = vsel %vm370_vm6, %v450_v12, %v452_v46  ;;  %124 = vst [vmem:[#allocation3 + $0x9a0] sm:$0xff] %v6613_v22  ;;  %125 = vst [vmem:[#allocation3 + $0x9d8] sm:$0xff] %v6615_v29 }
 0x120   :  { %1605 = vst.msk [vmem:[#allocation2 + $0xa8] sm:$0xff] %vm1598_vm14, %v1587_v52  ;;  %1809 = vst.msk [vmem:[#allocation2 + $0x98] sm:$0xff] %vm1598_vm14, %v1587_v52  ;;  %4571 = vmatpush1.bf16.msra.mxu0 %v4570_v21  ;;  %v4578_v62 = vpack.c.bf16 %v6615_v29, %v6613_v22  ;;  %v456_v36 = vrot.slane %v6566_v2, 6  ;;  %v651_v54 = vrot.slane %v6613_v22, 5  ;;  %v269_v19 = vrot.slane %v78_v1, 7 }
 0x121   :  { %1655 = vst.msk [vmem:[#allocation2 + $0xa8] sm:$0xff] %vm1648_vm15, %v1637_v45  ;;  %1821 = vst.msk [vmem:[#allocation2 + $0x98] sm:$0xff] %vm1648_vm15, %v1637_v45  ;;  %2094 = vrot.lane.b32.xlu0 %v6113_v56, %s5053_s24  ;;  %1955 = vrot.lane.b32.xlu1 %v6121_v43, %s5049_s12  ;;  %v4652_v43 = vpack.c.bf16 %v634_v59, %v632_v44  ;;  %v6602_v45 = vsel %vm370_vm6, %v446_v60, %v448_v23  ;;  %v267_v44 = vrot.slane %v6615_v29, 7 }
 0x122   :  { %v1687_v37 = vpop.permute.xlu1 %1686  ;;  %v2316_v31 = vld [vmem:[#allocation2 + $0x80] sm:$0xff]  ;;  %126 = vst [vmem:[#allocation3 + $0xa10] sm:$0xff] %v78_v1 }
 0x123   :  { %v1765_v56 = vpop.permute.xlu0 %1764  ;;  %1705 = vst.msk [vmem:[#allocation2 + $0xa8] sm:$0xff] %vm1698_vm0, %v1687_v37  ;;  %1833 = vst.msk [vmem:[#allocation2 + $0x98] sm:$0xff] %vm1698_vm0, %v1687_v37  ;;  %2778 = vmatprep.mubr.f32.mxu0 %v2316_v31  ;;  %3100 = vmatprep.mubr.f32.mxu1 %v2316_v31  ;;  %v454_v37 = vrot.slane %v6564_v40, 6 }
 0x124   :  { %1775 = vst.msk [vmem:[#allocation2 + $0xb0] sm:$0x7f] %vm8060_vm1, %v1765_v56  ;;  %2779 = vmatmul.mubr.f32.gmra.mrb[10].mxu0 %v2315_v9  ;;  %3101 = vmatmul.mubr.f32.gmra.mrb[10].mxu1 %v2315_v9  ;;  %vm8063_vm1 = vcmask 520576   ;;  %v2318_v56 = vld [vmem:[#allocation2 + $0x90] sm:$0xff] }
 0x125   :  { %2141 = vrot.lane.b32.xlu0 %v6126_v42, %s5054_s25  ;;  %2002 = vrot.lane.b32.xlu1 %v6131_v48, %s5051_s16  ;;  %v263_v42 = vrot.slane %v6566_v2, 7  ;;  %v641_v48 = vrot.slane %v6486_v20, 5  ;;  %v643_v20 = vrot.slane %v6520_v38, 5  ;;  %v455_v2 = vsel %vm370_vm6, %v452_v46, %v454_v37 }
 0x126   :  { %v1737_v35 = vpop.permute.xlu1 %1736  ;;  %4653 = vmatprep.subr.bf16.mxu1 %v4652_v43  ;;  %v268_v43 = vsel %vm177_vm7, %v265_v47, %v267_v44 }
 0x127   :  { %v1777_v18 = vpop.permute.xlu0 %1776  ;;  %1755 = vst.msk [vmem:[#allocation2 + $0xa8] sm:$0xff] %vm1748_vm10, %v1737_v35  ;;  %1845 = vst.msk [vmem:[#allocation2 + $0x98] sm:$0xff] %vm1748_vm10, %v1737_v35  ;;  %4655 = vmatpush1.bf16.msra.mxu1 %v4654_v16  ;;  %v264_v57 = vsel %vm177_vm7, %v261_v14, %v263_v42  ;;  %v642_v32 = vsel %vm563_vm5, %v639_v58, %v641_v48  ;;  %v646_v38 = vsel %vm563_vm5, %v643_v20, %v645_v53 }
 0x128   :  { %1787 = vst.msk [vmem:[#allocation2 + $0xb0] sm:$0x3f] %vm8062_vm2, %v1777_v18  ;;  %v4572_v33 = vpack.c.bf16 %v264_v57, %v262_v34  ;;  %4657 = vmatprep.subr.bf16.mxu1 %v4656_v15  ;;  %v4660_v4 = vpack.c.bf16 %v642_v32, %v640_v49  ;;  %vm8064_vm2 = vcmask 780928   ;;  %v266_v31 = vsel %vm177_vm7, %v263_v42, %v265_v47  ;;  %v6668_v57 = vld [vmem:[#allocation3] sm:$0xff] }
 0x129   :  { %2188 = vrot.lane.b32.xlu0 %v6136_v27, %s5055_s1  ;;  %2049 = vrot.lane.b32.xlu1 %v6141_v61, %s5052_s23  ;;  %v644_v61 = vsel %vm563_vm5, %v641_v48, %v643_v20  ;;  %v4576_v55 = vpack.c.bf16 %v268_v43, %v266_v31  ;;  %v4666_v42 = vpack.c.bf16 %v6622_v30, %v6619_v26  ;;  %v458_v58 = vrot.slane %v6613_v22, 6 }
 0x12a   :  { %v1801_v27 = vpop.permute.xlu1 %1800  ;;  %4573 = vmatprep.subr.bf16.mxu0 %v4572_v33  ;;  %v4664_v25 = vpack.c.bf16 %v646_v38, %v644_v61  ;;  %v652_v18 = vsel %vm563_vm5, %v649_v17, %v651_v54  ;;  %v460_v48 = vrot.slane %v6615_v29, 6  ;;  %v757_v23 = vrot.slane %v6668_v57, 4 }
 0x12b   :  { %v1789_v52 = vpop.permute.xlu0 %1788  ;;  %4575 = vmatpush1.bf16.msra.mxu0 %v4574_v51  ;;  %4659 = vmatpush1.bf16.msra.mxu1 %v4658_v7  ;;  %v653_v51 = vrot.slane %v6615_v29, 5  ;;  %v950_v7 = vrot.slane %v6668_v57, 3  ;;  %v459_v32 = vsel %vm370_vm6, %v456_v36, %v458_v58  ;;  %v655_v20 = vrot.slane %v78_v1, 5  ;;  %v6691_v29 = vld [vmem:[#allocation3 + $0x38] sm:$0xff] }
 0x12c   :  { %1799 = vst.msk [vmem:[#allocation2 + $0xb0] sm:$0x1f] %vm8063_vm1, %v1789_v52  ;;  %4661 = vmatprep.subr.bf16.mxu1 %v4660_v4  ;;  %vm1834_vm1 = vcmask 911104   ;;  %4577 = vmatprep.subr.bf16.mxu0 %v4576_v55  ;;  %900 = vst [vmem:[#allocation3 + $0x20] sm:$0xf0] %v757_v23  ;;  %v462_v52 = vrot.slane %v78_v1, 6 }
 0x12d   :  { %2096 = vrot.lane.b32.xlu0 %v6154_v10, %s5053_s24  ;;  %1811 = vst.msk [vmem:[#allocation2 + $0xb0] sm:$0xf] %vm8065_vm8, %v1801_v27  ;;  %2216 = vrot.lane.b32.xlu1 %v1892_v39, %s5050_s13  ;;  %v4662_v10 = vpack.c.bf16 %v6602_v45, %v6599_v8  ;;  %v647_v39 = vrot.slane %v6564_v40, 5  ;;  %v79_v40 = vld [vmem:[#allocation4 + $0x178] sm:$0xff]  ;;  %vm8262_vm8 = vcmask 261255   ;;  %v654_v49 = vsel %vm563_vm5, %v651_v54, %v653_v51 }
 0x12e   :  { %v1897_v59 = vpop.permute.xlu1 %1896  ;;  %v2319_v28 = vld [vmem:[#allocation2 + $0x98] sm:$0xff]  ;;  %127 = vst [vmem:[#allocation3 + $0xa48] sm:$0xff] %v79_v40  ;;  %v271_v35 = vrot.slane %v79_v40, 7  ;;  %v4582_v34 = vpack.c.bf16 %v79_v40, %v78_v1  ;;  %v657_v27 = vrot.slane %v79_v40, 5  ;;  %1093 = vst [vmem:[#allocation3 + $0x28] sm:$0xe0] %v950_v7  ;;  %v656_v12 = vsel %vm563_vm5, %v653_v51, %v655_v20 }
 0x12f   :  { %v1813_v21 = vpop.permute.xlu0 %1812  ;;  %1919 = vst.msk [vmem:[#allocation2 + $0xd8] sm:$0xff] %vm1448_vm11, %v1897_v59  ;;  %2219 = vst.msk [vmem:[#allocation2 + $0xc8] sm:$0xff] %vm1448_vm11, %v1897_v59  ;;  %2784 = vmatprep.mubr.f32.mxu0 %v2319_v28  ;;  %3106 = vmatprep.mubr.f32.mxu1 %v2319_v28  ;;  %v648_v9 = vsel %vm563_vm5, %v645_v53, %v647_v39  ;;  %v650_v16 = vsel %vm563_vm5, %v647_v39, %v649_v17  ;;  %v464_v53 = vrot.slane %v79_v40, 6  ;;  %v2321_v43 = vld [vmem:[#allocation2 + $0xa8] sm:$0xff]  ;;  %v6733_v40 = vld [vmem:[#allocation3 + $0xe0] sm:$0xff] }
 0x130   :  { %1823 = vst.msk [vmem:[#allocation2 + $0xb0] sm:$0x7] %vm8064_vm2, %v1813_v21  ;;  %2785 = vmatmul.mubr.f32.gmra.mrb[12].mxu0 %v2318_v56  ;;  %3107 = vmatmul.mubr.f32.gmra.mrb[12].mxu1 %v2318_v56  ;;  %vm1846_vm2 = vcmask 1041280   ;;  %v4668_v15 = vpack.c.bf16 %v650_v16, %v648_v9  ;;  %v272_v60 = vsel %vm177_vm7, %v269_v19, %v271_v35  ;;  %v951_v38 = vrot.slane %v6691_v29, 3  ;;  %v6706_v21 = vld [vmem:[#allocation3 + $0x70] sm:$0xff] }
 0x131   :  { %2143 = vrot.lane.b32.xlu0 %v6163_v5, %s5054_s25  ;;  %2227 = vrot.lane.b32.xlu1 %v1939_v50, %s5049_s12  ;;  %v457_v5 = vsel %vm370_vm6, %v454_v37, %v456_v36  ;;  %v270_v50 = vsel %vm177_vm7, %v267_v44, %v269_v19  ;;  %v658_v46 = vsel %vm563_vm5, %v655_v20, %v657_v27  ;;  %vm8263_vm5 = vcmask 392454  }
 0x132   :  { %v1895_v24 = vpop.permute.xlu1 %1894  ;;  %4663 = vmatpush1.bf16.msra.mxu1 %v4662_v10  ;;  %4579 = vmatpush1.bf16.msra.mxu0 %v4578_v62  ;;  %v4580_v33 = vpack.c.bf16 %v272_v60, %v270_v50  ;;  %v4670_v45 = vpack.c.bf16 %v457_v5, %v455_v2  ;;  %v463_v61 = vsel %vm370_vm6, %v460_v48, %v462_v52  ;;  %v758_v10 = vrot.slane %v6691_v29, 4  ;;  %v6709_v62 = vld [vmem:[#allocation3 + $0xa8] sm:$0xff]  ;;  %v6736_v2 = vld [vmem:[#allocation3 + $0x118] sm:$0xff] }
 0x133   :  { %v1825_v14 = vpop.permute.xlu0 %1824  ;;  %1918 = vst.msk [vmem:[#allocation2 + $0xc0] sm:$0x80] %vm8262_vm8, %v1895_v24  ;;  %4665 = vmatprep.subr.bf16.mxu1 %v4664_v25  ;;  %v465_v22 = vsel %vm370_vm6, %v462_v52, %v464_v53  ;;  %v4676_v44 = vpack.c.bf16 %v658_v46, %v656_v12  ;;  %v953_v28 = vrot.slane %v6706_v21, 3  ;;  %v955_v39 = vrot.slane %v6709_v62, 3  ;;  %v6791_v53 = vld [vmem:[#allocation3 + $0x1f8] sm:$0xff] }
 0x134   :  { %1835 = vst.msk [vmem:[#allocation2 + $0xb0] sm:$0x3] %vm1834_vm1, %v1825_v14  ;;  %4581 = vmatprep.subr.bf16.mxu0 %v4580_v33  ;;  %v759_v47 = vsel %vm756_vm4, %v757_v23, %v758_v10  ;;  %v4678_v56 = vpack.c.bf16 %v465_v22, %v463_v61  ;;  %v760_v3 = vrot.slane %v6706_v21, 4  ;;  %v957_v54 = vrot.slane %v6733_v40, 3 }
 0x135   :  { %2190 = vrot.lane.b32.xlu0 %v6168_v11, %s5055_s1  ;;  %2238 = vrot.lane.b32.xlu1 %v1986_v41, %s5051_s16  ;;  %v461_v11 = vsel %vm370_vm6, %v458_v58, %v460_v48  ;;  %v4672_v41 = vpack.c.bf16 %v654_v49, %v652_v18  ;;  %v2353_v59 = vld [vmem:[#allocation3 + $0x28] sm:$0xff]  ;;  %901 = vst [vmem:[#allocation3 + $0x58] sm:$0xff] %v759_v47  ;;  %vm8264_vm6 = vcmask 523653   ;;  %v959_v5 = vrot.slane %v6736_v2, 3  ;;  %v6760_v48 = vld [vmem:[#allocation3 + $0x150] sm:$0xff] }
 0x136   :  { %v1837_v4 = vpop.permute.xlu1 %1836  ;;  %4667 = vmatpush1.bf16.msra.mxu1 %v4666_v42  ;;  %4583 = vmatpush1.bf16.msra.mxu0 %v4582_v34  ;;  %v6718_v25 = vsel %vm949_vm3, %v951_v38, %v953_v28  ;;  %v6721_v36 = vsel %vm949_vm3, %v953_v28, %v955_v39  ;;  %v6726_v9 = vsel %vm756_vm4, %v758_v10, %v760_v3  ;;  %v764_v14 = vrot.slane %v6733_v40, 4  ;;  %v6763_v34 = vld [vmem:[#allocation3 + $0x188] sm:$0xff]  ;;  %v4966_v18 = vld [vmem:[#allocation3 + $0x3f0] sm:$0xff] }
 0x137   :  { %v1944_v8 = vpop.permute.xlu0 %1943  ;;  %1847 = vst.msk [vmem:[#allocation2 + $0xb0] sm:$0x1] %vm1846_vm2, %v1837_v4  ;;  %4669 = vmatprep.subr.bf16.mxu1 %v4668_v15  ;;  %v766_v42 = vrot.slane %v6736_v2, 4  ;;  %vm8265_vm7 = vcmask 654852   ;;  %v6745_v15 = vsel %vm949_vm3, %v955_v39, %v957_v54  ;;  %v6748_v35 = vsel %vm949_vm3, %v957_v54, %v959_v5  ;;  %v6818_v28 = vld [vmem:[#allocation3 + $0x268] sm:$0xff] }
 0x138   :  { %1966 = vst.msk [vmem:[#allocation2 + $0xd8] sm:$0xff] %vm1498_vm12, %v1944_v8  ;;  %2230 = vst.msk [vmem:[#allocation2 + $0xc8] sm:$0xff] %vm1498_vm12, %v1944_v8  ;;  %v961_v60 = vrot.slane %v6760_v48, 3  ;;  %v768_v49 = vrot.slane %v6760_v48, 4  ;;  %v967_v12 = vrot.slane %v6791_v53, 3  ;;  %vm8266_vm8 = vcmask 786051  }
 0x139   :  { %2249 = vrot.lane.b32.xlu0 %v2033_v63, %s5052_s23  ;;  %2260 = vrot.lane.b32.xlu1 %v2080_v6, %s5053_s24  ;;  %v4674_v63 = vpack.c.bf16 %v461_v11, %v459_v32  ;;  %v952_v6 = vsel %vm949_vm3, %v950_v7, %v951_v38  ;;  %v6756_v51 = vsel %vm756_vm4, %v764_v14, %v766_v42  ;;  %v963_v7 = vrot.slane %v6763_v34, 3 }
 0x13a   :  { %v1991_v26 = vpop.permute.xlu1 %1990  ;;  %4671 = vmatpush1.bf16.msra.mxu1 %v4670_v45  ;;  %v4680_v31 = vpack.c.bf16 %v952_v6, %v2353_v59  ;;  %v770_v32 = vrot.slane %v6763_v34, 4  ;;  %v6773_v11 = vsel %vm949_vm3, %v959_v5, %v961_v60  ;;  %v6781_v45 = vsel %vm756_vm4, %v766_v42, %v768_v49  ;;  %v4965_v5 = vld [vmem:[#allocation3 + $0x3b8] sm:$0xff] }
 0x13b   :  { %v1942_v30 = vpop.permute.xlu0 %1941  ;;  %2013 = vst.msk [vmem:[#allocation2 + $0xd8] sm:$0xff] %vm1548_vm13, %v1991_v26  ;;  %2241 = vst.msk [vmem:[#allocation2 + $0xc8] sm:$0xff] %vm1548_vm13, %v1991_v26  ;;  %4673 = vmatprep.subr.bf16.mxu1 %v4672_v41  ;;  %v6776_v4 = vsel %vm949_vm3, %v961_v60, %v963_v7  ;;  %v6788_v41 = vld [vmem:[#allocation3 + $0x1c0] sm:$0xff]  ;;  %v774_v38 = vrot.slane %v6791_v53, 4  ;;  %v971_v39 = vrot.slane %v6818_v28, 3  ;;  %v1144_v58 = vrot.slane %v6691_v29, 2 }
 0x13c   :  { %1965 = vst.msk [vmem:[#allocation2 + $0xc0] sm:$0xc0] %vm8263_vm5, %v1942_v30  ;;  %4681 = vmatprep.subr.bf16.mxu0 %v4680_v31  ;;  %v6784_v20 = vsel %vm756_vm4, %v768_v49, %v770_v32  ;;  %v965_v52 = vrot.slane %v6788_v41, 3  ;;  %v772_v22 = vrot.slane %v6788_v41, 4  ;;  %vm8272_vm5 = vcmask 1045504  }
 0x13d   :  { %2271 = vrot.lane.b32.xlu0 %v2127_v13, %s5054_s25  ;;  %2282 = vrot.lane.b32.xlu1 %v2174_v0, %s5055_s1  ;;  %v762_v0 = vrot.slane %v6709_v62, 4  ;;  %v985_v29 = vrot.slane %v4966_v18, 3 }
 0x13e   :  { %v2038_v17 = vpop.permute.xlu1 %2037  ;;  %v2322_v13 = vld [vmem:[#allocation2 + $0xb0] sm:$0xff]  ;;  %4675 = vmatpush1.bf16.msra.mxu1 %v4674_v63  ;;  %v6800_v26 = vsel %vm949_vm3, %v963_v7, %v965_v52  ;;  %v6803_v30 = vsel %vm949_vm3, %v965_v52, %v967_v12  ;;  %v6808_v10 = vsel %vm756_vm4, %v770_v32, %v772_v22  ;;  %v6811_v6 = vsel %vm756_vm4, %v772_v22, %v774_v38 }
 0x13f   :  { %v1989_v37 = vpop.permute.xlu0 %1988  ;;  %2060 = vst.msk [vmem:[#allocation2 + $0xd8] sm:$0xff] %vm1598_vm14, %v2038_v17  ;;  %2252 = vst.msk [vmem:[#allocation2 + $0xc8] sm:$0xff] %vm1598_vm14, %v2038_v17  ;;  %2790 = vmatprep.mubr.f32.mxu0 %v2322_v13  ;;  %3112 = vmatprep.mubr.f32.mxu1 %v2322_v13  ;;  %v6729_v16 = vsel %vm756_vm4, %v760_v3, %v762_v0  ;;  %v6753_v50 = vsel %vm756_vm4, %v762_v0, %v764_v14  ;;  %v6845_v14 = vld [vmem:[#allocation3 + $0x2d8] sm:$0xff]  ;;  %v1143_v52 = vrot.slane %v6668_v57, 2 }
 0x140   :  { %2012 = vst.msk [vmem:[#allocation2 + $0xc0] sm:$0xe0] %vm8264_vm6, %v1989_v37  ;;  %2791 = vmatmul.mubr.f32.gmra.mrb[14].mxu0 %v2321_v43  ;;  %3113 = vmatmul.mubr.f32.gmra.mrb[14].mxu1 %v2321_v43  ;;  %v975_v42 = vrot.slane %v6845_v14, 3  ;;  %vm8273_vm6 = vmmov %vm8272_vm5 }
 0x141   :  { %4677 = vmatprep.subr.bf16.mxu1 %v4676_v44  ;;  %v6815_v44 = vld [vmem:[#allocation3 + $0x230] sm:$0xff]  ;;  %1286 = vst [vmem:[#allocation3 + $0x30] sm:$0xc0] %v1143_v52 }
 0x142   :  { %v2036_v19 = vpop.permute.xlu1 %2035  ;;  %4679 = vmatpush1.bf16.msra.mxu1 %v4678_v56  ;;  %v969_v59 = vrot.slane %v6815_v44, 3  ;;  %v776_v13 = vrot.slane %v6815_v44, 4  ;;  %v778_v56 = vrot.slane %v6818_v28, 4 }
 0x143   :  { %v1899_v24 = vpop.permute.xlu0 %1898  ;;  %2059 = vst.msk [vmem:[#allocation2 + $0xc0] sm:$0xf0] %vm8265_vm7, %v2036_v19  ;;  %v6842_v19 = vld [vmem:[#allocation3 + $0x2a0] sm:$0xff]  ;;  %vm8276_vm7 = vmmov %vm8272_vm5 }
 0x144   :  { %1920 = vst.msk [vmem:[#allocation2 + $0xf0] sm:$0xff] %vm1448_vm11, %v1899_v24  ;;  %2220 = vst.msk [vmem:[#allocation2 + $0xe0] sm:$0xff] %vm1448_vm11, %v1899_v24  ;;  %v6827_v31 = vsel %vm949_vm3, %v967_v12, %v969_v59  ;;  %v6830_v3 = vsel %vm949_vm3, %v969_v59, %v971_v39  ;;  %v6835_v43 = vsel %vm756_vm4, %v774_v38, %v776_v13  ;;  %v973_v24 = vrot.slane %v6842_v19, 3  ;;  %v6871_v38 = vld [vmem:[#allocation3 + $0x310] sm:$0xff]  ;;  %v4964_v12 = vld [vmem:[#allocation3 + $0x380] sm:$0xff] }
 0x145   :  { %v6838_v54 = vsel %vm756_vm4, %v776_v13, %v778_v56  ;;  %v977_v59 = vrot.slane %v6871_v38, 3  ;;  %v784_v13 = vrot.slane %v6871_v38, 4  ;;  %v1174_v27 = vrot.slane %v4964_v12, 2 }
 0x146   :  { %v1946_v23 = vpop.permute.xlu1 %1945  ;;  %v6855_v49 = vsel %vm949_vm3, %v971_v39, %v973_v24  ;;  %v6858_v32 = vsel %vm949_vm3, %v973_v24, %v975_v42  ;;  %v6874_v39 = vld [vmem:[#allocation3 + $0x348] sm:$0xff]  ;;  %v788_v8 = vrot.slane %v4964_v12, 4 }
 0x147   :  { %v2085_v33 = vpop.permute.xlu0 %2084  ;;  %1967 = vst.msk [vmem:[#allocation2 + $0xf0] sm:$0xff] %vm1498_vm12, %v1946_v23  ;;  %2231 = vst.msk [vmem:[#allocation2 + $0xe0] sm:$0xff] %vm1498_vm12, %v1946_v23  ;;  %v780_v23 = vrot.slane %v6842_v19, 4  ;;  %v979_v57 = vrot.slane %v6874_v39, 3  ;;  %v6883_v24 = vsel %vm949_vm3, %v975_v42, %v977_v59  ;;  %v983_v42 = vrot.slane %v4965_v5, 3 }
 0x148   :  { %2107 = vst.msk [vmem:[#allocation2 + $0xd8] sm:$0xff] %vm1648_vm15, %v2085_v33  ;;  %2263 = vst.msk [vmem:[#allocation2 + $0xc8] sm:$0xff] %vm1648_vm15, %v2085_v33  ;;  %v782_v33 = vrot.slane %v6845_v14, 4  ;;  %v8067_v0 = vrot.slane %v6874_v39, 2 }
 0x14a   :  { %v2132_v46 = vpop.permute.xlu1 %2131 }
 0x14b   :  { %v2083_v61 = vpop.permute.xlu0 %2082  ;;  %2154 = vst.msk [vmem:[#allocation2 + $0xd8] sm:$0xff] %vm1698_vm0, %v2132_v46  ;;  %2274 = vst.msk [vmem:[#allocation2 + $0xc8] sm:$0xff] %vm1698_vm0, %v2132_v46  ;;  %v6864_v46 = vsel %vm756_vm4, %v778_v56, %v780_v23  ;;  %v786_v56 = vrot.slane %v6874_v39, 4 }
 0x14c   :  { %2106 = vst.msk [vmem:[#allocation2 + $0xc0] sm:$0xf8] %vm8266_vm8, %v2083_v61  ;;  %v6867_v61 = vsel %vm756_vm4, %v780_v23, %v782_v33  ;;  %v6891_v23 = vsel %vm756_vm4, %v782_v33, %v784_v13  ;;  %v790_v33 = vrot.slane %v4965_v5, 4  ;;  %vm8281_vm8 = vmmov %vm8272_vm5 }
 0x14d   :  { %8268 = vst [vmem:[#allocation9_spill] sm:$0xff] %v6891_v23  ;;  %v6894_v22 = vsel %vm756_vm4, %v784_v13, %v786_v56 }
 0x14e   :  { %v2130_v17 = vpop.permute.xlu1 %2129  ;;  %8269 = vst [vmem:[#allocation10_spill] sm:$0xff] %v6894_v22  ;;  %v1156_v22 = vrot.slane %v6763_v34, 2  ;;  %v4972_v34 = vld [vmem:[#allocation3 + $0x540] sm:$0xff] }
 0x14f   :  { %v1993_v37 = vpop.permute.xlu0 %1992  ;;  %2153 = vst.msk [vmem:[#allocation2 + $0xc0] sm:$0xfc] %vm1696_vm9, %v2130_v17  ;;  %vm8267_vm9 = vcmask 1048449  }
 0x150   :  { %2014 = vst.msk [vmem:[#allocation2 + $0xf0] sm:$0xff] %vm1548_vm13, %v1993_v37  ;;  %2242 = vst.msk [vmem:[#allocation2 + $0xe0] sm:$0xff] %vm1548_vm13, %v1993_v37 }
 0x152   :  { %v2040_v60 = vpop.permute.xlu1 %2039 }
 0x153   :  { %v2179_v7 = vpop.permute.xlu0 %2178  ;;  %2061 = vst.msk [vmem:[#allocation2 + $0xf0] sm:$0xff] %vm1598_vm14, %v2040_v60  ;;  %2253 = vst.msk [vmem:[#allocation2 + $0xe0] sm:$0xff] %vm1598_vm14, %v2040_v60  ;;  %v6886_v60 = vsel %vm949_vm3, %v977_v59, %v979_v57 }
 0x154   :  { %2201 = vst.msk [vmem:[#allocation2 + $0xd8] sm:$0xff] %vm1748_vm10, %v2179_v7  ;;  %2285 = vst.msk [vmem:[#allocation2 + $0xc8] sm:$0xff] %vm1748_vm10, %v2179_v7  ;;  %v1176_v7 = vrot.slane %v4965_v5, 2 }
 0x156   :  { %v1901_v17 = vpop.permute.xlu1 %1900 }
 0x157   :  { %v2177_v37 = vpop.permute.xlu0 %2176  ;;  %1921 = vst.msk [vmem:[#allocation2 + $0x108] sm:$0xff] %vm1448_vm11, %v1901_v17  ;;  %2221 = vst.msk [vmem:[#allocation2 + $0xf8] sm:$0xff] %vm1448_vm11, %v1901_v17 }
 0x158   :  { %2200 = vst.msk [vmem:[#allocation2 + $0xc0] sm:$0xfe] %vm8267_vm9, %v2177_v37  ;;  %v981_v37 = vrot.slane %v4964_v12, 3  ;;  %v1175_v12 = vsel %vm8272_vm5, %v8067_v0, %v1174_v27  ;;  %v4967_v0 = vld [vmem:[#allocation3 + $0x428] sm:$0xff]  ;;  %vm8282_vm9 = vmmov %vm8272_vm5 }
 0x15a   :  { %v1948_v59 = vpop.permute.xlu1 %1947  ;;  %v6904_v13 = vsel %vm949_vm3, %v979_v57, %v981_v37  ;;  %v6907_v17 = vsel %vm949_vm3, %v981_v37, %v983_v42  ;;  %v6920_v57 = vsel %vm756_vm4, %v788_v8, %v790_v33  ;;  %v1145_v37 = vsel %vm8276_vm7, %v1143_v52, %v1144_v58  ;;  %vm8288_vm7 = vmmov %vm8272_vm5 }
 0x15b   :  { %v2087_v47 = vpop.permute.xlu0 %2086  ;;  %v2325_v63 = vld [vmem:[#allocation2 + $0xc8] sm:$0xff]  ;;  %1968 = vst.msk [vmem:[#allocation2 + $0x108] sm:$0xff] %vm1498_vm12, %v1948_v59  ;;  %2232 = vst.msk [vmem:[#allocation2 + $0xf8] sm:$0xff] %vm1498_vm12, %v1948_v59  ;;  %v1177_v59 = vsel %vm8273_vm6, %v1174_v27, %v1176_v7  ;;  %v987_v27 = vrot.slane %v4967_v0, 3  ;;  %v794_v52 = vrot.slane %v4967_v0, 4 }
 0x15c   :  { %2108 = vst.msk [vmem:[#allocation2 + $0xf0] sm:$0xff] %vm1648_vm15, %v2087_v47  ;;  %2264 = vst.msk [vmem:[#allocation2 + $0xe0] sm:$0xff] %vm1648_vm15, %v2087_v47  ;;  %2796 = vmatprep.mubr.f32.mxu0 %v2325_v63  ;;  %3118 = vmatprep.mubr.f32.mxu1 %v2325_v63  ;;  %v6917_v47 = vsel %vm756_vm4, %v786_v56, %v788_v8  ;;  %v4776_v63 = vpack.c.bf16 %v1177_v59, %v1175_v12  ;;  %v1178_v56 = vrot.slane %v4966_v18, 2 }
 0x15d   :  { %8270 = vst [vmem:[#allocation11_spill] sm:$0xff] %v6904_v13  ;;  %8271 = vst [vmem:[#allocation12_spill] sm:$0xff] %v6907_v17  ;;  %v792_v17 = vrot.slane %v4966_v18, 4  ;;  %v6930_v8 = vsel %vm949_vm3, %v983_v42, %v985_v29  ;;  %v1180_v12 = vrot.slane %v4967_v0, 2  ;;  %v6933_v59 = vsel %vm949_vm3, %v985_v29, %v987_v27  ;;  %v4968_v29 = vld [vmem:[#allocation3 + $0x460] sm:$0xff] }
 0x15e   :  { %8274 = vst [vmem:[#allocation13_spill] sm:$0xff] %v6917_v47  ;;  %8275 = vst [vmem:[#allocation15_spill] sm:$0xff] %v6920_v57  ;;  %v1995_v1 = vpop.permute.xlu1 %1994  ;;  %4777 = vmatprep.subr.bf16.mxu1 %v4776_v63  ;;  %v1148_v13 = vrot.slane %v6709_v62, 2  ;;  %v6946_v18 = vsel %vm8281_vm8, %v1176_v7, %v1178_v56  ;;  %v1152_v7 = vrot.slane %v6736_v2, 2 }
 0x15f   :  { %v2134_v55 = vpop.permute.xlu0 %2133  ;;  %v2324_v5 = vld [vmem:[#allocation2 + $0xc0] sm:$0xff]  ;;  %1287 = vst [vmem:[#allocation3 + $0x68] sm:$0xff] %v1145_v37  ;;  %2015 = vst.msk [vmem:[#allocation2 + $0x108] sm:$0xff] %vm1548_vm13, %v1995_v1  ;;  %v6936_v37 = vsel %vm756_vm4, %v790_v33, %v792_v17  ;;  %v6943_v42 = vsel %vm756_vm4, %v792_v17, %v794_v52  ;;  %v6949_v0 = vsel %vm8282_vm9, %v1178_v56, %v1180_v12  ;;  %v989_v56 = vrot.slane %v4968_v29, 3  ;;  %v4969_v33 = vld [vmem:[#allocation3 + $0x498] sm:$0xff] }
 0x160   :  { %2243 = vst.msk [vmem:[#allocation2 + $0xf8] sm:$0xff] %vm1548_vm13, %v1995_v1  ;;  %2797 = vmatmul.mubr.f32.gmra.mrb[16].mxu0 %v2324_v5  ;;  %3119 = vmatmul.mubr.f32.gmra.mrb[16].mxu1 %v2324_v5  ;;  %8277 = vst [vmem:[#allocation16_spill] sm:$0xff] %v6930_v8  ;;  %v1146_v1 = vrot.slane %v6706_v21, 2  ;;  %v798_v21 = vrot.slane %v4969_v33, 4 }
 0x161   :  { %2155 = vst.msk [vmem:[#allocation2 + $0xf0] sm:$0xff] %vm1698_vm0, %v2134_v55  ;;  %2275 = vst.msk [vmem:[#allocation2 + $0xe0] sm:$0xff] %vm1698_vm0, %v2134_v55  ;;  %v991_v55 = vrot.slane %v4969_v33, 3  ;;  %v6969_v8 = vsel %vm949_vm3, %v987_v27, %v989_v56 }
 0x162   :  { %8278 = vst [vmem:[#allocation21_spill] sm:$0xff] %v6933_v59  ;;  %8279 = vst [vmem:[#allocation17_spill] sm:$0xff] %v6936_v37  ;;  %v2042_v5 = vpop.permute.xlu1 %2041  ;;  %v6956_v62 = vsel %vm8272_vm5, %v1144_v58, %v1146_v1  ;;  %v796_v58 = vrot.slane %v4968_v29, 4  ;;  %v1182_v37 = vrot.slane %v4968_v29, 2 }
 0x163   :  { %8280 = vst [vmem:[#allocation18_spill] sm:$0xff] %v6943_v42  ;;  %v2181_v63 = vpop.permute.xlu0 %2180  ;;  %vm8283_vm6 = vmmov %vm8272_vm5  ;;  %v1150_v42 = vrot.slane %v6733_v40, 2 }
 0x164   :  { %v6959_v17 = vsel %vm8283_vm6, %v1146_v1, %v1148_v13  ;;  %2062 = vst.msk [vmem:[#allocation2 + $0x108] sm:$0xff] %vm1598_vm14, %v2042_v5  ;;  %2254 = vst.msk [vmem:[#allocation2 + $0xf8] sm:$0xff] %vm1598_vm14, %v2042_v5  ;;  %v1184_v1 = vrot.slane %v4969_v33, 2  ;;  %v6972_v5 = vsel %vm949_vm3, %v989_v56, %v991_v55  ;;  %v6981_v33 = vsel %vm756_vm4, %v796_v58, %v798_v21 }
 0x165   :  { %2202 = vst.msk [vmem:[#allocation2 + $0xf0] sm:$0xff] %vm1748_vm10, %v2181_v63  ;;  %2286 = vst.msk [vmem:[#allocation2 + $0xe0] sm:$0xff] %vm1748_vm10, %v2181_v63  ;;  %v6975_v63 = vsel %vm756_vm4, %v794_v52, %v796_v58  ;;  %v6984_v40 = vsel %vm8288_vm7, %v1180_v12, %v1182_v37  ;;  %v4971_v58 = vld [vmem:[#allocation3 + $0x508] sm:$0xff] }
 0x166   :  { %8284 = vst [vmem:[#allocation22_spill] sm:$0xff] %v6969_v8  ;;  %8285 = vst [vmem:[#allocation23_spill] sm:$0xff] %v6972_v5  ;;  %v2089_v59 = vpop.permute.xlu1 %2088  ;;  %v995_v57 = vrot.slane %v4971_v58, 3  ;;  %v802_v8 = vrot.slane %v4971_v58, 4  ;;  %v1188_v2 = vrot.slane %v4971_v58, 2 }
 0x167   :  { %8286 = vst [vmem:[#allocation19_spill] sm:$0xff] %v6975_v63  ;;  %v1903_v47 = vpop.permute.xlu0 %1902  ;;  %8287 = vst [vmem:[#allocation20_spill] sm:$0xff] %v6981_v33  ;;  %v1154_v63 = vrot.slane %v6760_v48, 2  ;;  %v2327_v48 = vld [vmem:[#allocation2 + $0xd8] sm:$0xff] }
 0x168   :  { %vm8289_vm8 = vmmov %vm8272_vm5  ;;  %2109 = vst.msk [vmem:[#allocation2 + $0x108] sm:$0xff] %vm1648_vm15, %v2089_v59 }
 0x169   :  { %v6987_v27 = vsel %vm8289_vm8, %v1182_v37, %v1184_v1  ;;  %2265 = vst.msk [vmem:[#allocation2 + $0xf8] sm:$0xff] %vm1648_vm15, %v2089_v59  ;;  %vm8290_vm9 = vmmov %vm8272_vm5  ;;  %v7001_v37 = vsel %vm8272_vm5, %v1150_v42, %v1152_v7  ;;  %v4970_v59 = vld [vmem:[#allocation3 + $0x4d0] sm:$0xff] }
 0x16a   :  { %1922 = vst.msk [vmem:[#allocation2 + $0x120] sm:$0xff] %vm1448_vm11, %v1903_v47  ;;  %2222 = vst.msk [vmem:[#allocation2 + $0x110] sm:$0xff] %vm1448_vm11, %v1903_v47  ;;  %v6998_v12 = vsel %vm8290_vm9, %v1148_v13, %v1150_v42  ;;  %v993_v56 = vrot.slane %v4970_v59, 3  ;;  %v800_v47 = vrot.slane %v4970_v59, 4  ;;  %v1186_v5 = vrot.slane %v4970_v59, 2  ;;  %v2136_v52 = vpop.permute.xlu1 %2135 }
 0x16b   :  { %v1950_v33 = vpop.permute.xlu0 %1949  ;;  %2156 = vst.msk [vmem:[#allocation2 + $0x108] sm:$0xff] %vm1698_vm0, %v2136_v52  ;;  %2276 = vst.msk [vmem:[#allocation2 + $0xf8] sm:$0xff] %vm1698_vm0, %v2136_v52 }
 0x16c   :  { %v2328_v13 = vld [vmem:[#allocation2 + $0xe0] sm:$0xff]  ;;  %v7007_v23 = vsel %vm949_vm3, %v991_v55, %v993_v56  ;;  %v7010_v42 = vsel %vm949_vm3, %v993_v56, %v995_v57  ;;  %v7013_v29 = vsel %vm756_vm4, %v798_v21, %v800_v47  ;;  %1969 = vst.msk [vmem:[#allocation2 + $0x120] sm:$0xff] %vm1498_vm12, %v1950_v33  ;;  %2233 = vst.msk [vmem:[#allocation2 + $0x110] sm:$0xff] %vm1498_vm12, %v1950_v33  ;;  %v997_v56 = vrot.slane %v4972_v34, 3 }
 0x16d   :  { %8291 = vst [vmem:[#allocation26_spill] sm:$0xff] %v7007_v23  ;;  %8292 = vst [vmem:[#allocation27_spill] sm:$0xff] %v7010_v42  ;;  %2802 = vmatprep.mubr.f32.mxu0 %v2328_v13  ;;  %3124 = vmatprep.mubr.f32.mxu1 %v2328_v13  ;;  %v7023_v59 = vsel %vm756_vm4, %v800_v47, %v802_v8  ;;  %v4973_v13 = vld [vmem:[#allocation3 + $0x578] sm:$0xff] }
 0x16e   :  { %8293 = vst [vmem:[#allocation24_spill] sm:$0xff] %v7013_v29  ;;  %8294 = vst [vmem:[#allocation25_spill] sm:$0xff] %v7023_v59  ;;  %2803 = vmatmul.mubr.f32.gmra.mrb[18].mxu0 %v2327_v48  ;;  %3125 = vmatmul.mubr.f32.gmra.mrb[18].mxu1 %v2327_v48  ;;  %v999_v55 = vrot.slane %v4973_v13, 3  ;;  %v7042_v23 = vsel %vm949_vm3, %v995_v57, %v997_v56  ;;  %v804_v48 = vrot.slane %v4972_v34, 4  ;;  %v2183_v42 = vpop.permute.xlu1 %2182  ;;  %v806_v29 = vrot.slane %v4973_v13, 4 }
 0x16f   :  { %vm8295_vm6 = vmmov %vm8272_vm5  ;;  %8301 = vst [vmem:[#allocation30_spill] sm:$0xff] %v7042_v23  ;;  %v1997_v52 = vpop.permute.xlu0 %1996  ;;  %v1190_v59 = vrot.slane %v4972_v34, 2 }
 0x170   :  { %v7026_v21 = vsel %vm8295_vm6, %v1184_v1, %v1186_v5  ;;  %vm8296_vm7 = vmmov %vm8272_vm5  ;;  %2203 = vst.msk [vmem:[#allocation2 + $0x108] sm:$0xff] %vm1748_vm10, %v2183_v42  ;;  %v7060_v47 = vsel %vm756_vm4, %v804_v48, %v806_v29 }
 0x171   :  { %v7031_v33 = vsel %vm8296_vm7, %v1186_v5, %v1188_v2  ;;  %vm8297_vm8 = vmmov %vm8272_vm5  ;;  %2287 = vst.msk [vmem:[#allocation2 + $0xf8] sm:$0xff] %vm1748_vm10, %v2183_v42  ;;  %v1192_v5 = vrot.slane %v4973_v13, 2  ;;  %v7063_v34 = vsel %vm8272_vm5, %v1188_v2, %v1190_v59  ;;  %v1160_v42 = vrot.slane %v6791_v53, 2 }
 0x172   :  { %v7034_v58 = vsel %vm8297_vm8, %v1152_v7, %v1154_v63  ;;  %vm8299_vm9 = vmmov %vm8272_vm5  ;;  %v7047_v7 = vsel %vm949_vm3, %v997_v56, %v999_v55  ;;  %2016 = vst.msk [vmem:[#allocation2 + $0x120] sm:$0xff] %vm1548_vm13, %v1997_v52  ;;  %v1158_v56 = vrot.slane %v6788_v41, 2  ;;  %v4975_v41 = vld [vmem:[#allocation3 + $0x5e8] sm:$0xff] }
 0x173   :  { %8298 = vst [vmem:[#allocation28_spill] sm:$0xff] %v7034_v58  ;;  %v7039_v1 = vsel %vm8299_vm9, %v1154_v63, %v1156_v22  ;;  %8302 = vst [vmem:[#allocation31_spill] sm:$0xff] %v7047_v7  ;;  %v7056_v63 = vsel %vm756_vm4, %v802_v8, %v804_v48  ;;  %v4974_v58 = vld [vmem:[#allocation3 + $0x5b0] sm:$0xff]  ;;  %v1003_v13 = vrot.slane %v4975_v41, 3  ;;  %v1905_v48 = vpop.permute.xlu1 %1904  ;;  %v2044_v23 = vpop.permute.xlu0 %2043 }
 0x174   :  { %8300 = vst [vmem:[#allocation29_spill] sm:$0xff] %v7039_v1  ;;  %2244 = vst.msk [vmem:[#allocation2 + $0x110] sm:$0xff] %vm1548_vm13, %v1997_v52  ;;  %v1001_v1 = vrot.slane %v4974_v58, 3  ;;  %v808_v52 = vrot.slane %v4974_v58, 4  ;;  %v1194_v2 = vrot.slane %v4974_v58, 2 }
 0x175   :  { %8303 = vst [vmem:[#allocation32_spill] sm:$0xff] %v7056_v63  ;;  %8304 = vst [vmem:[#allocation33_spill] sm:$0xff] %v7060_v47  ;;  %v1196_v47 = vrot.slane %v4975_v41, 2 }
 0x176   :  { %8305 = vst [vmem:[#allocation7_spill] sm:$0xff] %v7063_v34  ;;  %vm8306_vm6 = vmmov %vm8272_vm5  ;;  %v7080_v7 = vsel %vm949_vm3, %v999_v55, %v1001_v1  ;;  %v7094_v63 = vsel %vm756_vm4, %v806_v29, %v808_v52 }
 0x177   :  { %v7069_v57 = vsel %vm8306_vm6, %v1190_v59, %v1192_v5  ;;  %vm8308_vm7 = vmmov %vm8272_vm5  ;;  %8312 = vst [vmem:[#allocation35_spill] sm:$0xff] %v7080_v7  ;;  %v7089_v59 = vsel %vm949_vm3, %v1001_v1, %v1003_v13  ;;  %v1164_v1 = vrot.slane %v6818_v28, 2  ;;  %v1952_v58 = vpop.permute.xlu1 %1951  ;;  %v2330_v28 = vld [vmem:[#allocation2 + $0xf0] sm:$0xff] }
 0x178   :  { %8307 = vst [vmem:[#allocation8_spill] sm:$0xff] %v7069_v57  ;;  %v7072_v8 = vsel %vm8308_vm7, %v1156_v22, %v1158_v56  ;;  %vm8310_vm8 = vmmov %vm8272_vm5  ;;  %v4976_v22 = vld [vmem:[#allocation3 + $0x620] sm:$0xff]  ;;  %v2331_v57 = vld [vmem:[#allocation2 + $0xf8] sm:$0xff] }
 0x179   :  { %8309 = vst [vmem:[#allocation14_spill] sm:$0xff] %v7072_v8  ;;  %v7077_v53 = vsel %vm8310_vm8, %v1158_v56, %v1160_v42  ;;  %1923 = vst.msk [vmem:[#allocation2 + $0x138] sm:$0xff] %vm1448_vm11, %v1905_v48  ;;  %v810_v56 = vrot.slane %v4975_v41, 4  ;;  %v1005_v8 = vrot.slane %v4976_v22, 3  ;;  %v7107_v41 = vsel %vm8272_vm5, %v1194_v2, %v1196_v47  ;;  %2808 = vmatprep.mubr.f32.mxu0 %v2331_v57 }
 0x17a   :  { %8311 = vst [vmem:[#allocation34_spill] sm:$0xff] %v7077_v53  ;;  %2223 = vst.msk [vmem:[#allocation2 + $0x128] sm:$0xff] %vm1448_vm11, %v1905_v48  ;;  %v1162_v48 = vrot.slane %v6815_v44, 2  ;;  %v2091_v53 = vpop.permute.xlu0 %2090  ;;  %3130 = vmatprep.mubr.f32.mxu1 %v2331_v57  ;;  %v812_v29 = vrot.slane %v4976_v22, 4  ;;  %2809 = vmatmul.mubr.f32.gmra.mrb[20].mxu0 %v2330_v28 }
 0x17b   :  { %2063 = vst.msk [vmem:[#allocation2 + $0x120] sm:$0xff] %vm1598_vm14, %v2044_v23  ;;  %2255 = vst.msk [vmem:[#allocation2 + $0x110] sm:$0xff] %vm1598_vm14, %v2044_v23  ;;  %v7098_v34 = vsel %vm756_vm4, %v808_v52, %v810_v56  ;;  %v4977_v52 = vld [vmem:[#allocation3 + $0x658] sm:$0xff]  ;;  %3131 = vmatmul.mubr.f32.gmra.mrb[20].mxu1 %v2330_v28  ;;  %v1999_v7 = vpop.permute.xlu1 %1998 }
 0x17c   :  { %8313 = vst [vmem:[#allocation36_spill] sm:$0xff] %v7089_v59  ;;  %8314 = vst [vmem:[#allocation37_spill] sm:$0xff] %v7094_v63  ;;  %v1007_v55 = vrot.slane %v4977_v52, 3  ;;  %v814_v57 = vrot.slane %v4977_v52, 4  ;;  %v1198_v63 = vrot.slane %v4976_v22, 2  ;;  %v4978_v22 = vld [vmem:[#allocation3 + $0x690] sm:$0xff] }
 0x17d   :  { %8315 = vst [vmem:[#allocation38_spill] sm:$0xff] %v7098_v34  ;;  %vm8316_vm9 = vmmov %vm8272_vm5  ;;  %v1200_v34 = vrot.slane %v4977_v52, 2 }
 0x17e   :  { %v7101_v23 = vsel %vm8316_vm9, %v1192_v5, %v1194_v2  ;;  %vm8317_vm6 = vmmov %vm8272_vm5  ;;  %1970 = vst.msk [vmem:[#allocation2 + $0x138] sm:$0xff] %vm1498_vm12, %v1952_v58  ;;  %v2138_v59 = vpop.permute.xlu0 %2137  ;;  %v7136_v28 = vsel %vm756_vm4, %v812_v29, %v814_v57 }
 0x17f   :  { %v7110_v44 = vsel %vm8317_vm6, %v1160_v42, %v1162_v48  ;;  %2234 = vst.msk [vmem:[#allocation2 + $0x128] sm:$0xff] %vm1498_vm12, %v1952_v58  ;;  %vm8319_vm7 = vmmov %vm8272_vm5  ;;  %v7122_v42 = vsel %vm949_vm3, %v1003_v13, %v1005_v8  ;;  %v1166_v13 = vrot.slane %v6842_v19, 2  ;;  %v816_v19 = vrot.slane %v4978_v22, 4 }
 0x180   :  { %8318 = vst [vmem:[#allocation39_spill] sm:$0xff] %v7110_v44  ;;  %2110 = vst.msk [vmem:[#allocation2 + $0x120] sm:$0xff] %vm1648_vm15, %v2091_v53  ;;  %v7119_v2 = vsel %vm8319_vm7, %v1162_v48, %v1164_v1  ;;  %v7132_v48 = vsel %vm756_vm4, %v810_v56, %v812_v29  ;;  %v1009_v44 = vrot.slane %v4978_v22, 3 }
 0x181   :  { %2266 = vst.msk [vmem:[#allocation2 + $0x110] sm:$0xff] %vm1648_vm15, %v2091_v53  ;;  %8320 = vst [vmem:[#allocation40_spill] sm:$0xff] %v7122_v42  ;;  %v7127_v53 = vsel %vm949_vm3, %v1005_v8, %v1007_v55  ;;  %v1168_v8 = vrot.slane %v6845_v14, 2  ;;  %v7154_v14 = vld [vmem:[#allocation3 + $0x6c8] sm:$0xff] }
 0x182   :  { %8321 = vst [vmem:[#allocation41_spill] sm:$0xff] %v7127_v53  ;;  %8322 = vst [vmem:[#allocation42_spill] sm:$0xff] %v7132_v48  ;;  %v1011_v29 = vrot.slane %v7154_v14, 3  ;;  %v818_v5 = vrot.slane %v7154_v14, 4  ;;  %v1202_v48 = vrot.slane %v4978_v22, 2  ;;  %v2185_v42 = vpop.permute.xlu0 %2184  ;;  %v1170_v53 = vrot.slane %v6871_v38, 2 }
 0x183   :  { %8323 = vst [vmem:[#allocation43_spill] sm:$0xff] %v7136_v28  ;;  %vm8324_vm8 = vmmov %vm8272_vm5  ;;  %v2046_v28 = vpop.permute.xlu1 %2045 }
 0x184   :  { %v7139_v58 = vsel %vm8324_vm8, %v1196_v47, %v1198_v63  ;;  %2017 = vst.msk [vmem:[#allocation2 + $0x138] sm:$0xff] %vm1548_vm13, %v1999_v7  ;;  %2245 = vst.msk [vmem:[#allocation2 + $0x128] sm:$0xff] %vm1548_vm13, %v1999_v7  ;;  %v7152_v47 = vsel %vm8272_vm5, %v1164_v1, %v1166_v13  ;;  %v7168_v1 = vsel %vm949_vm3, %v1009_v44, %v1011_v29 }
 0x185   :  { %8325 = vst [vmem:[#allocation44_spill] sm:$0xff] %v7139_v58  ;;  %2157 = vst.msk [vmem:[#allocation2 + $0x120] sm:$0xff] %vm1698_vm0, %v2138_v59 }
 0x186   :  { %2277 = vst.msk [vmem:[#allocation2 + $0x110] sm:$0xff] %vm1698_vm0, %v2138_v59  ;;  %vm8326_vm9 = vmmov %vm8272_vm5  ;;  %v7163_v59 = vsel %vm949_vm3, %v1007_v55, %v1009_v44  ;;  %v8107_v55 = vrot.slane %v7154_v14, 2  ;;  %v7183_v44 = vsel %vm756_vm4, %v816_v19, %v818_v5 }
 0x187   :  { %v7149_v56 = vsel %vm8326_vm9, %v1198_v63, %v1200_v34  ;;  %8327 = vst [vmem:[#allocation45_spill] sm:$0xff] %v7152_v47  ;;  %vm8328_vm6 = vmmov %vm8272_vm5  ;;  %v7191_v63 = vld [vmem:[#allocation3 + $0x738] sm:$0xff] }
 0x188   :  { %v7160_v52 = vsel %vm8328_vm6, %v1166_v13, %v1168_v8  ;;  %8330 = vst [vmem:[#allocation47_spill] sm:$0xff] %v7163_v59  ;;  %8331 = vst [vmem:[#allocation48_spill] sm:$0xff] %v7168_v1  ;;  %v7174_v13 = vsel %vm756_vm4, %v814_v57, %v816_v19  ;;  %v7188_v57 = vld [vmem:[#allocation3 + $0x700] sm:$0xff]  ;;  %v1015_v38 = vrot.slane %v7191_v63, 3 }
 0x189   :  { %8329 = vst [vmem:[#allocation46_spill] sm:$0xff] %v7160_v52  ;;  %8332 = vst [vmem:[#allocation49_spill] sm:$0xff] %v7174_v13  ;;  %v1013_v7 = vrot.slane %v7188_v57, 3  ;;  %v7223_v13 = vld [vmem:[#allocation3 + $0x770] sm:$0xff] }
 0x18a   :  { %2064 = vst.msk [vmem:[#allocation2 + $0x138] sm:$0xff] %vm1598_vm14, %v2046_v28  ;;  %2256 = vst.msk [vmem:[#allocation2 + $0x128] sm:$0xff] %vm1598_vm14, %v2046_v28  ;;  %v1017_v1 = vrot.slane %v7223_v13, 3 }
 0x18b   :  { %2204 = vst.msk [vmem:[#allocation2 + $0x120] sm:$0xff] %vm1748_vm10, %v2185_v42  ;;  %2288 = vst.msk [vmem:[#allocation2 + $0x110] sm:$0xff] %vm1748_vm10, %v2185_v42  ;;  %v7214_v28 = vsel %vm949_vm3, %v1011_v29, %v1013_v7  ;;  %v7230_v29 = vld [vmem:[#allocation3 + $0x7a8] sm:$0xff] }
 0x18c   :  { %8333 = vst [vmem:[#allocation50_spill] sm:$0xff] %v7183_v44  ;;  %vm8334_vm7 = vmmov %vm8272_vm5  ;;  %v826_v44 = vrot.slane %v7230_v29, 4 }
 0x18d   :  { %v7186_v22 = vsel %vm8334_vm7, %v1200_v34, %v1202_v48  ;;  %vm8336_vm8 = vmmov %vm8272_vm5  ;;  %v8340_v34 = vrot.slane %v6874_v39, 2  ;;  %8342 = vst [vmem:[#allocation55_spill] sm:$0xff] %v7214_v28  ;;  %v7240_v28 = vsel %vm949_vm3, %v1015_v38, %v1017_v1 }
 0x18e   :  { %8335 = vst [vmem:[#allocation51_spill] sm:$0xff] %v7186_v22  ;;  %v7199_v42 = vsel %vm8336_vm8, %v1202_v48, %v8107_v55  ;;  %vm8338_vm9 = vmmov %vm8272_vm5  ;;  %v7217_v48 = vsel %vm949_vm3, %v1013_v7, %v1015_v38  ;;  %v2093_v55 = vpop.permute.xlu1 %2092  ;;  %v1019_v7 = vrot.slane %v7230_v29, 3  ;;  %v7308_v22 = vld [vmem:[#allocation3 + $0x888] sm:$0xff]  ;;  %vm8377_vm8 = vcmask 390400  }
 0x18f   :  { %8337 = vst [vmem:[#allocation52_spill] sm:$0xff] %v7199_v42  ;;  %v7202_v19 = vsel %vm8338_vm9, %v1168_v8, %v1170_v53  ;;  %v7207_v59 = vsel %vm8272_vm5, %v1170_v53, %v8340_v34  ;;  %8343 = vst [vmem:[#allocation56_spill] sm:$0xff] %v7217_v48  ;;  %v1907_v8 = vpop.permute.xlu0 %1906  ;;  %v820_v53 = vrot.slane %v7188_v57, 4  ;;  %v822_v34 = vrot.slane %v7191_v63, 4  ;;  %v7348_v42 = vld [vmem:[#allocation3 + $0x8f8] sm:$0xff] }
 0x190   :  { %8339 = vst [vmem:[#allocation53_spill] sm:$0xff] %v7202_v19  ;;  %8341 = vst [vmem:[#allocation54_spill] sm:$0xff] %v7207_v59  ;;  %v7245_v48 = vsel %vm949_vm3, %v1017_v1, %v1019_v7  ;;  %v7259_v1 = vld [vmem:[#allocation2 + $0x108] sm:$0xff]  ;;  %vm8384_vm9 = vcmask 520576  }
 0x191   :  { %2111 = vst.msk [vmem:[#allocation2 + $0x138] sm:$0xff] %vm1648_vm15, %v2093_v55  ;;  %2267 = vst.msk [vmem:[#allocation2 + $0x128] sm:$0xff] %vm1648_vm15, %v2093_v55  ;;  %v7234_v39 = vsel %vm756_vm4, %v818_v5, %v820_v53  ;;  %v7237_v47 = vsel %vm756_vm4, %v820_v53, %v822_v34 }
 0x192   :  { %1924 = vst.msk [vmem:[#allocation2 + $0x150] sm:$0xff] %vm1448_vm11, %v1907_v8  ;;  %2224 = vst.msk [vmem:[#allocation2 + $0x140] sm:$0xff] %vm1448_vm11, %v1907_v8  ;;  %v824_v8 = vrot.slane %v7223_v13, 4  ;;  %v2140_v19 = vpop.permute.xlu1 %2139  ;;  %v7249_v5 = vld [vmem:[#allocation2 + $0x110] sm:$0xff] }
 0x193   :  { %8344 = vst [vmem:[#allocation57_spill] sm:$0xff] %v7234_v39  ;;  %8345 = vst [vmem:[#allocation58_spill] sm:$0xff] %v7237_v47  ;;  %v1954_v59 = vpop.permute.xlu0 %1953  ;;  %2814 = vmatprep.mubr.f32.mxu0 %v7249_v5  ;;  %3136 = vmatprep.mubr.f32.mxu1 %v7249_v5 }
 0x194   :  { %8346 = vst [vmem:[#allocation59_spill] sm:$0xff] %v7240_v28  ;;  %8347 = vst [vmem:[#allocation60_spill] sm:$0xff] %v7245_v48  ;;  %v7262_v38 = vsel %vm756_vm4, %v822_v34, %v824_v8  ;;  %v7265_v55 = vsel %vm756_vm4, %v824_v8, %v826_v44  ;;  %2815 = vmatmul.mubr.f32.gmra.mrb[22].mxu0 %v7259_v1  ;;  %3137 = vmatmul.mubr.f32.gmra.mrb[22].mxu1 %v7259_v1  ;;  %v7271_v28 = vld [vmem:[#allocation3 + $0x7e0] sm:$0xff]  ;;  %v7274_v48 = vld [vmem:[#allocation3 + $0x818] sm:$0xff] }
 0x195   :  { %8348 = vst [vmem:[#allocation61_spill] sm:$0xff] %v7249_v5  ;;  %2158 = vst.msk [vmem:[#allocation2 + $0x138] sm:$0xff] %vm1698_vm0, %v2140_v19  ;;  %v1021_v5 = vrot.slane %v7271_v28, 3  ;;  %v1023_v34 = vrot.slane %v7274_v48, 3 }
 0x196   :  { %2278 = vst.msk [vmem:[#allocation2 + $0x128] sm:$0xff] %vm1698_vm0, %v2140_v19  ;;  %8349 = vst [vmem:[#allocation62_spill] sm:$0xff] %v7259_v1 }
 0x197   :  { %1971 = vst.msk [vmem:[#allocation2 + $0x150] sm:$0xff] %vm1498_vm12, %v1954_v59  ;;  %2235 = vst.msk [vmem:[#allocation2 + $0x140] sm:$0xff] %vm1498_vm12, %v1954_v59  ;;  %v2187_v59 = vpop.permute.xlu1 %2186  ;;  %v2001_v53 = vpop.permute.xlu0 %2000  ;;  %v7282_v8 = vsel %vm949_vm3, %v1019_v7, %v1021_v5  ;;  %v7285_v19 = vsel %vm949_vm3, %v1021_v5, %v1023_v34 }
 0x198   :  { %8350 = vst [vmem:[#allocation63_spill] sm:$0xff] %v7262_v38  ;;  %8351 = vst [vmem:[#allocation64_spill] sm:$0xff] %v7265_v55  ;;  %v828_v38 = vrot.slane %v7271_v28, 4  ;;  %v830_v55 = vrot.slane %v7274_v48, 4 }
 0x199   :  { %2205 = vst.msk [vmem:[#allocation2 + $0x138] sm:$0xff] %vm1748_vm10, %v2187_v59  ;;  %2289 = vst.msk [vmem:[#allocation2 + $0x128] sm:$0xff] %vm1748_vm10, %v2187_v59 }
 0x19a   :  { %2018 = vst.msk [vmem:[#allocation2 + $0x150] sm:$0xff] %vm1548_vm13, %v2001_v53  ;;  %2246 = vst.msk [vmem:[#allocation2 + $0x140] sm:$0xff] %vm1548_vm13, %v2001_v53  ;;  %v7296_v7 = vsel %vm756_vm4, %v826_v44, %v828_v38  ;;  %v7299_v5 = vsel %vm756_vm4, %v828_v38, %v830_v55  ;;  %v7317_v44 = vld [vmem:[#allocation2 + $0x120] sm:$0xff] }
 0x19b   :  { %8352 = vst [vmem:[#allocation65_spill] sm:$0xff] %v7282_v8  ;;  %8353 = vst [vmem:[#allocation66_spill] sm:$0xff] %v7285_v19  ;;  %v2048_v39 = vpop.permute.xlu0 %2047  ;;  %v1909_v47 = vpop.permute.xlu1 %1908  ;;  %v7305_v19 = vld [vmem:[#allocation3 + $0x850] sm:$0xff] }
 0x19c   :  { %2065 = vst.msk [vmem:[#allocation2 + $0x150] sm:$0xff] %vm1598_vm14, %v2048_v39  ;;  %2257 = vst.msk [vmem:[#allocation2 + $0x140] sm:$0xff] %vm1598_vm14, %v2048_v39  ;;  %v1025_v39 = vrot.slane %v7305_v19, 3 }
 0x19d   :  { %1925 = vst.msk [vmem:[#allocation2 + $0x168] sm:$0xff] %vm1448_vm11, %v1909_v47  ;;  %2225 = vst.msk [vmem:[#allocation2 + $0x158] sm:$0xff] %vm1448_vm11, %v1909_v47  ;;  %v1027_v47 = vrot.slane %v7308_v22, 3 }
 0x19e   :  { %8354 = vst [vmem:[#allocation67_spill] sm:$0xff] %v7296_v7  ;;  %8355 = vst [vmem:[#allocation68_spill] sm:$0xff] %v7299_v5  ;;  %v7322_v38 = vsel %vm949_vm3, %v1023_v34, %v1025_v39  ;;  %v834_v7 = vrot.slane %v7308_v22, 4 }
 0x19f   :  { %v2095_v59 = vpop.permute.xlu0 %2094  ;;  %v1956_v1 = vpop.permute.xlu1 %1955  ;;  %8357 = vst [vmem:[#allocation70_spill] sm:$0xff] %v7317_v44  ;;  %8358 = vst [vmem:[#allocation71_spill] sm:$0xff] %v7322_v38  ;;  %v7325_v53 = vsel %vm949_vm3, %v1025_v39, %v1027_v47  ;;  %v1208_v38 = vrot.slane %v7191_v63, 2  ;;  %v8362_v39 = vrot.slane %v7154_v14, 2 }
 0x1a0   :  { %v7303_v8 = vld [vmem:[#allocation2 + $0x128] sm:$0xff]  ;;  %2112 = vst.msk [vmem:[#allocation2 + $0x150] sm:$0xff] %vm1648_vm15, %v2095_v59  ;;  %2268 = vst.msk [vmem:[#allocation2 + $0x140] sm:$0xff] %vm1648_vm15, %v2095_v59  ;;  %v1206_v59 = vrot.slane %v7188_v57, 2 }
 0x1a1   :  { %8356 = vst [vmem:[#allocation69_spill] sm:$0xff] %v7303_v8  ;;  %1972 = vst.msk [vmem:[#allocation2 + $0x168] sm:$0xff] %vm1498_vm12, %v1956_v1  ;;  %2820 = vmatprep.mubr.f32.mxu0 %v7303_v8  ;;  %3142 = vmatprep.mubr.f32.mxu1 %v7303_v8 }
 0x1a2   :  { %2236 = vst.msk [vmem:[#allocation2 + $0x158] sm:$0xff] %vm1498_vm12, %v1956_v1  ;;  %2821 = vmatmul.mubr.f32.gmra.mrb[24].mxu0 %v7317_v44  ;;  %3143 = vmatmul.mubr.f32.gmra.mrb[24].mxu1 %v7317_v44  ;;  %8359 = vst [vmem:[#allocation72_spill] sm:$0xff] %v7325_v53  ;;  %v832_v1 = vrot.slane %v7305_v19, 4 }
 0x1a3   :  { %v2142_v8 = vpop.permute.xlu0 %2141  ;;  %v2003_v5 = vpop.permute.xlu1 %2002  ;;  %vm8363_vm11 = vmmov %vm8272_vm5 }
 0x1a4   :  { %2159 = vst.msk [vmem:[#allocation2 + $0x150] sm:$0xff] %vm1698_vm0, %v2142_v8  ;;  %2279 = vst.msk [vmem:[#allocation2 + $0x140] sm:$0xff] %vm1698_vm0, %v2142_v8  ;;  %v7334_v44 = vsel %vm756_vm4, %v830_v55, %v832_v1  ;;  %v7337_v34 = vsel %vm756_vm4, %v832_v1, %v834_v7  ;;  %v7345_v8 = vld [vmem:[#allocation3 + $0x8c0] sm:$0xff]  ;;  %v1031_v1 = vrot.slane %v7348_v42, 3  ;;  %v1207_v57 = vsel %vm8363_vm11, %v8362_v39, %v1206_v59 }
 0x1a5   :  { %8360 = vst [vmem:[#allocation73_spill] sm:$0xff] %v7334_v44  ;;  %8361 = vst [vmem:[#allocation74_spill] sm:$0xff] %v7337_v34  ;;  %v1029_v55 = vrot.slane %v7345_v8, 3  ;;  %v836_v14 = vrot.slane %v7345_v8, 4  ;;  %v838_v39 = vrot.slane %v7348_v42, 4 }
 0x1a6   :  { %2019 = vst.msk [vmem:[#allocation2 + $0x168] sm:$0xff] %vm1548_vm13, %v2003_v5  ;;  %2247 = vst.msk [vmem:[#allocation2 + $0x158] sm:$0xff] %vm1548_vm13, %v2003_v5 }
 0x1a7   :  { %v2189_v53 = vpop.permute.xlu0 %2188  ;;  %v2050_v5 = vpop.permute.xlu1 %2049  ;;  %vm8364_vm12 = vmmov %vm8272_vm5  ;;  %v7360_v44 = vsel %vm949_vm3, %v1027_v47, %v1029_v55  ;;  %v7363_v34 = vsel %vm949_vm3, %v1029_v55, %v1031_v1  ;;  %v7376_v55 = vsel %vm756_vm4, %v834_v7, %v836_v14 }
 0x1a8   :  { %2206 = vst.msk [vmem:[#allocation2 + $0x150] sm:$0xff] %vm1748_vm10, %v2189_v53  ;;  %2290 = vst.msk [vmem:[#allocation2 + $0x140] sm:$0xff] %vm1748_vm10, %v2189_v53  ;;  %v1209_v63 = vsel %vm8364_vm12, %v1206_v59, %v1208_v38  ;;  %v1210_v59 = vrot.slane %v7223_v13, 2 }
 0x1a9   :  { %2066 = vst.msk [vmem:[#allocation2 + $0x168] sm:$0xff] %vm1598_vm14, %v2050_v5  ;;  %2258 = vst.msk [vmem:[#allocation2 + $0x158] sm:$0xff] %vm1598_vm14, %v2050_v5  ;;  %v7365_v52 = vpack.c.bf16 %v1209_v63, %v1207_v57  ;;  %v1212_v5 = vrot.slane %v7230_v29, 2  ;;  %v7379_v57 = vsel %vm756_vm4, %v836_v14, %v838_v39  ;;  %vm8371_vm14 = vcmask 260224   ;;  %v7392_v14 = vld [vmem:[#allocation3 + $0x930] sm:$0xff] }
 0x1aa   :  { %8365 = vst [vmem:[#allocation75_spill] sm:$0xff] %v7360_v44  ;;  %8366 = vst [vmem:[#allocation76_spill] sm:$0xff] %v7363_v34  ;;  %v1216_v44 = vrot.slane %v7274_v48, 2 }
 0x1ab   :  { %8367 = vst [vmem:[#allocation77_spill] sm:$0xff] %v7365_v52  ;;  %v2097_v58 = vpop.permute.xlu0 %2096  ;;  %v2217_v47 = vpop.permute.xlu1 %2216  ;;  %8368 = vst [vmem:[#allocation78_spill] sm:$0xff] %v7376_v55  ;;  %v7395_v52 = vld [vmem:[#allocation3 + $0x968] sm:$0xff] }
 0x1ac   :  { %2113 = vst.msk [vmem:[#allocation2 + $0x168] sm:$0xff] %vm1648_vm15, %v2097_v58  ;;  %2269 = vst.msk [vmem:[#allocation2 + $0x158] sm:$0xff] %vm1648_vm15, %v2097_v58  ;;  %v1214_v58 = vrot.slane %v7271_v28, 2  ;;  %v7402_v28 = vld [vmem:[#allocation2 + $0x138] sm:$0xff] }
 0x1ad   :  { %8369 = vst [vmem:[#allocation79_spill] sm:$0xff] %v7379_v57  ;;  %vm8370_vm13 = vmmov %vm8272_vm5 }
 0x1ae   :  { %v1211_v63 = vsel %vm8370_vm13, %v1208_v38, %v1210_v59  ;;  %2226 = vst.msk [vmem:[#allocation2 + $0x170] sm:$0x7f] %vm8371_vm14, %v2217_v47  ;;  %vm8372_vm6 = vmmov %vm8272_vm5  ;;  %v1033_v38 = vrot.slane %v7392_v14, 3  ;;  %v1035_v47 = vrot.slane %v7395_v52, 3  ;;  %vm8389_vm13 = vcmask 780928  }
 0x1af   :  { %v1213_v29 = vsel %vm8372_vm6, %v1210_v59, %v1212_v5  ;;  %v2144_v7 = vpop.permute.xlu0 %2143  ;;  %v7390_v34 = vld [vmem:[#allocation2 + $0x140] sm:$0xff]  ;;  %v2228_v59 = vpop.permute.xlu1 %2227  ;;  %8374 = vst [vmem:[#allocation81_spill] sm:$0xff] %v7402_v28  ;;  %vm8375_vm15 = vmmov %vm8272_vm5 }
 0x1b0   :  { %v7386_v53 = vpack.c.bf16 %v1213_v29, %v1211_v63  ;;  %8373 = vst [vmem:[#allocation80_spill] sm:$0xff] %v7390_v34  ;;  %2160 = vst.msk [vmem:[#allocation2 + $0x168] sm:$0xff] %vm1698_vm0, %v2144_v7  ;;  %2826 = vmatprep.mubr.f32.mxu0 %v7390_v34  ;;  %3148 = vmatprep.mubr.f32.mxu1 %v7390_v34  ;;  %v1215_v48 = vsel %vm8375_vm15, %v1212_v5, %v1214_v58  ;;  %v840_v5 = vrot.slane %v7392_v14, 4 }
 0x1b1   :  { %2280 = vst.msk [vmem:[#allocation2 + $0x158] sm:$0xff] %vm1698_vm0, %v2144_v7  ;;  %vm8376_vm7 = vmmov %vm8272_vm5  ;;  %2827 = vmatmul.mubr.f32.gmra.mrb[26].mxu0 %v7402_v28  ;;  %3149 = vmatmul.mubr.f32.gmra.mrb[26].mxu1 %v7402_v28  ;;  %v7410_v29 = vsel %vm949_vm3, %v1031_v1, %v1033_v38  ;;  %v7413_v7 = vsel %vm949_vm3, %v1033_v38, %v1035_v47  ;;  %v1220_v28 = vrot.slane %v7308_v22, 2 }
 0x1b2   :  { %v1217_v63 = vsel %vm8376_vm7, %v1214_v58, %v1216_v44  ;;  %2237 = vst.msk [vmem:[#allocation2 + $0x170] sm:$0x3f] %vm8377_vm8, %v2228_v59  ;;  %8378 = vst [vmem:[#allocation82_spill] sm:$0xff] %v7410_v29  ;;  %v842_v58 = vrot.slane %v7395_v52, 4  ;;  %v1218_v59 = vrot.slane %v7305_v19, 2  ;;  %v7426_v38 = vsel %vm756_vm4, %v838_v39, %v840_v5 }
 0x1b3   :  { %8379 = vst [vmem:[#allocation83_spill] sm:$0xff] %v7413_v7  ;;  %v7415_v13 = vpack.c.bf16 %v1217_v63, %v1215_v48  ;;  %v2191_v55 = vpop.permute.xlu0 %2190  ;;  %v2239_v1 = vpop.permute.xlu1 %2238  ;;  %8381 = vst [vmem:[#allocation85_spill] sm:$0xff] %v7426_v38  ;;  %v1224_v29 = vrot.slane %v7348_v42, 2  ;;  %v4992_v7 = vld [vmem:[#allocation3 + $0x9a0] sm:$0xff]  ;;  %v1226_v38 = vrot.slane %v7392_v14, 2 }
 0x1b4   :  { %2207 = vst.msk [vmem:[#allocation2 + $0x168] sm:$0xff] %vm1748_vm10, %v2191_v55  ;;  %2291 = vst.msk [vmem:[#allocation2 + $0x158] sm:$0xff] %vm1748_vm10, %v2191_v55  ;;  %v7429_v48 = vsel %vm756_vm4, %v840_v5, %v842_v58  ;;  %v1222_v55 = vrot.slane %v7345_v8, 2  ;;  %v1037_v57 = vrot.slane %v4992_v7, 3  ;;  %v4993_v5 = vld [vmem:[#allocation3 + $0x9d8] sm:$0xff]  ;;  %vm8386_vm10 = vcmask 650752  }
 0x1b5   :  { %8380 = vst [vmem:[#allocation84_spill] sm:$0xff] %v7415_v13  ;;  %8382 = vst [vmem:[#allocation86_spill] sm:$0xff] %v7429_v48  ;;  %v1039_v13 = vrot.slane %v4993_v5, 3 }
 0x1b6   :  { %vm8383_vm0 = vmmov %vm8272_vm5  ;;  %2248 = vst.msk [vmem:[#allocation2 + $0x170] sm:$0x1f] %vm8384_vm9, %v2239_v1 }
 0x1b7   :  { %v1219_v63 = vsel %vm8383_vm0, %v1216_v44, %v1218_v59  ;;  %vm8385_vm5 = vmmov %vm8383_vm0  ;;  %v2250_v39 = vpop.permute.xlu0 %2249  ;;  %v2261_v44 = vpop.permute.xlu1 %2260  ;;  %v7448_v8 = vsel %vm949_vm3, %v1037_v57, %v1039_v13 }
 0x1b8   :  { %v1221_v22 = vsel %vm8385_vm5, %v1218_v59, %v1220_v28  ;;  %2259 = vst.msk [vmem:[#allocation2 + $0x170] sm:$0xf] %vm8386_vm10, %v2250_v39  ;;  %vm8387_vm11 = vmmov %vm8383_vm0  ;;  %v7445_v59 = vsel %vm949_vm3, %v1035_v47, %v1037_v57  ;;  %v846_v39 = vrot.slane %v4993_v5, 4  ;;  %v7461_v57 = vld [vmem:[#allocation2 + $0x150] sm:$0xff] }
 0x1b9   :  { %v7436_v34 = vpack.c.bf16 %v1221_v22, %v1219_v63  ;;  %v1223_v1 = vsel %vm8387_vm11, %v1220_v28, %v1222_v55  ;;  %vm8388_vm12 = vmmov %vm8383_vm0  ;;  %2270 = vst.msk [vmem:[#allocation2 + $0x170] sm:$0x7] %vm8389_vm13, %v2261_v44  ;;  %v844_v22 = vrot.slane %v4992_v7, 4  ;;  %v1232_v63 = vrot.slane %v4993_v5, 2 }
 0x1ba   :  { %v1225_v19 = vsel %vm8388_vm12, %v1222_v55, %v1224_v29  ;;  %8390 = vst [vmem:[#allocation87_spill] sm:$0xff] %v7445_v59  ;;  %8391 = vst [vmem:[#allocation88_spill] sm:$0xff] %v7448_v8  ;;  %v1228_v55 = vrot.slane %v7395_v52, 2  ;;  %v4995_v59 = vld [vmem:[#allocation3 + $0xa48] sm:$0xff] }
 0x1bb   :  { %v7450_v42 = vpack.c.bf16 %v1225_v19, %v1223_v1  ;;  %v2272_v28 = vpop.permute.xlu0 %2271  ;;  %v7455_v48 = vld [vmem:[#allocation2 + $0x158] sm:$0xff]  ;;  %v2283_v47 = vpop.permute.xlu1 %2282  ;;  %8394 = vst [vmem:[#allocation91_spill] sm:$0xff] %v7461_v57  ;;  %v7464_v19 = vsel %vm756_vm4, %v842_v58, %v844_v22  ;;  %v7467_v44 = vsel %vm756_vm4, %v844_v22, %v846_v39  ;;  %vm8396_vm14 = vmmov %vm8383_vm0  ;;  %v1230_v58 = vrot.slane %v4992_v7, 2 }
 0x1bc   :  { %8393 = vst [vmem:[#allocation90_spill] sm:$0xff] %v7455_v48  ;;  %2281 = vst.msk [vmem:[#allocation2 + $0x170] sm:$0x3] %vm1834_vm1, %v2272_v28  ;;  %2832 = vmatprep.mubr.f32.mxu0 %v7455_v48  ;;  %3154 = vmatprep.mubr.f32.mxu1 %v7455_v48  ;;  %v1227_v14 = vsel %vm8396_vm14, %v1224_v29, %v1226_v38  ;;  %v4994_v48 = vld [vmem:[#allocation3 + $0xa10] sm:$0xff]  ;;  %v1043_v8 = vrot.slane %v4995_v59, 3  ;;  %v850_v5 = vrot.slane %v4995_v59, 4 }
 0x1bd   :  { %8392 = vst [vmem:[#allocation89_spill] sm:$0xff] %v7450_v42  ;;  %8395 = vst [vmem:[#allocation92_spill] sm:$0xff] %v7464_v19  ;;  %2833 = vmatmul.mubr.f32.gmra.mrb[28].mxu0 %v7461_v57  ;;  %3155 = vmatmul.mubr.f32.gmra.mrb[28].mxu1 %v7461_v57  ;;  %v1041_v22 = vrot.slane %v4994_v48, 3 }
 0x1be   :  { %2292 = vst.msk [vmem:[#allocation2 + $0x170] sm:$0x1] %vm1846_vm2, %v2283_v47  ;;  %vm8397_vm1 = vmmov %vm8383_vm0 }
 0x1bf   :  { %v1229_v1 = vsel %vm8397_vm1, %v1226_v38, %v1228_v55  ;;  %vm8398_vm6 = vmmov %vm8383_vm0  ;;  %v7481_v42 = vsel %vm949_vm3, %v1039_v13, %v1041_v22  ;;  %v7484_v57 = vsel %vm949_vm3, %v1041_v22, %v1043_v8  ;;  %v848_v38 = vrot.slane %v4994_v48, 4  ;;  %v7501_v22 = vld [vmem:[#allocation2 + $0x168] sm:$0xff] }
 0x1c0   :  { %v7476_v28 = vpack.c.bf16 %v1229_v1, %v1227_v14  ;;  %v1231_v29 = vsel %vm8398_vm6, %v1228_v55, %v1230_v58  ;;  %vm8399_vm2 = vmmov %vm8383_vm0  ;;  %v1234_v14 = vrot.slane %v4994_v48, 2  ;;  %v1236_v1 = vrot.slane %v4995_v59, 2  ;;  %v2352_v55 = vld [vmem:[#allocation3 + $0x20] sm:$0xff]  ;;  %v4998_v48 = vld [vmem:[#allocation3 + $0x68] sm:$0xff] }
 0x1c1   :  { %v1233_v47 = vsel %vm8399_vm2, %v1230_v58, %v1232_v63  ;;  %v7493_v58 = vsel %vm756_vm4, %v846_v39, %v848_v38  ;;  %v7496_v13 = vsel %vm756_vm4, %v848_v38, %v850_v5  ;;  %vm8400_vm3 = vmmov %vm8383_vm0  ;;  %v2354_v39 = vld [vmem:[#allocation3 + $0x30] sm:$0xff]  ;;  %v4997_v38 = vld [vmem:[#allocation3 + $0x58] sm:$0xff] }
 0x1c2   :  { %v7486_v52 = vpack.c.bf16 %v1233_v47, %v1231_v29  ;;  %v1235_v8 = vsel %vm8400_vm3, %v1232_v63, %v1234_v14  ;;  %vm8401_vm15 = vmmov %vm8383_vm0  ;;  %v7510_v47 = vld [vmem:[#allocation2 + $0xb8] sm:$0xff]  ;;  %v7514_v63 = vld [vmem:[#allocation2 + $0x10] sm:$0xff]  ;;  %v4682_v5 = vpack.c.bf16 %v4997_v38, %v2352_v55  ;;  %v4778_v7 = vpack.c.bf16 %v4998_v48, %v2354_v39 }
 0x1c3   :  { %v1237_v59 = vsel %vm8401_vm15, %v1234_v14, %v1236_v1  ;;  %v7519_v14 = vld [vmem:[#allocation2 + $0x28] sm:$0xff]  ;;  %v8402_v1 = vpack.c.bf16 %v6721_v36, %v6718_v25  ;;  %v8403_v55 = vpack.c.bf16 %v6729_v16, %v6726_v9  ;;  %v8404_v48 = vpack.c.bf16 %v6748_v35, %v6745_v15  ;;  %v7546_v9 = vld [vmem:[#allocation2 + $0x58] sm:$0xff] }
 0x1c4   :  { %v7508_v29 = vpack.c.bf16 %v1237_v59, %v1235_v8  ;;  %v7531_v8 = vld [vmem:[#allocation2 + $0x40] sm:$0xff]  ;;  %v8405_v25 = vpack.c.bf16 %v6949_v0, %v6946_v18  ;;  %v8406_v36 = vpack.c.bf16 %v6756_v51, %v6753_v50  ;;  %v8407_v16 = vpack.c.bf16 %v6776_v4, %v6773_v11  ;;  %v7561_v50 = vld [vmem:[#allocation2 + $0x70] sm:$0xff]  ;;  %v8423_v18 = vld [vmem:[#allocation10_spill] sm:$0xff] }
 0x1c5   :  { %v7490_v19 = vld [vmem:[#allocation2 + $0x170] sm:$0xff]  ;;  %v8408_v15 = vpack.c.bf16 %v6959_v17, %v6956_v62  ;;  %v8409_v35 = vpack.c.bf16 %v6784_v20, %v6781_v45  ;;  %v8410_v51 = vpack.c.bf16 %v6803_v30, %v6800_v26  ;;  %v8411_v11 = vpack.c.bf16 %v6987_v27, %v6984_v40  ;;  %v7576_v45 = vld [vmem:[#allocation2 + $0x88] sm:$0xff]  ;;  %v8430_v40 = vld [vmem:[#allocation7_spill] sm:$0xff] }
 0x1c6   :  { %2838 = vmatprep.mubr.f32.mxu0 %v7490_v19  ;;  %3160 = vmatprep.mubr.f32.mxu1 %v7490_v19  ;;  %v8412_v4 = vpack.c.bf16 %v6811_v6, %v6808_v10  ;;  %v8413_v20 = vpack.c.bf16 %v6830_v3, %v6827_v31  ;;  %v8414_v26 = vpack.c.bf16 %v7001_v37, %v6998_v12  ;;  %v7591_v10 = vld [vmem:[#allocation2 + $0xa0] sm:$0xff]  ;;  %v8424_v0 = vld [vmem:[#allocation9_spill] sm:$0xff]  ;;  %v8429_v17 = vld [vmem:[#allocation8_spill] sm:$0xff] }
 0x1c7   :  { %2839 = vmatmul.mubr.f32.gmra.mrb[30].mxu0 %v7501_v22  ;;  %3161 = vmatmul.mubr.f32.gmra.mrb[30].mxu1 %v7501_v22  ;;  %v8415_v30 = vpack.c.bf16 %v6838_v54, %v6835_v43  ;;  %v8416_v6 = vpack.c.bf16 %v6858_v32, %v6855_v49  ;;  %v8417_v31 = vpack.c.bf16 %v7031_v33, %v7026_v21  ;;  %v8420_v54 = vld [vmem:[#allocation29_spill] sm:$0xff]  ;;  %v8421_v49 = vld [vmem:[#allocation28_spill] sm:$0xff]  ;;  %v8432_v12 = vld [vmem:[#allocation15_spill] sm:$0xff] }
 0x1c8   :  { %2909 = vmatprep.mubr.f32.mxu0 %v7510_v47  ;;  %3231 = vmatprep.mubr.f32.mxu1 %v7510_v47  ;;  %v8418_v3 = vpack.c.bf16 %v6867_v61, %v6864_v46  ;;  %v8419_v43 = vpack.c.bf16 %v6886_v60, %v6883_v24  ;;  %v8422_v32 = vpack.c.bf16 %v8420_v54, %v8421_v49  ;;  %v7619_v61 = vld [vmem:[#allocation2 + $0xd0] sm:$0xff]  ;;  %v8426_v24 = vld [vmem:[#allocation12_spill] sm:$0xff]  ;;  %v8427_v60 = vld [vmem:[#allocation11_spill] sm:$0xff] }
 0x1c9   :  { %v8425_v46 = vpack.c.bf16 %v8423_v18, %v8424_v0  ;;  %v8428_v62 = vpack.c.bf16 %v8426_v24, %v8427_v60  ;;  %v8431_v27 = vpack.c.bf16 %v8429_v17, %v8430_v40  ;;  %v8433_v37 = vld [vmem:[#allocation13_spill] sm:$0xff]  ;;  %v7634_v33 = vld [vmem:[#allocation2 + $0xe8] sm:$0xff]  ;;  %v8438_v38 = vld [vmem:[#allocation34_spill] sm:$0xff] }
 0x1ca   :  { %v8434_v21 = vpack.c.bf16 %v8432_v12, %v8433_v37  ;;  %v8436_v59 = vld [vmem:[#allocation16_spill] sm:$0xff]  ;;  %v7679_v49 = vld [vmem:[#allocation2 + $0x130] sm:$0xff]  ;;  %v8460_v18 = vld [vmem:[#allocation30_spill] sm:$0xff] }
 0x1cb   :  { %2910 = vmatmul.mubr.f32.vlgmr.msra.gmra.mrb[0].mxu0 %v7514_v63  ;;  %3232 = vmatmul.mubr.f32.vlgmr.msra.gmra.mrb[0].mxu1 %v7514_v63  ;;  %v8464_v24 = vld [vmem:[#allocation33_spill] sm:$0xff]  ;;  %v8465_v60 = vld [vmem:[#allocation32_spill] sm:$0xff] }
 0x1cc   :  { %4683 = vmatpush1.bf16.msra.mxu0 %v4682_v5  ;;  %2915 = vmatprep.mubr.f32.mxu0 %v7510_v47  ;;  %v8439_v5 = vld [vmem:[#allocation14_spill] sm:$0xff]  ;;  %v7694_v17 = vld [vmem:[#allocation2 + $0x148] sm:$0xff]  ;;  %v8471_v37 = vld [vmem:[#allocation45_spill] sm:$0xff] }
 0x1cd   :  { %3237 = vmatprep.mubr.f32.mxu1 %v7510_v47  ;;  %4685 = vmatprep.subr.bf16.mxu0 %v8402_v1  ;;  %v8440_v1 = vpack.c.bf16 %v8438_v38, %v8439_v5  ;;  %v8467_v40 = vld [vmem:[#allocation36_spill] sm:$0xff]  ;;  %v7709_v38 = vld [vmem:[#allocation2 + $0x160] sm:$0xff]  ;;  %v8476_v5 = vld [vmem:[#allocation41_spill] sm:$0xff] }
 0x1ce   :  { %4779 = vmatpush3.bf16.msra.mxu1 %v4778_v7  ;;  %v8435_v7 = vld [vmem:[#allocation21_spill] sm:$0xff] }
 0x1cf   :  { %2916 = vmatmul.mubr.f32.gmra.mrb[2].mxu0 %v7519_v14  ;;  %3238 = vmatmul.mubr.f32.gmra.mrb[2].mxu1 %v7519_v14  ;;  %v8437_v39 = vpack.c.bf16 %v8435_v7, %v8436_v59  ;;  %v8473_v7 = vld [vmem:[#allocation38_spill] sm:$0xff]  ;;  %v8474_v59 = vld [vmem:[#allocation37_spill] sm:$0xff] }
 0x1d0   :  { %4687 = vmatpush1.bf16.msra.mxu0 %v8403_v55  ;;  %2921 = vmatprep.mubr.f32.mxu0 %v7510_v47  ;;  %v8441_v55 = vld [vmem:[#allocation18_spill] sm:$0xff] }
 0x1d1   :  { %3243 = vmatprep.mubr.f32.mxu1 %v7510_v47  ;;  %4689 = vmatprep.subr.bf16.mxu0 %v8404_v48  ;;  %v8442_v48 = vld [vmem:[#allocation17_spill] sm:$0xff] }
 0x1d2   :  { %4781 = vmatprep.subr.bf16.mxu1 %v8405_v25  ;;  %v8443_v25 = vpack.c.bf16 %v8441_v55, %v8442_v48  ;;  %v8479_v48 = vld [vmem:[#allocation52_spill] sm:$0xff] }
 0x1d3   :  { %2922 = vmatmul.mubr.f32.gmra.mrb[4].mxu0 %v7531_v8  ;;  %3244 = vmatmul.mubr.f32.gmra.mrb[4].mxu1 %v7531_v8 }
 0x1d4   :  { %4691 = vmatpush1.bf16.msra.mxu0 %v8406_v36  ;;  %2927 = vmatprep.mubr.f32.mxu0 %v7510_v47  ;;  %v7649_v36 = vld [vmem:[#allocation2 + $0x100] sm:$0xff] }
 0x1d5   :  { %3249 = vmatprep.mubr.f32.mxu1 %v7510_v47  ;;  %4693 = vmatprep.subr.bf16.mxu0 %v8407_v16  ;;  %v8444_v16 = vld [vmem:[#allocation23_spill] sm:$0xff] }
 0x1d6   :  { %4783 = vmatpush3.bf16.msra.mxu1 %v8408_v15  ;;  %v8445_v15 = vld [vmem:[#allocation22_spill] sm:$0xff] }
 0x1d7   :  { %2928 = vmatmul.mubr.f32.gmra.mrb[6].mxu0 %v7546_v9  ;;  %3250 = vmatmul.mubr.f32.gmra.mrb[6].mxu1 %v7546_v9 }
 0x1d8   :  { %4695 = vmatpush1.bf16.msra.mxu0 %v8409_v35  ;;  %2933 = vmatprep.mubr.f32.mxu0 %v7510_v47  ;;  %v8446_v35 = vpack.c.bf16 %v8444_v16, %v8445_v15  ;;  %v8482_v15 = vld [vmem:[#allocation43_spill] sm:$0xff] }
 0x1d9   :  { %3255 = vmatprep.mubr.f32.mxu1 %v7510_v47  ;;  %4697 = vmatprep.subr.bf16.mxu0 %v8410_v51  ;;  %v8447_v51 = vpack.c.bf16 %v7107_v41, %v7101_v23  ;;  %v8454_v23 = vld [vmem:[#allocation39_spill] sm:$0xff] }
 0x1da   :  { %4785 = vmatprep.subr.bf16.mxu1 %v8411_v11  ;;  %v8448_v11 = vld [vmem:[#allocation20_spill] sm:$0xff]  ;;  %v8455_v41 = vpack.c.bf16 %v7119_v2, %v8454_v23  ;;  %v8491_v23 = vld [vmem:[#allocation50_spill] sm:$0xff] }
 0x1db   :  { %2934 = vmatmul.mubr.f32.gmra.mrb[8].mxu0 %v7561_v50  ;;  %3256 = vmatmul.mubr.f32.gmra.mrb[8].mxu1 %v7561_v50  ;;  %v8462_v2 = vld [vmem:[#allocation44_spill] sm:$0xff] }
 0x1dc   :  { %4699 = vmatpush1.bf16.msra.mxu0 %v8412_v4  ;;  %2939 = vmatprep.mubr.f32.mxu0 %v7510_v47  ;;  %v8449_v4 = vld [vmem:[#allocation19_spill] sm:$0xff] }
 0x1dd   :  { %3261 = vmatprep.mubr.f32.mxu1 %v7510_v47  ;;  %4701 = vmatprep.subr.bf16.mxu0 %v8413_v20  ;;  %v8450_v20 = vpack.c.bf16 %v8448_v11, %v8449_v4  ;;  %v8485_v11 = vld [vmem:[#allocation48_spill] sm:$0xff]  ;;  %v8486_v4 = vld [vmem:[#allocation47_spill] sm:$0xff] }
 0x1de   :  { %4787 = vmatpush3.bf16.msra.mxu1 %v8414_v26  ;;  %v7664_v26 = vld [vmem:[#allocation2 + $0x118] sm:$0xff] }
 0x1df   :  { %2940 = vmatmul.mubr.f32.gmra.mrb[10].mxu0 %v7576_v45  ;;  %3262 = vmatmul.mubr.f32.gmra.mrb[10].mxu1 %v7576_v45 }
 0x1e0   :  { %4703 = vmatpush1.bf16.msra.mxu0 %v8415_v30  ;;  %2945 = vmatprep.mubr.f32.mxu0 %v7510_v47  ;;  %v8451_v30 = vld [vmem:[#allocation27_spill] sm:$0xff] }
 0x1e1   :  { %3267 = vmatprep.mubr.f32.mxu1 %v7510_v47  ;;  %4705 = vmatprep.subr.bf16.mxu0 %v8416_v6  ;;  %v8452_v6 = vld [vmem:[#allocation26_spill] sm:$0xff] }
 0x1e2   :  { %4789 = vmatprep.subr.bf16.mxu1 %v8417_v31  ;;  %v8453_v31 = vpack.c.bf16 %v8451_v30, %v8452_v6  ;;  %v8488_v30 = vld [vmem:[#allocation54_spill] sm:$0xff]  ;;  %v8489_v6 = vld [vmem:[#allocation53_spill] sm:$0xff] }
 0x1e3   :  { %2946 = vmatmul.mubr.f32.gmra.mrb[12].mxu0 %v7591_v10  ;;  %3268 = vmatmul.mubr.f32.gmra.mrb[12].mxu1 %v7591_v10 }
 0x1e4   :  { %4707 = vmatpush1.bf16.msra.mxu0 %v8418_v3  ;;  %2951 = vmatprep.mubr.f32.mxu0 %v7510_v47  ;;  %v8456_v3 = vld [vmem:[#allocation25_spill] sm:$0xff] }
 0x1e5   :  { %3273 = vmatprep.mubr.f32.mxu1 %v7510_v47  ;;  %4709 = vmatprep.subr.bf16.mxu0 %v8419_v43  ;;  %v8457_v43 = vld [vmem:[#allocation24_spill] sm:$0xff] }
 0x1e6   :  { %4791 = vmatpush3.bf16.msra.mxu1 %v8422_v32  ;;  %v8458_v54 = vpack.c.bf16 %v8456_v3, %v8457_v43  ;;  %v8459_v32 = vld [vmem:[#allocation31_spill] sm:$0xff]  ;;  %v4999_v43 = vld [vmem:[#allocation2 + $0x8] sm:$0xff] }
 0x1e7   :  { %2952 = vmatmul.mubr.f32.gmra.mrb[14].mxu0 %v7510_v47  ;;  %3274 = vmatmul.mubr.f32.gmra.mrb[14].mxu1 %v7510_v47  ;;  %v8461_v0 = vpack.c.bf16 %v8459_v32, %v8460_v18  ;;  %v8495_v32 = vld [vmem:[#allocation55_spill] sm:$0xff] }
 0x1e8   :  { %4711 = vmatpush1.bf16.msra.mxu0 %v8425_v46  ;;  %2957 = vmatprep.mubr.f32.mxu0 %v7510_v47  ;;  %v8463_v46 = vpack.c.bf16 %v7149_v56, %v8462_v2  ;;  %v8470_v56 = vld [vmem:[#allocation46_spill] sm:$0xff]  ;;  %v5000_v2 = vld [vmem:[#allocation2] sm:$0xff] }
 0x1e9   :  { %3279 = vmatprep.mubr.f32.mxu1 %v7510_v47  ;;  %4713 = vmatprep.subr.bf16.mxu0 %v8428_v62  ;;  %v8466_v62 = vpack.c.bf16 %v8464_v24, %v8465_v60  ;;  %v8499_v24 = vld [vmem:[#allocation57_spill] sm:$0xff] }
 0x1ea   :  { %4793 = vmatprep.subr.bf16.mxu1 %v8431_v27  ;;  %v8468_v27 = vld [vmem:[#allocation35_spill] sm:$0xff] }
 0x1eb   :  { %2958 = vmatmul.mubr.f32.gmra.mrb[16].mxu0 %v7619_v61  ;;  %3280 = vmatmul.mubr.f32.gmra.mrb[16].mxu1 %v7619_v61  ;;  %v8469_v12 = vpack.c.bf16 %v8467_v40, %v8468_v27  ;;  %v8501_v40 = vld [vmem:[#allocation60_spill] sm:$0xff]  ;;  %v8502_v27 = vld [vmem:[#allocation59_spill] sm:$0xff] }
 0x1ec   :  { %4715 = vmatpush1.bf16.msra.mxu0 %v8434_v21  ;;  %2963 = vmatprep.mubr.f32.mxu0 %v7510_v47  ;;  %v8472_v21 = vpack.c.bf16 %v8470_v56, %v8471_v37  ;;  %v5002_v56 = vld [vmem:[#allocation2 + $0x18] sm:$0xff] }
 0x1ed   :  { %3285 = vmatprep.mubr.f32.mxu1 %v7510_v47  ;;  %4717 = vmatprep.subr.bf16.mxu0 %v8437_v39  ;;  %v8475_v39 = vpack.c.bf16 %v8473_v7, %v8474_v59  ;;  %v5003_v37 = vld [vmem:[#allocation2 + $0x38] sm:$0xff]  ;;  %v8505_v7 = vld [vmem:[#allocation63_spill] sm:$0xff] }
 0x1ee   :  { %4795 = vmatpush3.bf16.msra.mxu1 %v8440_v1  ;;  %v8477_v1 = vld [vmem:[#allocation40_spill] sm:$0xff] }
 0x1ef   :  { %2964 = vmatmul.mubr.f32.gmra.mrb[18].mxu0 %v7634_v33  ;;  %3286 = vmatmul.mubr.f32.gmra.mrb[18].mxu1 %v7634_v33  ;;  %v8478_v55 = vpack.c.bf16 %v8476_v5, %v8477_v1  ;;  %v8508_v5 = vld [vmem:[#allocation65_spill] sm:$0xff] }
 0x1f0   :  { %4719 = vmatpush1.bf16.msra.mxu0 %v8443_v25  ;;  %2969 = vmatprep.mubr.f32.mxu0 %v7510_v47  ;;  %v8480_v25 = vld [vmem:[#allocation51_spill] sm:$0xff] }
 0x1f1   :  { %3291 = vmatprep.mubr.f32.mxu1 %v7510_v47  ;;  %4721 = vmatprep.subr.bf16.mxu0 %v8446_v35  ;;  %v8481_v16 = vpack.c.bf16 %v8479_v48, %v8480_v25  ;;  %v8483_v35 = vld [vmem:[#allocation42_spill] sm:$0xff]  ;;  %v5005_v48 = vld [vmem:[#allocation2 + $0x50] sm:$0xff]  ;;  %v8510_v25 = vld [vmem:[#allocation68_spill] sm:$0xff] }
 0x1f2   :  { %4797 = vmatprep.subr.bf16.mxu1 %v8447_v51  ;;  %v8484_v51 = vpack.c.bf16 %v8482_v15, %v8483_v35  ;;  %v8513_v35 = vld [vmem:[#allocation84_spill] sm:$0xff] }
 0x1f3   :  { %2970 = vmatmul.mubr.f32.gmra.mrb[20].mxu0 %v7649_v36  ;;  %3292 = vmatmul.mubr.f32.gmra.mrb[20].mxu1 %v7649_v36 }
 0x1f4   :  { %4723 = vmatpush1.bf16.msra.mxu0 %v8450_v20  ;;  %2975 = vmatprep.mubr.f32.mxu0 %v7510_v47  ;;  %v8487_v20 = vpack.c.bf16 %v8485_v11, %v8486_v4  ;;  %v8515_v11 = vld [vmem:[#allocation71_spill] sm:$0xff] }
 0x1f5   :  { %3297 = vmatprep.mubr.f32.mxu1 %v7510_v47  ;;  %4725 = vmatprep.subr.bf16.mxu0 %v8453_v31  ;;  %v8490_v31 = vpack.c.bf16 %v8488_v30, %v8489_v6  ;;  %v8517_v30 = vld [vmem:[#allocation74_spill] sm:$0xff]  ;;  %v8518_v6 = vld [vmem:[#allocation73_spill] sm:$0xff] }
 0x1f6   :  { %4799 = vmatpush3.bf16.msra.mxu1 %v8455_v41  ;;  %v8492_v41 = vld [vmem:[#allocation49_spill] sm:$0xff] }
 0x1f7   :  { %2976 = vmatmul.mubr.f32.gmra.mrb[22].mxu0 %v7664_v26  ;;  %3298 = vmatmul.mubr.f32.gmra.mrb[22].mxu1 %v7664_v26  ;;  %v8493_v3 = vpack.c.bf16 %v8491_v23, %v8492_v41  ;;  %v8520_v23 = vld [vmem:[#allocation76_spill] sm:$0xff]  ;;  %v8521_v41 = vld [vmem:[#allocation75_spill] sm:$0xff] }
 0x1f8   :  { %4727 = vmatpush1.bf16.msra.mxu0 %v8458_v54  ;;  %2981 = vmatprep.mubr.f32.mxu0 %v7510_v47  ;;  %v8494_v54 = vld [vmem:[#allocation56_spill] sm:$0xff] }
 0x1f9   :  { %3303 = vmatprep.mubr.f32.mxu1 %v7510_v47  ;;  %4729 = vmatprep.subr.bf16.mxu0 %v8461_v0  ;;  %v8496_v18 = vpack.c.bf16 %v8494_v54, %v8495_v32  ;;  %v8497_v0 = vld [vmem:[#allocation77_spill] sm:$0xff]  ;;  %v5009_v54 = vld [vmem:[#allocation2 + $0x80] sm:$0xff] }
 0x1fa   :  { %4801 = vmatprep.subr.bf16.mxu1 %v8463_v46  ;;  %v8498_v46 = vld [vmem:[#allocation58_spill] sm:$0xff]  ;;  %v8523_v32 = vld [vmem:[#allocation79_spill] sm:$0xff] }
 0x1fb   :  { %2982 = vmatmul.mubr.f32.gmra.mrb[24].mxu0 %v7679_v49  ;;  %3304 = vmatmul.mubr.f32.gmra.mrb[24].mxu1 %v7679_v49  ;;  %v8500_v60 = vpack.c.bf16 %v8498_v46, %v8499_v24  ;;  %v8527_v46 = vld [vmem:[#allocation83_spill] sm:$0xff]  ;;  %v8528_v24 = vld [vmem:[#allocation82_spill] sm:$0xff] }
 0x1fc   :  { %4731 = vmatpush1.bf16.msra.mxu0 %v8466_v62  ;;  %2987 = vmatprep.mubr.f32.mxu0 %v7510_v47  ;;  %v5001_v62 = vld [vmem:[#allocation2 + $0x20] sm:$0xff] }
 0x1fd   :  { %3309 = vmatprep.mubr.f32.mxu1 %v7510_v47  ;;  %4733 = vmatprep.subr.bf16.mxu0 %v8469_v12  ;;  %v8503_v12 = vpack.c.bf16 %v8501_v40, %v8502_v27  ;;  %v8530_v40 = vld [vmem:[#allocation86_spill] sm:$0xff]  ;;  %v8531_v27 = vld [vmem:[#allocation85_spill] sm:$0xff] }
 0x1fe   :  { %4803 = vmatpush3.bf16.msra.mxu1 %v8472_v21  ;;  %v8504_v21 = vld [vmem:[#allocation64_spill] sm:$0xff] }
 0x1ff   :  { %2988 = vmatmul.mubr.f32.gmra.mrb[26].mxu0 %v7694_v17  ;;  %3310 = vmatmul.mubr.f32.gmra.mrb[26].mxu1 %v7694_v17  ;;  %v8506_v59 = vpack.c.bf16 %v8504_v21, %v8505_v7  ;;  %v5012_v7 = vld [vmem:[#allocation2 + $0x90] sm:$0xff] }
 0x200   :  { %4735 = vmatpush1.bf16.msra.mxu0 %v8475_v39  ;;  %2993 = vmatprep.mubr.f32.mxu0 %v7510_v47  ;;  %v8507_v39 = vld [vmem:[#allocation66_spill] sm:$0xff] }
 0x201   :  { %3315 = vmatprep.mubr.f32.mxu1 %v7510_v47  ;;  %4737 = vmatprep.subr.bf16.mxu0 %v8478_v55  ;;  %v8509_v1 = vpack.c.bf16 %v8507_v39, %v8508_v5  ;;  %v5004_v55 = vld [vmem:[#allocation2 + $0x30] sm:$0xff]  ;;  %v8536_v39 = vld [vmem:[#allocation92_spill] sm:$0xff] }
 0x202   :  { %4805 = vmatprep.subr.bf16.mxu1 %v8481_v16  ;;  %v8511_v16 = vld [vmem:[#allocation67_spill] sm:$0xff]  ;;  %v8537_v5 = vpack.c.bf16 %v7467_v44, %v8536_v39 }
 0x203   :  { %2994 = vmatmul.mubr.f32.gmra.mrb[28].mxu0 %v7709_v38  ;;  %3316 = vmatmul.mubr.f32.gmra.mrb[28].mxu1 %v7709_v38  ;;  %v8512_v15 = vpack.c.bf16 %v8510_v25, %v8511_v16  ;;  %v5016_v44 = vld [vmem:[#allocation2 + $0xc0] sm:$0xff]  ;;  %v5020_v25 = vld [vmem:[#allocation2 + $0xf0] sm:$0xff]  ;;  %v8543_v16 = vld [vmem:[#allocation70_spill] sm:$0xff] }
 0x204   :  { %4739 = vmatpush1.bf16.msra.mxu0 %v8484_v51  ;;  %2999 = vmatprep.mubr.f32.mxu0 %v7510_v47  ;;  %v8514_v51 = vld [vmem:[#allocation72_spill] sm:$0xff] }
 0x205   :  { %3321 = vmatprep.mubr.f32.mxu1 %v7510_v47  ;;  %4741 = vmatprep.subr.bf16.mxu0 %v8487_v20  ;;  %v8516_v4 = vpack.c.bf16 %v8514_v51, %v8515_v11  ;;  %v5006_v20 = vld [vmem:[#allocation2 + $0x48] sm:$0xff]  ;;  %v8546_v51 = vld [vmem:[#allocation90_spill] sm:$0xff]  ;;  %v8547_v11 = vld [vmem:[#allocation91_spill] sm:$0xff] }
 0x206   :  { %4807 = vmatpush3.bf16.msra.mxu1 %v8490_v31  ;;  %v8519_v31 = vpack.c.bf16 %v8517_v30, %v8518_v6 }
 0x207   :  { %3000 = vmatmul.mubr.f32.gmra.mrb[30].mxu0 %v7510_v47  ;;  %3322 = vmatmul.mubr.f32.gmra.mrb[30].mxu1 %v7510_v47 }
 0x208   :  { %4743 = vmatpush1.bf16.msra.mxu0 %v8493_v3  ;;  %3392 = vmatprep.mubr.f32.mxu0 %v4999_v43  ;;  %v8522_v3 = vpack.c.bf16 %v8520_v23, %v8521_v41 }
 0x209   :  { %3714 = vmatprep.mubr.f32.mxu1 %v4999_v43  ;;  %4745 = vmatprep.subr.bf16.mxu0 %v8496_v18  ;;  %v5008_v43 = vld [vmem:[#allocation2 + $0x60] sm:$0xff]  ;;  %v8524_v18 = vld [vmem:[#allocation78_spill] sm:$0xff] }
 0x20a   :  { %4809 = vmatprep.subr.bf16.mxu1 %v8497_v0 }
 0x20b   :  { %3393 = vmatmul.mubr.f32.vlgmr.msra.gmra.mrb[32].mxu0 %v5000_v2  ;;  %3715 = vmatmul.mubr.f32.vlgmr.msra.gmra.mrb[32].mxu1 %v5000_v2  ;;  %v8526_v2 = vld [vmem:[#allocation89_spill] sm:$0xff] }
 0x20c   :  { %4747 = vmatpush1.bf16.msra.mxu0 %v8500_v60  ;;  %3398 = vmatprep.mubr.f32.mxu0 %v5001_v62  ;;  %v8529_v60 = vpack.c.bf16 %v8527_v46, %v8528_v24 }
 0x20d   :  { %3719 = vmatprep.mubr.f32.mxu1 %v5001_v62  ;;  %4749 = vmatprep.subr.bf16.mxu0 %v8503_v12  ;;  %v5010_v62 = vld [vmem:[#allocation2 + $0x78] sm:$0xff]  ;;  %v8532_v12 = vpack.c.bf16 %v8530_v40, %v8531_v27 }
 0x20e   :  { %4811 = vmatpush3.bf16.msra.mxu1 %v8497_v0  ;;  %v8525_v0 = vpack.c.bf16 %v8523_v32, %v8524_v18 }
 0x20f   :  { %3399 = vmatmul.mubr.f32.gmra.mrb[34].mxu0 %v5002_v56  ;;  %3720 = vmatmul.mubr.f32.gmra.mrb[34].mxu1 %v5002_v56  ;;  %v8533_v56 = vld [vmem:[#allocation88_spill] sm:$0xff] }
 0x210   :  { %3404 = vmatprep.mubr.f32.mxu0 %v5003_v37  ;;  %3724 = vmatprep.mubr.f32.mxu1 %v5003_v37  ;;  %v8534_v37 = vld [vmem:[#allocation87_spill] sm:$0xff] }
 0x211   :  { %4751 = vmatpush1.bf16.msra.mxu0 %v8506_v59  ;;  %4813 = vmatprep.subr.bf16.mxu1 %v7386_v53  ;;  %v8535_v21 = vpack.c.bf16 %v8533_v56, %v8534_v37  ;;  %v5013_v59 = vld [vmem:[#allocation2 + $0xb0] sm:$0xff] }
 0x212   :  { %4753 = vmatprep.subr.bf16.mxu0 %v8509_v1  ;;  %4815 = vmatpush3.bf16.msra.mxu1 %v7386_v53  ;;  %v5007_v53 = vld [vmem:[#allocation2 + $0x68] sm:$0xff]  ;;  %v8538_v1 = vpack.c.bf16 %v7484_v57, %v7481_v42  ;;  %v5017_v42 = vld [vmem:[#allocation2 + $0xe0] sm:$0xff]  ;;  %v5018_v57 = vld [vmem:[#allocation2 + $0xd8] sm:$0xff] }
 0x213   :  { %3405 = vmatmul.mubr.f32.gmra.mrb[36].mxu0 %v5004_v55  ;;  %3725 = vmatmul.mubr.f32.gmra.mrb[36].mxu1 %v5004_v55  ;;  %v5014_v55 = vld [vmem:[#allocation2 + $0xa8] sm:$0xff] }
 0x214   :  { %3410 = vmatprep.mubr.f32.mxu0 %v5005_v48  ;;  %3729 = vmatprep.mubr.f32.mxu1 %v5005_v48  ;;  %v8539_v48 = vpack.c.bf16 %v7496_v13, %v7493_v58  ;;  %v8540_v58 = vld [vmem:[#allocation61_spill] sm:$0xff]  ;;  %v8541_v13 = vld [vmem:[#allocation62_spill] sm:$0xff] }
 0x215   :  { %4755 = vmatpush1.bf16.msra.mxu0 %v8512_v15  ;;  %4817 = vmatprep.subr.bf16.mxu1 %v8513_v35  ;;  %v8544_v15 = vld [vmem:[#allocation80_spill] sm:$0xff] }
 0x216   :  { %4757 = vmatprep.subr.bf16.mxu0 %v8516_v4  ;;  %4819 = vmatpush3.bf16.msra.mxu1 %v8513_v35  ;;  %v8545_v35 = vld [vmem:[#allocation81_spill] sm:$0xff] }
 0x217   :  { %3411 = vmatmul.mubr.f32.gmra.mrb[38].mxu0 %v5006_v20  ;;  %3730 = vmatmul.mubr.f32.gmra.mrb[38].mxu1 %v5006_v20 }
 0x218   :  { %3416 = vmatprep.mubr.f32.mxu0 %v5007_v53  ;;  %3734 = vmatprep.mubr.f32.mxu1 %v5007_v53 }
 0x219   :  { %4759 = vmatpush1.bf16.msra.mxu0 %v8519_v31  ;;  %4821 = vmatprep.subr.bf16.mxu1 %v7436_v34 }
 0x21a   :  { %4761 = vmatprep.subr.bf16.mxu0 %v8522_v3  ;;  %4823 = vmatpush3.bf16.msra.mxu1 %v7436_v34  ;;  %v5011_v34 = vld [vmem:[#allocation2 + $0x98] sm:$0xff] }
 0x21b   :  { %3417 = vmatmul.mubr.f32.gmra.mrb[40].mxu0 %v5008_v43  ;;  %3735 = vmatmul.mubr.f32.gmra.mrb[40].mxu1 %v5008_v43 }
 0x21c   :  { %3422 = vmatprep.mubr.f32.mxu0 %v5009_v54  ;;  %3739 = vmatprep.mubr.f32.mxu1 %v5009_v54 }
 0x21d   :  { %4763 = vmatpush1.bf16.msra.mxu0 %v8525_v0  ;;  %4825 = vmatprep.subr.bf16.mxu1 %v8526_v2 }
 0x21e   :  { %4765 = vmatprep.subr.bf16.mxu0 %v8529_v60  ;;  %4827 = vmatpush3.bf16.msra.mxu1 %v8526_v2 }
 0x21f   :  { %3423 = vmatmul.mubr.f32.gmra.mrb[42].mxu0 %v5010_v62  ;;  %3740 = vmatmul.mubr.f32.gmra.mrb[42].mxu1 %v5010_v62 }
 0x220   :  { %3428 = vmatprep.mubr.f32.mxu0 %v5011_v34  ;;  %3744 = vmatprep.mubr.f32.mxu1 %v5011_v34 }
 0x221   :  { %4767 = vmatpush1.bf16.msra.mxu0 %v8532_v12  ;;  %4829 = vmatprep.subr.bf16.mxu1 %v7476_v28 }
 0x222   :  { %4769 = vmatprep.subr.bf16.mxu0 %v8535_v21  ;;  %4831 = vmatpush3.bf16.msra.mxu1 %v7476_v28  ;;  %v5015_v28 = vld [vmem:[#allocation2 + $0xc8] sm:$0xff] }
 0x223   :  { %3429 = vmatmul.mubr.f32.gmra.mrb[44].mxu0 %v5012_v7  ;;  %3745 = vmatmul.mubr.f32.gmra.mrb[44].mxu1 %v5012_v7 }
 0x224   :  { %3434 = vmatprep.mubr.f32.mxu0 %v5013_v59  ;;  %3749 = vmatprep.mubr.f32.mxu1 %v5013_v59 }
 0x225   :  { %4771 = vmatpush1.bf16.msra.mxu0 %v8537_v5  ;;  %4833 = vmatprep.subr.bf16.mxu1 %v7486_v52 }
 0x226   :  { %4773 = vmatprep.subr.bf16.mxu0 %v8538_v1  ;;  %4835 = vmatpush3.bf16.msra.mxu1 %v7486_v52  ;;  %v5019_v52 = vld [vmem:[#allocation2 + $0xf8] sm:$0xff] }
 0x227   :  { %3435 = vmatmul.mubr.f32.gmra.mrb[46].mxu0 %v5014_v55  ;;  %3750 = vmatmul.mubr.f32.gmra.mrb[46].mxu1 %v5014_v55 }
 0x228   :  { %3440 = vmatprep.mubr.f32.mxu0 %v5015_v28  ;;  %3754 = vmatprep.mubr.f32.mxu1 %v5015_v28 }
 0x229   :  { %4775 = vmatpush1.bf16.msra.mxu0 %v8539_v48  ;;  %4837 = vmatprep.subr.bf16.mxu1 %v7508_v29  ;;  %v4033_v48 = vlaneseq }
 0x22a   :  { %4839 = vmatpush3.bf16.msra.mxu1 %v7508_v29  ;;  %v8542_v29 = vld [vmem:[#allocation69_spill] sm:$0xff] }
 0x22b   :  { %3441 = vmatmul.mubr.f32.gmra.mrb[48].mxu0 %v5016_v44  ;;  %3755 = vmatmul.mubr.f32.gmra.mrb[48].mxu1 %v5016_v44  ;;  %vm7986_vm4 = vcmp.lt.s32.totalorder %v4033_v48, 896 }
 0x22c   :  { %3446 = vmatprep.mubr.f32.mxu0 %v5017_v42  ;;  %3759 = vmatprep.mubr.f32.mxu1 %v5017_v42 }
 0x22f   :  { %3447 = vmatmul.mubr.f32.gmra.mrb[50].mxu0 %v5018_v57  ;;  %3760 = vmatmul.mubr.f32.gmra.mrb[50].mxu1 %v5018_v57 }
 0x230   :  { %3452 = vmatprep.mubr.f32.mxu0 %v5019_v52  ;;  %3764 = vmatprep.mubr.f32.mxu1 %v5019_v52 }
 0x233   :  { %3453 = vmatmul.mubr.f32.gmra.mrb[52].mxu0 %v5020_v25  ;;  %3765 = vmatmul.mubr.f32.gmra.mrb[52].mxu1 %v5020_v25 }
 0x234   :  { %3458 = vmatprep.mubr.f32.mxu0 %v8540_v58  ;;  %3769 = vmatprep.mubr.f32.mxu1 %v8540_v58 }
 0x237   :  { %3459 = vmatmul.mubr.f32.gmra.mrb[54].mxu0 %v8541_v13  ;;  %3770 = vmatmul.mubr.f32.gmra.mrb[54].mxu1 %v8541_v13 }
 0x238   :  { %3464 = vmatprep.mubr.f32.mxu0 %v8542_v29  ;;  %3774 = vmatprep.mubr.f32.mxu1 %v8542_v29 }
 0x23b   :  { %3465 = vmatmul.mubr.f32.gmra.mrb[56].mxu0 %v8543_v16  ;;  %3775 = vmatmul.mubr.f32.gmra.mrb[56].mxu1 %v8543_v16 }
 0x23c   :  { %3470 = vmatprep.mubr.f32.mxu0 %v8544_v15  ;;  %3779 = vmatprep.mubr.f32.mxu1 %v8544_v15 }
 0x23f   :  { %3471 = vmatmul.mubr.f32.gmra.mrb[58].mxu0 %v8545_v35  ;;  %3780 = vmatmul.mubr.f32.gmra.mrb[58].mxu1 %v8545_v35 }
 0x240   :  { %3476 = vmatprep.mubr.f32.mxu0 %v8546_v51  ;;  %3784 = vmatprep.mubr.f32.mxu1 %v8546_v51 }
 0x243   :  { %3477 = vmatmul.mubr.f32.gmra.mrb[60].mxu0 %v8547_v11  ;;  %3785 = vmatmul.mubr.f32.gmra.mrb[60].mxu1 %v8547_v11  ;;  %v7877_v11 = vshrl.u32 %v4033_v48, 7 }
 0x244   :  { %3482 = vmatprep.mubr.f32.mxu0 %v7490_v19  ;;  %3789 = vmatprep.mubr.f32.mxu1 %v7490_v19 }
 0x247   :  { %3483 = vmatmul.mubr.f32.gmra.mrb[62].mxu0 %v7501_v22  ;;  %3790 = vmatmul.mubr.f32.gmra.mrb[62].mxu1 %v7501_v22 }
 0x248   :  { %3553 = vmatprep.mubr.f32.mxu0 %v7510_v47  ;;  %4464 = vmatprep.mubr.f32.mxu1 %v7514_v63 }
 0x24b   :  { %3554 = vmatmul.mubr.f32.vlgmr.msra.gmra.mrb[32].mxu0 %v7514_v63  ;;  %4465 = vmatmul.mubr.f32.vlgmr.msra.gmra.mrb[64].mxu1 %v7519_v14 }
 0x24c   :  { %3559 = vmatprep.mubr.f32.mxu0 %v7510_v47  ;;  %4467 = vmatprep.mubr.f32.mxu1 %v7531_v8 }
 0x24f   :  { %3560 = vmatmul.mubr.f32.gmra.mrb[34].mxu0 %v7519_v14  ;;  %4468 = vmatmul.mubr.f32.gmra.mrb[66].mxu1 %v7546_v9 }
 0x250   :  { %3565 = vmatprep.mubr.f32.mxu0 %v7510_v47  ;;  %4470 = vmatprep.mubr.f32.mxu1 %v7561_v50 }
 0x253   :  { %3566 = vmatmul.mubr.f32.gmra.mrb[36].mxu0 %v7531_v8  ;;  %4471 = vmatmul.mubr.f32.gmra.mrb[68].mxu1 %v7576_v45 }
 0x254   :  { %3571 = vmatprep.mubr.f32.mxu0 %v7510_v47  ;;  %4473 = vmatprep.mubr.f32.mxu1 %v7591_v10 }
 0x257   :  { %3572 = vmatmul.mubr.f32.gmra.mrb[38].mxu0 %v7546_v9  ;;  %4474 = vmatmul.mubr.f32.gmra.mrb[70].mxu1 %v7510_v47 }
 0x258   :  { %3577 = vmatprep.mubr.f32.mxu0 %v7510_v47  ;;  %4476 = vmatprep.mubr.f32.mxu1 %v7619_v61 }
 0x25b   :  { %3578 = vmatmul.mubr.f32.gmra.mrb[40].mxu0 %v7561_v50  ;;  %4477 = vmatmul.mubr.f32.gmra.mrb[72].mxu1 %v7634_v33 }
 0x25c   :  { %3583 = vmatprep.mubr.f32.mxu0 %v7510_v47  ;;  %4479 = vmatprep.mubr.f32.mxu1 %v7649_v36 }
 0x25f   :  { %3584 = vmatmul.mubr.f32.gmra.mrb[42].mxu0 %v7576_v45  ;;  %4480 = vmatmul.mubr.f32.gmra.mrb[74].mxu1 %v7664_v26 }
 0x260   :  { %3589 = vmatprep.mubr.f32.mxu0 %v7510_v47  ;;  %4482 = vmatprep.mubr.f32.mxu1 %v7679_v49 }
 0x263   :  { %3590 = vmatmul.mubr.f32.gmra.mrb[44].mxu0 %v7591_v10  ;;  %4483 = vmatmul.mubr.f32.gmra.mrb[76].mxu1 %v7694_v17 }
 0x264   :  { %3595 = vmatprep.mubr.f32.mxu0 %v7510_v47  ;;  %4485 = vmatprep.mubr.f32.mxu1 %v7709_v38 }
 0x267   :  { %3596 = vmatmul.mubr.f32.gmra.mrb[46].mxu0 %v7510_v47  ;;  %4486 = vmatmul.mubr.f32.gmra.mrb[78].mxu1 %v7510_v47 }
 0x268   :  { %3601 = vmatprep.mubr.f32.mxu0 %v7510_v47 }
 0x26b   :  { %3602 = vmatmul.mubr.f32.gmra.mrb[48].mxu0 %v7619_v61 }
 0x26c   :  { %3607 = vmatprep.mubr.f32.mxu0 %v7510_v47 }
 0x26f   :  { %3608 = vmatmul.mubr.f32.gmra.mrb[50].mxu0 %v7634_v33 }
 0x270   :  { %3613 = vmatprep.mubr.f32.mxu0 %v7510_v47 }
 0x273   :  { %3614 = vmatmul.mubr.f32.gmra.mrb[52].mxu0 %v7649_v36 }
 0x274   :  { %3619 = vmatprep.mubr.f32.mxu0 %v7510_v47 }
 0x277   :  { %3620 = vmatmul.mubr.f32.gmra.mrb[54].mxu0 %v7664_v26 }
 0x278   :  { %3625 = vmatprep.mubr.f32.mxu0 %v7510_v47 }
 0x27b   :  { %3626 = vmatmul.mubr.f32.gmra.mrb[56].mxu0 %v7679_v49 }
 0x27c   :  { %3631 = vmatprep.mubr.f32.mxu0 %v7510_v47 }
 0x27f   :  { %3632 = vmatmul.mubr.f32.gmra.mrb[58].mxu0 %v7694_v17 }
 0x280   :  { %3637 = vmatprep.mubr.f32.mxu0 %v7510_v47 }
 0x283   :  { %3638 = vmatmul.mubr.f32.gmra.mrb[60].mxu0 %v7709_v38 }
 0x284   :  { %3643 = vmatprep.mubr.f32.mxu0 %v7510_v47 }
 0x287   :  { %3644 = vmatmul.mubr.f32.gmra.mrb[62].mxu0 %v7510_v47 }
 0x29e   :  { %v2911_v19 = vpop.f32.mrb[0].mxu0  ;;  %v3233_v22 = vpop.f32.mrb[0].mxu1 }
 0x29f   :  { %v2913_v63 = vpop.f32.mrb[1].mxu0  ;;  %v3235_v14 = vpop.f32.mrb[1].mxu1 }
 0x2a2   :  { %v2917_v8 = vpop.f32.mrb[2].mxu0  ;;  %v3239_v9 = vpop.f32.mrb[2].mxu1 }
 0x2a3   :  { %v2919_v50 = vpop.f32.mrb[3].mxu0  ;;  %v3241_v45 = vpop.f32.mrb[3].mxu1 }
 0x2a6   :  { %v2923_v10 = vpop.f32.mrb[4].mxu0  ;;  %v3245_v61 = vpop.f32.mrb[4].mxu1 }
 0x2a7   :  { %v2925_v33 = vpop.f32.mrb[5].mxu0  ;;  %v3247_v36 = vpop.f32.mrb[5].mxu1 }
 0x2aa   :  { %v2929_v26 = vpop.f32.mrb[6].mxu0  ;;  %v3251_v49 = vpop.f32.mrb[6].mxu1 }
 0x2ab   :  { %v2931_v17 = vpop.f32.mrb[7].mxu0  ;;  %v3253_v38 = vpop.f32.mrb[7].mxu1 }
 0x2ae   :  { %v2935_v4 = vpop.f32.mrb[8].mxu0  ;;  %v3257_v20 = vpop.f32.mrb[8].mxu1 }
 0x2af   :  { %v3941_v53 = vmax.f32 %v2911_v19, %v2935_v4  ;;  %v3943_v47 = vmax.f32 %v3233_v22, %v3257_v20  ;;  %v2937_v30 = vpop.f32.mrb[9].mxu0  ;;  %v3259_v6 = vpop.f32.mrb[9].mxu1 }
 0x2b0   :  { %v3942_v31 = vmax.f32 %v2913_v63, %v2937_v30  ;;  %v3944_v23 = vmax.f32 %v3235_v14, %v3259_v6  ;;  %v5056_v30 = vmov 1966171168  }
 0x2b1   :  { %v4093_v6 = vunpack.c.l.s4 %v5056_v30 }
 0x2b2   :  { %v2941_v41 = vpop.f32.mrb[10].mxu0  ;;  %v3263_v3 = vpop.f32.mrb[10].mxu1 }
 0x2b3   :  { %v3948_v43 = vmax.f32 %v2917_v8, %v2941_v41  ;;  %v3950_v54 = vmax.f32 %v3239_v9, %v3263_v3  ;;  %v2943_v32 = vpop.f32.mrb[11].mxu0  ;;  %v3265_v18 = vpop.f32.mrb[11].mxu1  ;;  %v4047_v41 = vsub.s32 3, %v7877_v11 }
 0x2b4   :  { %v3949_v0 = vmax.f32 %v2919_v50, %v2943_v32  ;;  %v3951_v2 = vmax.f32 %v3241_v45, %v3265_v18 }
 0x2b6   :  { %v2947_v46 = vpop.f32.mrb[12].mxu0  ;;  %v3269_v24 = vpop.f32.mrb[12].mxu1 }
 0x2b7   :  { %v3955_v60 = vmax.f32 %v2923_v10, %v2947_v46  ;;  %v3957_v62 = vmax.f32 %v3245_v61, %v3269_v24  ;;  %v2949_v34 = vpop.f32.mrb[13].mxu0  ;;  %v3271_v40 = vpop.f32.mrb[13].mxu1 }
 0x2b8   :  { %v3956_v27 = vmax.f32 %v2925_v33, %v2949_v34  ;;  %v3958_v12 = vmax.f32 %v3247_v36, %v3271_v40 }
 0x2b9   :  { %v3969_v56 = vmax.f32 %v3941_v53, %v3955_v60  ;;  %v3971_v37 = vmax.f32 %v3943_v47, %v3957_v62  ;;  %v4043_v53 = vsub.s32 2, %v7877_v11  ;;  %v4039_v47 = vsub.s32 1, %v7877_v11 }
 0x2ba   :  { %v3970_v21 = vmax.f32 %v3942_v31, %v3956_v27  ;;  %v3972_v7 = vmax.f32 %v3944_v23, %v3958_v12  ;;  %v2953_v59 = vpop.f32.mrb[14].mxu0  ;;  %v3275_v39 = vpop.f32.mrb[14].mxu1  ;;  %v4094_v27 = vunpack.c.0.s8 %v4093_v6 }
 0x2bb   :  { %v3962_v5 = vmax.f32 %v2929_v26, %v2953_v59  ;;  %v3964_v1 = vmax.f32 %v3251_v49, %v3275_v39  ;;  %v2955_v55 = vpop.f32.mrb[15].mxu0  ;;  %v3277_v28 = vpop.f32.mrb[15].mxu1  ;;  %v4035_v26 = vsub.s32 0, %v7877_v11 }
 0x2bc   :  { %v3963_v44 = vmax.f32 %v2931_v17, %v2955_v55  ;;  %v3965_v42 = vmax.f32 %v3253_v38, %v3277_v28  ;;  %v7891_v38 = vld [vmem:[%s8009_s2] sm:$0xff] }
 0x2bd   :  { %v3976_v57 = vmax.f32 %v3948_v43, %v3962_v5  ;;  %v3978_v52 = vmax.f32 %v3950_v54, %v3964_v1  ;;  %v7904_v34 = vrot.slane %v7891_v38, %v4043_v53  ;;  %v7907_v40 = vrot.slane %v7891_v38, %v4039_v47 }
 0x2be   :  { %v3977_v25 = vmax.f32 %v3949_v0, %v3963_v44  ;;  %v3979_v58 = vmax.f32 %v3951_v2, %v3965_v42  ;;  %v7868_v13 = vpop.f32.mrb[16].mxu0  ;;  %v7870_v29 = vpop.f32.mrb[16].mxu1  ;;  %v7901_v2 = vrot.slane %v7891_v38, %v4035_v26 }
 0x2bf   :  { %v3983_v16 = vmax.f32 %v3969_v56, %v3976_v57  ;;  %v3985_v15 = vmax.f32 %v3971_v37, %v3978_v52  ;;  %v7872_v35 = vpop.f32.mrb[17].mxu0  ;;  %v7874_v51 = vpop.f32.mrb[17].mxu1  ;;  %v7910_v37 = vrot.slane %v7891_v38, %v4047_v41  ;;  %v7915_v57 = vsub.s32 %v4094_v27, %v7877_v11 }
 0x2c0   :  { %v3984_v19 = vmax.f32 %v3970_v21, %v3977_v25  ;;  %v3986_v22 = vmax.f32 %v3972_v7, %v3979_v58 }
 0x2c1   :  { %v3990_v63 = vrot.slane %v3983_v16, 4  ;;  %v4002_v14 = vrot.slane %v3985_v15, 4 }
 0x2c2   :  { %v3996_v8 = vrot.slane %v3984_v19, 4  ;;  %v4008_v9 = vrot.slane %v3986_v22, 4  ;;  %v7879_v50 = vpop.f32.mrb[18].mxu0  ;;  %v7881_v45 = vpop.f32.mrb[18].mxu1 }
 0x2c3   :  { %v3991_v10 = vmax.f32 %v3983_v16, %v3990_v63  ;;  %v4003_v61 = vmax.f32 %v3985_v15, %v4002_v14  ;;  %v7883_v33 = vpop.f32.mrb[19].mxu0  ;;  %v7885_v36 = vpop.f32.mrb[19].mxu1 }
 0x2c4   :  { %v3997_v49 = vmax.f32 %v3984_v19, %v3996_v8  ;;  %v4009_v17 = vmax.f32 %v3986_v22, %v4008_v9 }
 0x2c5   :  { %v3992_v4 = vrot.slane %v3991_v10, 2  ;;  %v4004_v20 = vrot.slane %v4003_v61, 2 }
 0x2c6   :  { %v3998_v31 = vrot.slane %v3997_v49, 2  ;;  %v4010_v23 = vrot.slane %v4009_v17, 2  ;;  %v7896_v3 = vpop.f32.mrb[20].mxu0  ;;  %v7898_v43 = vpop.f32.mrb[20].mxu1 }
 0x2c7   :  { %v3993_v54 = vmax.f32 %v3991_v10, %v3992_v4  ;;  %v4005_v32 = vmax.f32 %v4003_v61, %v4004_v20  ;;  %v2973_v18 = vpop.f32.mrb[21].mxu0  ;;  %v3295_v0 = vpop.f32.mrb[21].mxu1 }
 0x2c8   :  { %v3999_v46 = vmax.f32 %v3997_v49, %v3998_v31  ;;  %v4011_v24 = vmax.f32 %v4009_v17, %v4010_v23 }
 0x2c9   :  { %v3994_v60 = vrot.slane %v3993_v54, 1  ;;  %v4006_v62 = vrot.slane %v4005_v32, 1 }
 0x2ca   :  { %v4000_v12 = vrot.slane %v3999_v46, 1  ;;  %v4012_v56 = vrot.slane %v4011_v24, 1  ;;  %v2977_v21 = vpop.f32.mrb[22].mxu0  ;;  %v3299_v7 = vpop.f32.mrb[22].mxu1 }
 0x2cb   :  { %v3995_v59 = vmax.f32 %v3993_v54, %v3994_v60  ;;  %v4007_v39 = vmax.f32 %v4005_v32, %v4006_v62  ;;  %v2979_v5 = vpop.f32.mrb[23].mxu0  ;;  %v3301_v1 = vpop.f32.mrb[23].mxu1 }
 0x2cc   :  { %v4001_v55 = vmax.f32 %v3999_v46, %v4000_v12  ;;  %v4013_v28 = vmax.f32 %v4011_v24, %v4012_v56 }
 0x2cd   :  { %v4068_v44 = vadd.f32 %v7901_v2, %v3995_v59  ;;  %v4070_v42 = vadd.f32 %v7904_v34, %v4007_v39 }
 0x2ce   :  { %v4069_v52 = vadd.f32 %v7907_v40, %v4001_v55  ;;  %v4071_v25 = vadd.f32 %v7910_v37, %v4013_v28  ;;  %v2983_v58 = vpop.f32.mrb[24].mxu0  ;;  %v3305_v16 = vpop.f32.mrb[24].mxu1 }
 0x2cf   :  { %v4075_v15 = vmax.f32 %v4068_v44, 0.0  ;;  %v4077_v19 = vmax.f32 %v4070_v42, 0.0  ;;  %v4143_v22 = vmax.f32 %v7868_v13, %v2983_v58  ;;  %v4145_v63 = vmax.f32 %v7870_v29, %v3305_v16  ;;  %v2985_v14 = vpop.f32.mrb[25].mxu0  ;;  %v3307_v8 = vpop.f32.mrb[25].mxu1 }
 0x2d0   :  { %v4076_v9 = vmax.f32 %v4069_v52, 0.0  ;;  %v4078_v10 = vmax.f32 %v4071_v25, 0.0  ;;  %v4144_v61 = vmax.f32 %v7872_v35, %v2985_v14  ;;  %v4146_v26 = vmax.f32 %v7874_v51, %v3307_v8 }
 0x2d2   :  { %v4089_v49 = vcombine.low %v4075_v15, %v4076_v9  ;;  %v4090_v17 = vcombine.low %v4077_v19, %v4078_v10  ;;  %v2989_v4 = vpop.f32.mrb[26].mxu0  ;;  %v3311_v20 = vpop.f32.mrb[26].mxu1 }
 0x2d3   :  { %v4150_v53 = vmax.f32 %v7879_v50, %v2989_v4  ;;  %v4152_v47 = vmax.f32 %v7881_v45, %v3311_v20  ;;  %v2991_v30 = vpop.f32.mrb[27].mxu0  ;;  %v3313_v13 = vpop.f32.mrb[27].mxu1 }
 0x2d4   :  { %v4098_v29 = vrot.slane %v4089_v49, %v7915_v57  ;;  %v4105_v6 = vrot.slane %v4090_v17, %v7915_v57  ;;  %v4151_v31 = vmax.f32 %v7883_v33, %v2991_v30  ;;  %v4153_v35 = vmax.f32 %v7885_v36, %v3313_v13 }
 0x2d6   :  { %v7929_v23 = vcombine.low %v4098_v29, %v4105_v6  ;;  %v2995_v51 = vpop.f32.mrb[28].mxu0  ;;  %v3317_v41 = vpop.f32.mrb[28].mxu1 }
 0x2d7   :  { %v4157_v54 = vmax.f32 %v7896_v3, %v2995_v51  ;;  %v4159_v50 = vmax.f32 %v7898_v43, %v3317_v41  ;;  %v2997_v32 = vpop.f32.mrb[29].mxu0  ;;  %v3319_v45 = vpop.f32.mrb[29].mxu1 }
 0x2d8   :  { %v4158_v46 = vmax.f32 %v2973_v18, %v2997_v32  ;;  %v4160_v24 = vmax.f32 %v3295_v0, %v3319_v45 }
 0x2d9   :  { %v4171_v60 = vmax.f32 %v4143_v22, %v4157_v54  ;;  %v4173_v62 = vmax.f32 %v4145_v63, %v4159_v50 }
 0x2da   :  { %v4172_v27 = vmax.f32 %v4144_v61, %v4158_v46  ;;  %v4174_v12 = vmax.f32 %v4146_v26, %v4160_v24  ;;  %v3001_v56 = vpop.f32.mrb[30].mxu0  ;;  %v3323_v33 = vpop.f32.mrb[30].mxu1 }
 0x2db   :  { %v4164_v59 = vmax.f32 %v2977_v21, %v3001_v56  ;;  %v4166_v36 = vmax.f32 %v3299_v7, %v3323_v33  ;;  %v3003_v39 = vpop.f32.mrb[31].mxu0  ;;  %v3325_v55 = vpop.f32.mrb[31].mxu1 }
 0x2dc   :  { %v4165_v28 = vmax.f32 %v2979_v5, %v3003_v39  ;;  %v4167_v44 = vmax.f32 %v3301_v1, %v3325_v55 }
 0x2dd   :  { %v4178_v42 = vmax.f32 %v4150_v53, %v4164_v59  ;;  %v4180_v3 = vmax.f32 %v4152_v47, %v4166_v36 }
 0x2de   :  { %v4179_v52 = vmax.f32 %v4151_v31, %v4165_v28  ;;  %v4181_v43 = vmax.f32 %v4153_v35, %v4167_v44  ;;  %v4352_v25 = vpop.f32.mrb[32].mxu1 }
 0x2df   :  { %v4185_v58 = vmax.f32 %v4171_v60, %v4178_v42  ;;  %v4187_v18 = vmax.f32 %v4173_v62, %v4180_v3  ;;  %v4353_v0 = vpop.f32.mrb[33].mxu1 }
 0x2e0   :  { %v4186_v16 = vmax.f32 %v4172_v27, %v4179_v52  ;;  %v4188_v15 = vmax.f32 %v4174_v12, %v4181_v43  ;;  %v7933_v19 = vadd.f32 %v4353_v0, %v4352_v25 }
 0x2e1   :  { %v4192_v22 = vrot.slane %v4185_v58, 4  ;;  %v4204_v63 = vrot.slane %v4187_v18, 4 }
 0x2e2   :  { %v4198_v21 = vrot.slane %v4186_v16, 4  ;;  %v4210_v7 = vrot.slane %v4188_v15, 4  ;;  %v4355_v14 = vpop.f32.mrb[34].mxu1 }
 0x2e3   :  { %v4193_v8 = vmax.f32 %v4185_v58, %v4192_v22  ;;  %v4205_v5 = vmax.f32 %v4187_v18, %v4204_v63  ;;  %v4356_v1 = vpop.f32.mrb[35].mxu1 }
 0x2e4   :  { %v4199_v9 = vmax.f32 %v4186_v16, %v4198_v21  ;;  %v4211_v10 = vmax.f32 %v4188_v15, %v4210_v7  ;;  %v7935_v61 = vadd.f32 %v4356_v1, %v4355_v14 }
 0x2e5   :  { %v4194_v26 = vrot.slane %v4193_v8, 2  ;;  %v4206_v49 = vrot.slane %v4205_v5, 2 }
 0x2e6   :  { %v4200_v17 = vrot.slane %v4199_v9, 2  ;;  %v4212_v4 = vrot.slane %v4211_v10, 2  ;;  %v4358_v20 = vpop.f32.mrb[36].mxu1 }
 0x2e7   :  { %v4195_v53 = vmax.f32 %v4193_v8, %v4194_v26  ;;  %v4207_v47 = vmax.f32 %v4205_v5, %v4206_v49  ;;  %v4359_v30 = vpop.f32.mrb[37].mxu1 }
 0x2e8   :  { %v4201_v13 = vmax.f32 %v4199_v9, %v4200_v17  ;;  %v4213_v29 = vmax.f32 %v4211_v10, %v4212_v4  ;;  %v7937_v6 = vadd.f32 %v4359_v30, %v4358_v20 }
 0x2e9   :  { %v4196_v31 = vrot.slane %v4195_v53, 1  ;;  %v4208_v35 = vrot.slane %v4207_v47, 1 }
 0x2ea   :  { %v4202_v51 = vrot.slane %v4201_v13, 1  ;;  %v4214_v41 = vrot.slane %v4213_v29, 1  ;;  %v4361_v54 = vpop.f32.mrb[38].mxu1 }
 0x2eb   :  { %v4197_v50 = vmax.f32 %v4195_v53, %v4196_v31  ;;  %v4209_v32 = vmax.f32 %v4207_v47, %v4208_v35  ;;  %v4362_v45 = vpop.f32.mrb[39].mxu1 }
 0x2ec   :  { %v4203_v46 = vmax.f32 %v4201_v13, %v4202_v51  ;;  %v4215_v24 = vmax.f32 %v4213_v29, %v4214_v41  ;;  %v4363_v60 = vadd.f32 %v4362_v45, %v4361_v54 }
 0x2ed   :  { %v4234_v62 = vadd.f32 %v4197_v50, %v7901_v2  ;;  %v4236_v27 = vadd.f32 %v4209_v32, %v7904_v34 }
 0x2ee   :  { %v4235_v12 = vadd.f32 %v4203_v46, %v7907_v40  ;;  %v4237_v56 = vadd.f32 %v4215_v24, %v7910_v37  ;;  %v4364_v33 = vpop.f32.mrb[40].mxu1 }
 0x2ef   :  { %v4241_v59 = vmax.f32 %v4234_v62, 0.0  ;;  %v4243_v36 = vmax.f32 %v4236_v27, 0.0  ;;  %v4365_v39 = vpop.f32.mrb[41].mxu1 }
 0x2f0   :  { %v4242_v55 = vmax.f32 %v4235_v12, 0.0  ;;  %v4244_v28 = vmax.f32 %v4237_v56, 0.0  ;;  %v4366_v44 = vadd.f32 %v4365_v39, %v4364_v33 }
 0x2f2   :  { %v4255_v42 = vcombine.low %v4241_v59, %v4242_v55  ;;  %v4256_v3 = vcombine.low %v4243_v36, %v4244_v28  ;;  %v4367_v52 = vpop.f32.mrb[42].mxu1 }
 0x2f3   :  { %v4368_v43 = vpop.f32.mrb[43].mxu1 }
 0x2f4   :  { %v4264_v25 = vrot.slane %v4255_v42, %v7915_v57  ;;  %v4271_v2 = vrot.slane %v4256_v3, %v7915_v57  ;;  %v4369_v34 = vadd.f32 %v4368_v43, %v4367_v52 }
 0x2f6   :  { %v7945_v58 = vcombine.low %v4264_v25, %v4271_v2  ;;  %v4370_v40 = vpop.f32.mrb[44].mxu1 }
 0x2f7   :  { %v4371_v37 = vpop.f32.mrb[45].mxu1 }
 0x2f8   :  { %v4372_v18 = vadd.f32 %v4371_v37, %v4370_v40 }
 0x2fa   :  { %v4373_v0 = vpop.f32.mrb[46].mxu1 }
 0x2fb   :  { %v4374_v16 = vpop.f32.mrb[47].mxu1 }
 0x2fc   :  { %v4375_v15 = vadd.f32 %v4374_v16, %v4373_v0 }
 0x2fe   :  { %v4376_v22 = vpop.f32.mrb[48].mxu1 }
 0x2ff   :  { %v4377_v63 = vpop.f32.mrb[49].mxu1 }
 0x300   :  { %v4378_v21 = vadd.f32 %v4377_v63, %v4376_v22 }
 0x302   :  { %v4379_v7 = vpop.f32.mrb[50].mxu1 }
 0x303   :  { %v4380_v14 = vpop.f32.mrb[51].mxu1 }
 0x304   :  { %v4381_v8 = vadd.f32 %v4380_v14, %v4379_v7 }
 0x306   :  { %v4382_v5 = vpop.f32.mrb[52].mxu1 }
 0x307   :  { %v4383_v1 = vpop.f32.mrb[53].mxu1 }
 0x308   :  { %v7947_v9 = vadd.f32 %v4383_v1, %v4382_v5 }
 0x30a   :  { %v4385_v10 = vpop.f32.mrb[54].mxu1 }
 0x30b   :  { %v4386_v26 = vpop.f32.mrb[55].mxu1 }
 0x30c   :  { %v4387_v49 = vadd.f32 %v4386_v26, %v4385_v10 }
 0x30e   :  { %v4388_v17 = vpop.f32.mrb[56].mxu1 }
 0x30f   :  { %v4389_v4 = vpop.f32.mrb[57].mxu1 }
 0x310   :  { %v7949_v20 = vadd.f32 %v4389_v4, %v4388_v17 }
 0x312   :  { %v4391_v53 = vpop.f32.mrb[58].mxu1 }
 0x313   :  { %v4392_v47 = vpop.f32.mrb[59].mxu1 }
 0x314   :  { %v4393_v30 = vadd.f32 %v4392_v47, %v4391_v53 }
 0x316   :  { %v4394_v13 = vpop.f32.mrb[60].mxu1 }
 0x317   :  { %v4395_v29 = vpop.f32.mrb[61].mxu1 }
 0x318   :  { %v7951_v31 = vadd.f32 %v4395_v29, %v4394_v13 }
 0x31a   :  { %v4397_v35 = vpop.f32.mrb[62].mxu1 }
 0x31b   :  { %v4398_v51 = vpop.f32.mrb[63].mxu1 }
 0x31c   :  { %v7953_v41 = vadd.f32 %v4398_v51, %v4397_v35 }
 0x31e   :  { %v3555_v54 = vpop.f32.mrb[32].mxu0  ;;  %v4466_v50 = vpop.f32.mrb[64].mxu1 }
 0x31f   :  { %v3867_v32 = vadd.f32 %v4466_v50, %v7935_v61  ;;  %v3557_v45 = vpop.f32.mrb[33].mxu0  ;;  %v3861_v46 = vpop.f32.mrb[65].mxu1 }
 0x320   :  { %v3862_v24 = vadd.f32 %v7933_v19, %v3861_v46 }
 0x322   :  { %v7957_v62 = vpop.f32.mrb[34].mxu0  ;;  %v4469_v27 = vpop.f32.mrb[66].mxu1 }
 0x323   :  { %v3877_v12 = vadd.f32 %v4469_v27, %v4363_v60  ;;  %v7959_v56 = vpop.f32.mrb[35].mxu0  ;;  %v3871_v33 = vpop.f32.mrb[67].mxu1 }
 0x324   :  { %v3872_v59 = vadd.f32 %v7937_v6, %v3871_v33 }
 0x326   :  { %v3567_v36 = vpop.f32.mrb[36].mxu0  ;;  %v4472_v39 = vpop.f32.mrb[68].mxu1 }
 0x327   :  { %v3887_v55 = vadd.f32 %v4472_v39, %v4369_v34  ;;  %v3569_v28 = vpop.f32.mrb[37].mxu0  ;;  %v3881_v42 = vpop.f32.mrb[69].mxu1 }
 0x328   :  { %v3882_v3 = vadd.f32 %v4366_v44, %v3881_v42 }
 0x329   :  { %v3954_v61 = vmax.f32 %v3867_v32, %v3887_v55 }
 0x32a   :  { %v3947_v52 = vmax.f32 %v3862_v24, %v3882_v3  ;;  %v3573_v43 = vpop.f32.mrb[38].mxu0  ;;  %v4475_v25 = vpop.f32.mrb[70].mxu1 }
 0x32b   :  { %v3897_v19 = vadd.f32 %v4475_v25, %v4375_v15  ;;  %v3575_v2 = vpop.f32.mrb[39].mxu0  ;;  %v3891_v40 = vpop.f32.mrb[71].mxu1 }
 0x32c   :  { %v3892_v37 = vadd.f32 %v4372_v18, %v3891_v40 }
 0x32d   :  { %v3968_v60 = vmax.f32 %v3877_v12, %v3897_v19 }
 0x32e   :  { %v3961_v0 = vmax.f32 %v3872_v59, %v3892_v37  ;;  %v3579_v16 = vpop.f32.mrb[40].mxu0  ;;  %v4478_v22 = vpop.f32.mrb[72].mxu1 }
 0x32f   :  { %v3982_v63 = vmax.f32 %v3954_v61, %v3968_v60  ;;  %v3945_v6 = vmax.f32 %v3555_v54, %v3579_v16  ;;  %v3907_v7 = vadd.f32 %v4478_v22, %v4381_v8  ;;  %v3581_v14 = vpop.f32.mrb[41].mxu0  ;;  %v3901_v34 = vpop.f32.mrb[73].mxu1 }
 0x330   :  { %v3975_v5 = vmax.f32 %v3947_v52, %v3961_v0  ;;  %v3946_v1 = vmax.f32 %v3557_v45, %v3581_v14  ;;  %v3902_v44 = vadd.f32 %v4378_v21, %v3901_v34  ;;  %v4051_v14 = vsub.s32 4, %v7877_v11 }
 0x332   :  { %v3989_v10 = vmax.f32 %v3975_v5, %v3982_v63  ;;  %v3585_v26 = vpop.f32.mrb[42].mxu0  ;;  %v4481_v17 = vpop.f32.mrb[74].mxu1  ;;  %v4055_v5 = vsub.s32 5, %v7877_v11 }
 0x333   :  { %v3952_v15 = vmax.f32 %v7957_v62, %v3585_v26  ;;  %v3917_v4 = vadd.f32 %v4481_v17, %v4387_v49  ;;  %v3587_v53 = vpop.f32.mrb[43].mxu0  ;;  %v3911_v18 = vpop.f32.mrb[75].mxu1 }
 0x334   :  { %v4026_v47 = vrot.slane %v3989_v10, 4  ;;  %v3953_v13 = vmax.f32 %v7959_v56, %v3587_v53  ;;  %v3912_v29 = vadd.f32 %v7947_v9, %v3911_v18  ;;  %v7975_v53 = vrot.slane %v7891_v38, %v4051_v14 }
 0x336   :  { %v3591_v35 = vpop.f32.mrb[44].mxu0  ;;  %v4484_v8 = vpop.f32.mrb[76].mxu1  ;;  %v4027_v21 = vmax.f32 %v3989_v10, %v4026_v47  ;;  %v4056_v47 = vrot.slane %v7891_v38, %v4055_v5 }
 0x337   :  { %v3959_v51 = vmax.f32 %v3567_v36, %v3591_v35  ;;  %v3927_v54 = vadd.f32 %v4484_v8, %v4393_v30  ;;  %v3593_v50 = vpop.f32.mrb[45].mxu0  ;;  %v3921_v32 = vpop.f32.mrb[77].mxu1 }
 0x338   :  { %v3960_v45 = vmax.f32 %v3569_v28, %v3593_v50  ;;  %v3922_v46 = vadd.f32 %v7949_v20, %v3921_v32  ;;  %v4028_v55 = vrot.slane %v4027_v21, 2 }
 0x339   :  { %v3973_v24 = vmax.f32 %v3945_v6, %v3959_v51  ;;  %v4156_v62 = vmax.f32 %v3907_v7, %v3927_v54 }
 0x33a   :  { %v3974_v49 = vmax.f32 %v3946_v1, %v3960_v45  ;;  %v4149_v27 = vmax.f32 %v3902_v44, %v3922_v46  ;;  %v3597_v12 = vpop.f32.mrb[46].mxu0  ;;  %v4487_v33 = vpop.f32.mrb[78].mxu1  ;;  %v4029_v40 = vmax.f32 %v4027_v21, %v4028_v55 }
 0x33b   :  { %v3966_v59 = vmax.f32 %v3573_v43, %v3597_v12  ;;  %v3937_v56 = vadd.f32 %v4487_v33, %v7953_v41  ;;  %v3599_v9 = vpop.f32.mrb[47].mxu0  ;;  %v3931_v39 = vpop.f32.mrb[79].mxu1 }
 0x33c   :  { %v3967_v36 = vmax.f32 %v3575_v2, %v3599_v9  ;;  %v3932_v30 = vadd.f32 %v7951_v31, %v3931_v39  ;;  %v4030_v2 = vrot.slane %v4029_v40, 1  ;;  %v4059_v31 = vsub.s32 6, %v7877_v11 }
 0x33d   :  { %v3980_v42 = vmax.f32 %v3952_v15, %v3966_v59  ;;  %v4170_v3 = vmax.f32 %v3917_v4, %v3937_v56 }
 0x33e   :  { %v3981_v28 = vmax.f32 %v3953_v13, %v3967_v36  ;;  %v4163_v61 = vmax.f32 %v3912_v29, %v3932_v30  ;;  %v3603_v20 = vpop.f32.mrb[48].mxu0  ;;  %v4031_v26 = vmax.f32 %v4029_v40, %v4030_v2  ;;  %v7972_v17 = vrot.slane %v7891_v38, %v4059_v31 }
 0x33f   :  { %v3987_v52 = vmax.f32 %v3973_v24, %v3980_v42  ;;  %v4184_v25 = vmax.f32 %v4156_v62, %v4170_v3  ;;  %v3605_v19 = vpop.f32.mrb[49].mxu0  ;;  %v4128_v42 = vrot.slane %v7929_v23, %v7915_v57 }
 0x340   :  { %v3988_v37 = vmax.f32 %v3974_v49, %v3981_v28  ;;  %v4177_v60 = vmax.f32 %v4149_v27, %v4163_v61  ;;  %v4074_v11 = vadd.f32 %v7972_v17, %v4031_v26 }
 0x341   :  { %v4014_v43 = vrot.slane %v3987_v52, 4 }
 0x342   :  { %v4020_v0 = vrot.slane %v3988_v37, 4  ;;  %v4191_v41 = vmax.f32 %v4177_v60, %v4184_v25  ;;  %v3609_v16 = vpop.f32.mrb[50].mxu0  ;;  %v4081_v46 = vmax.f32 %v4074_v11, 0.0 }
 0x343   :  { %v4015_v22 = vmax.f32 %v3987_v52, %v4014_v43  ;;  %v3611_v63 = vpop.f32.mrb[51].mxu0 }
 0x344   :  { %v4021_v6 = vmax.f32 %v3988_v37, %v4020_v0  ;;  %v4119_v33 = vrot.slane %v4081_v46, %v7915_v57  ;;  %v4228_v56 = vrot.slane %v4191_v41, 4 }
 0x345   :  { %v4016_v7 = vrot.slane %v4015_v22, 2 }
 0x346   :  { %v4022_v34 = vrot.slane %v4021_v6, 2  ;;  %v3615_v1 = vpop.f32.mrb[52].mxu0  ;;  %v4229_v28 = vmax.f32 %v4191_v41, %v4228_v56 }
 0x347   :  { %v4017_v44 = vmax.f32 %v4015_v22, %v4016_v7  ;;  %v3617_v10 = vpop.f32.mrb[53].mxu0 }
 0x348   :  { %v4023_v15 = vmax.f32 %v4021_v6, %v4022_v34  ;;  %v4230_v23 = vrot.slane %v4229_v28, 2 }
 0x349   :  { %v4018_v4 = vrot.slane %v4017_v44, 1 }
 0x34a   :  { %v4024_v18 = vrot.slane %v4023_v15, 1  ;;  %v3621_v13 = vpop.f32.mrb[54].mxu0 }
 0x34b   :  { %v4019_v29 = vmax.f32 %v4017_v44, %v4018_v4  ;;  %v3623_v35 = vpop.f32.mrb[55].mxu0 }
 0x34c   :  { %v4025_v8 = vmax.f32 %v4023_v15, %v4024_v18 }
 0x34d   :  { %v4072_v51 = vadd.f32 %v7975_v53, %v4019_v29 }
 0x34e   :  { %v4073_v54 = vadd.f32 %v4056_v47, %v4025_v8  ;;  %v3627_v50 = vpop.f32.mrb[56].mxu0 }
 0x34f   :  { %v4079_v32 = vmax.f32 %v4072_v51, 0.0  ;;  %v4147_v21 = vmax.f32 %v3603_v20, %v3627_v50  ;;  %v3629_v45 = vpop.f32.mrb[57].mxu0 }
 0x350   :  { %v4080_v24 = vmax.f32 %v4073_v54, 0.0  ;;  %v4148_v62 = vmax.f32 %v3605_v19, %v3629_v45 }
 0x352   :  { %v4091_v49 = vcombine.low %v4079_v32, %v4080_v24  ;;  %v3633_v27 = vpop.f32.mrb[58].mxu0 }
 0x353   :  { %v4154_v12 = vmax.f32 %v3609_v16, %v3633_v27  ;;  %v3635_v38 = vpop.f32.mrb[59].mxu0  ;;  %v4231_v16 = vmax.f32 %v4229_v28, %v4230_v23 }
 0x354   :  { %v4112_v59 = vrot.slane %v4091_v49, %v7915_v57  ;;  %v4155_v9 = vmax.f32 %v3611_v63, %v3635_v38 }
 0x355   :  { %v4232_v6 = vrot.slane %v4231_v16, 1 }
 0x356   :  { %v4121_v39 = vcombine.low %v4112_v59, %v4119_v33  ;;  %v3639_v55 = vpop.f32.mrb[60].mxu0 }
 0x357   :  { %v4161_v36 = vmax.f32 %v3615_v1, %v3639_v55  ;;  %v3641_v30 = vpop.f32.mrb[61].mxu0  ;;  %v4233_v1 = vmax.f32 %v4231_v16, %v4232_v6 }
 0x358   :  { %v4135_v3 = vrot.slane %v4121_v39, %v7915_v57  ;;  %v4162_v61 = vmax.f32 %v3617_v10, %v3641_v30 }
 0x359   :  { %v4175_v52 = vmax.f32 %v4147_v21, %v4161_v36  ;;  %v4240_v4 = vadd.f32 %v4233_v1, %v7972_v17  ;;  %v4294_v21 = vrot.slane %v7945_v58, %v7915_v57 }
 0x35a   :  { %v4136_v25 = vcombine.low %v4128_v42, %v4135_v3  ;;  %v4176_v19 = vmax.f32 %v4148_v62, %v4162_v61  ;;  %v3645_v40 = vpop.f32.mrb[62].mxu0 }
 0x35b   :  { %v4168_v37 = vmax.f32 %v3621_v13, %v3645_v40  ;;  %v3647_v60 = vpop.f32.mrb[63].mxu0  ;;  %v4247_v11 = vmax.f32 %v4240_v4, 0.0 }
 0x35c   :  { %4142 = vst.msk [vmem:[%s8010_s3] sm:$0x7f] %vm7986_vm4, %v4136_v25  ;;  %v4169_v43 = vmax.f32 %v3623_v35, %v3647_v60 }
 0x35d   :  { %v4182_v0 = vmax.f32 %v4154_v12, %v4168_v37  ;;  %v4285_v54 = vrot.slane %v4247_v11, %v7915_v57 }
 0x35e   :  { %v4183_v41 = vmax.f32 %v4155_v9, %v4169_v43 }
 0x35f   :  { %v4189_v48 = vmax.f32 %v4175_v52, %v4182_v0 }
 0x360   :  { %v4190_v22 = vmax.f32 %v4176_v19, %v4183_v41 }
 0x361   :  { %v4216_v63 = vrot.slane %v4189_v48, 4 }
 0x362   :  { %v4222_v2 = vrot.slane %v4190_v22, 4 }
 0x363   :  { %v4217_v31 = vmax.f32 %v4189_v48, %v4216_v63 }
 0x364   :  { %v4223_v7 = vmax.f32 %v4190_v22, %v4222_v2 }
 0x365   :  { %v4218_v14 = vrot.slane %v4217_v31, 2 }
 0x366   :  { %v4224_v34 = vrot.slane %v4223_v7, 2 }
 0x367   :  { %v4219_v5 = vmax.f32 %v4217_v31, %v4218_v14 }
 0x368   :  { %v4225_v44 = vmax.f32 %v4223_v7, %v4224_v34 }
 0x369   :  { %v4220_v10 = vrot.slane %v4219_v5, 1 }
 0x36a   :  { %v4226_v26 = vrot.slane %v4225_v44, 1 }
 0x36b   :  { %v4221_v15 = vmax.f32 %v4219_v5, %v4220_v10 }
 0x36c   :  { %v4227_v18 = vmax.f32 %v4225_v44, %v4226_v26 }
 0x36d   :  { %v4238_v13 = vadd.f32 %v4221_v15, %v7975_v53 }
 0x36e   :  { %v4239_v29 = vadd.f32 %v4227_v18, %v4056_v47 }
 0x36f   :  { %v4245_v35 = vmax.f32 %v4238_v13, 0.0 }
 0x370   :  { %v4246_v8 = vmax.f32 %v4239_v29, 0.0 }
 0x372   :  { %v4257_v51 = vcombine.low %v4245_v35, %v4246_v8 }
 0x374   :  { %v4278_v50 = vrot.slane %v4257_v51, %v7915_v57 }
 0x376   :  { %v4287_v32 = vcombine.low %v4278_v50, %v4285_v54 }
 0x378   :  { %v4301_v45 = vrot.slane %v4287_v32, %v7915_v57 }
 0x37a   :  { %v4302_v46 = vcombine.low %v4294_v21, %v4301_v45 }
 0x37c   :  { %4319 = vst.msk [vmem:[%s8010_s3 + $0x7] sm:$0x7f] %vm7986_vm4, %v4302_v46 }
 0x37d   :  { %4310 = vsyncpa [#allocation5], 1 }

</bundles_post_ra>
